<compile_context>
chip_gen: v6e
topology: v6e:2x2x1
jax: 0.10.0
libtpu: 0.0.40
codegen_flags: <defaults>
</compile_context>

<pallas_src>
import functools

import jax
import jax.numpy as jnp
from jax import lax
from jax.experimental import pallas as pl
from jax.experimental.pallas import tpu as pltpu

LN_EPS = 1e-5  # nn.LayerNorm default


def _layernorm(x, gamma, beta):
    mu = jnp.mean(x, axis=-1, keepdims=True)
    var = jnp.mean((x - mu) ** 2, axis=-1, keepdims=True)
    return (x - mu) * lax.rsqrt(var + LN_EPS) * gamma + beta


def _block_kernel(x_ref, g1_ref, b1_ref, wq_ref, wk_ref, wv_ref, wp_ref, bp_ref,
                  g2_ref, b2_ref, w1_ref, bb1_ref, dww_ref, dwb_ref, w2_ref,
                  bb2_ref, o_ref, xn_sc, k_sc, v_sc, y_sc,
                  *, H, W, num_heads, head_dim, scale, tq, hidden):
    N = H * W
    C = num_heads * head_dim
    bf16 = jnp.bfloat16
    qi = pl.program_id(1)
    nq = pl.num_programs(1)

    # ---- once per batch element: LN1 + per-head K/V projections cached in VMEM ----
    @pl.when(qi == 0)
    def _():
        x_all = x_ref[0]                                              # (N, C) f32
        xn = _layernorm(x_all, g1_ref[...], b1_ref[...]).astype(bf16)
        xn_sc[...] = xn
        for h in range(num_heads):
            k_sc[h] = jnp.dot(xn, wk_ref[h],
                              preferred_element_type=jnp.float32).astype(bf16)
            v_sc[h] = jnp.dot(xn, wv_ref[h],
                              preferred_element_type=jnp.float32).astype(bf16)

    # ---- attention + residual for this query tile ----
    r0 = pl.multiple_of(qi * tq, tq)
    xq = x_ref[0, pl.ds(r0, tq), :]                                   # (tq, C) f32
    xnq = xn_sc[pl.ds(r0, tq), :]                                     # (tq, C) bf16

    proj = jnp.zeros((tq, C), jnp.float32)
    for h in range(num_heads):
        qh = jnp.dot(xnq, wq_ref[h], preferred_element_type=jnp.float32)
        qh = (qh * scale).astype(bf16)                                # fold scale into (tq, hd)
        s = lax.dot_general(qh, k_sc[h], (((1,), (1,)), ((), ())),
                            preferred_element_type=jnp.float32)       # (tq, N)
        s = s - jnp.max(s, axis=-1, keepdims=True)
        p = jnp.exp(s)
        inv = pl.reciprocal(jnp.sum(p, axis=-1, keepdims=True), approx=True)
        oh = jnp.dot(p.astype(bf16), v_sc[h],
                     preferred_element_type=jnp.float32) * inv        # (tq, hd)
        # accumulate head output straight into the projection (no concat / lane slice)
        proj = proj + jnp.dot(oh.astype(bf16), wp_ref[h],
                              preferred_element_type=jnp.float32)     # (tq, C)

    y_tile = xq + proj + bp_ref[...]
    y_sc[pl.ds(r0, tq), :] = y_tile

    # ---- MLP (LN2 -> fc1 -> 3x3 depthwise conv -> GELU -> fc2) + residual ----
    @pl.when(qi == nq - 1)
    def _():
        y = y_sc[...]                                                 # (N, C) f32
        yn = _layernorm(y, g2_ref[...], b2_ref[...]).astype(bf16)
        hcur = jnp.dot(yn, w1_ref[...],
                       preferred_element_type=jnp.float32) + bb1_ref[...]   # (N, hidden) f32

        # Depthwise 3x3, stride 1, pad 1, evaluated on flat N = H*W tokens via
        # 3 row rolls (+-W) and per-row column rolls (+-1) with hoisted masks.
        w_all = dww_ref[...]                                          # (9, hidden), loaded once
        n_idx = lax.broadcasted_iota(jnp.int32, (N, 1), 0)
        j_idx = n_idx % W
        row_mask = {-1: n_idx >= W, 0: None, 1: n_idx < (H - 1) * W}
        col_mask = {-1: j_idx >= 1, 0: None, 1: j_idx <= W - 2}

        acc = jnp.zeros((N, hidden), jnp.float32) + dwb_ref[...]
        for si in (-1, 0, 1):
            hr = hcur if si == 0 else pltpu.roll(hcur, (-si * W) % N, axis=0)
            if row_mask[si] is not None:
                hr = jnp.where(row_mask[si], hr, 0.0)
            for sj in (-1, 0, 1):
                hs = hr if sj == 0 else pltpu.roll(hr, (-sj) % N, axis=0)
                if col_mask[sj] is not None:
                    hs = jnp.where(col_mask[sj], hs, 0.0)
                kidx = (si + 1) * 3 + (sj + 1)
                acc = acc + hs * w_all[kidx:kidx + 1, :]

        # TODO(synk): nn.GELU default is exact erf-GELU; tanh approximation is used
        # for Mosaic-safe lowering (reference uses the same approximation).
        a = jax.nn.gelu(acc, approximate=True).astype(bf16)
        out = jnp.dot(a, w2_ref[...], preferred_element_type=jnp.float32) + bb2_ref[...]
        o_ref[0] = y + out


def pvt_block_forward(x, params, H, W, num_heads, q_tile=None):
    B, N, C = x.shape
    assert N == H * W and C % num_heads == 0
    head_dim = C // num_heads
    scale = head_dim ** -0.5
    hidden = params["fc1_w"].shape[1]
    if q_tile is None:
        q_tile = 128 if N % 128 == 0 else N
    assert N % q_tile == 0 and q_tile % 8 == 0, "q_tile must divide N and be 8-aligned"
    nq = N // q_tile

    # Host-side layout plumbing: per-head weight slabs + bf16 MXU operands.
    bf16 = jnp.bfloat16
    wq_h = params["wq"].reshape(C, num_heads, head_dim).transpose(1, 0, 2).astype(bf16)
    wk_h = params["wkv"][:, :C].reshape(C, num_heads, head_dim).transpose(1, 0, 2).astype(bf16)
    wv_h = params["wkv"][:, C:].reshape(C, num_heads, head_dim).transpose(1, 0, 2).astype(bf16)
    wp_h = params["wproj"].reshape(num_heads, head_dim, C).astype(bf16)
    fc1_w = params["fc1_w"].astype(bf16)
    fc2_w = params["fc2_w"].astype(bf16)

    def const(shape):
        zeros = (0,) * len(shape)
        return pl.BlockSpec(shape, lambda b, qi: zeros)

    tok = pl.BlockSpec((1, N, C), lambda b, qi: (b, 0, 0))

    kernel = functools.partial(
        _block_kernel, H=H, W=W, num_heads=num_heads, head_dim=head_dim,
        scale=scale, tq=q_tile, hidden=hidden)

    fn = pl.pallas_call(
        kernel,
        out_shape=jax.ShapeDtypeStruct((B, N, C), jnp.float32),
        grid=(B, nq),
        in_specs=[
            tok,                                        # x
            const((1, C)), const((1, C)),               # norm1 gamma / beta
            const((num_heads, C, head_dim)),            # q weight, per head
            const((num_heads, C, head_dim)),            # k weight, per head
            const((num_heads, C, head_dim)),            # v weight, per head
            const((num_heads, head_dim, C)),            # proj weight, per head
            const((1, C)),                              # proj bias
            const((1, C)), const((1, C)),               # norm2 gamma / beta
            const((C, hidden)), const((1, hidden)),     # fc1 weight / bias
            const((9, hidden)), const((1, hidden)),     # dwconv 3x3 taps / bias
            const((hidden, C)), const((1, C)),          # fc2 weight / bias
        ],
        out_specs=tok,
        scratch_shapes=[
            pltpu.VMEM((N, C), jnp.bfloat16),                    # LN1(x) cache
            pltpu.VMEM((num_heads, N, head_dim), jnp.bfloat16),  # K cache
            pltpu.VMEM((num_heads, N, head_dim), jnp.bfloat16),  # V cache
            pltpu.VMEM((N, C), jnp.float32),                     # y = x + attn (residual stream)
        ],
        compiler_params=pltpu.CompilerParams(
            dimension_semantics=("parallel", "arbitrary"),
            vmem_limit_bytes=64 * 1024 * 1024),
    )
    return fn(x, params["g1"], params["b1"], wq_h, wk_h, wv_h, wp_h,
              params["bproj"], params["g2"], params["b2"], fc1_w,
              params["fc1_b"], params["dw_w"], params["dw_b"], fc2_w,
              params["fc2_b"])


def pvt_block_reference(x, params, H, W, num_heads, mxu_dtype=jnp.float32):
    """Pure-JAX reference mirroring the PyTorch Block forward.

    mxu_dtype=jnp.float32  -> exact f32 PyTorch-style math.
    mxu_dtype=jnp.bfloat16 -> matmul operands cast to bf16 with f32 accumulation,
                              matching the kernel's MXU numerics.
    """
    B, N, C = x.shape
    head_dim = C // num_heads
    scale = head_dim ** -0.5
    hidden = params["fc1_w"].shape[1]
    cast = lambda t: t.astype(mxu_dtype)
    dot = lambda a, b: jnp.dot(cast(a), cast(b), preferred_element_type=jnp.float32)

    def ln(v, g, b):
        mu = jnp.mean(v, -1, keepdims=True)
        var = jnp.mean((v - mu) ** 2, -1, keepdims=True)
        return (v - mu) / jnp.sqrt(var + LN_EPS) * g + b

    xn = ln(x, params["g1"], params["b1"])
    q = dot(xn, params["wq"]) * scale
    kv = dot(xn, params["wkv"])
    k, v = cast(kv[..., :C]), cast(kv[..., C:])    # matches the kernel's bf16 K/V cache

    def split(t):
        return t.reshape(B, N, num_heads, head_dim).transpose(0, 2, 1, 3)

    qh, kh, vh = split(cast(q)), split(k), split(v)
    attn = jnp.einsum("bhqd,bhkd->bhqk", qh, kh, preferred_element_type=jnp.float32)
    attn = jax.nn.softmax(attn, axis=-1)
    o = jnp.einsum("bhqk,bhkd->bhqd", cast(attn), vh,
                   preferred_element_type=jnp.float32)
    o = o.transpose(0, 2, 1, 3).reshape(B, N, C)
    x = x + (dot(o, params["wproj"]) + params["bproj"])

    yn = ln(x, params["g2"], params["b2"])
    h = dot(yn, params["fc1_w"]) + params["fc1_b"]
    h4 = h.reshape(B, H, W, hidden)
    w4 = params["dw_w"].reshape(3, 3, hidden)[:, :, None, :]
    dw = lax.conv_general_dilated(h4, w4, (1, 1), "SAME",
                                  dimension_numbers=("NHWC", "HWIO", "NHWC"),
                                  feature_group_count=hidden) + params["dw_b"]
    a = jax.nn.gelu(dw.reshape(B, N, hidden), approximate=True)
    return x + (dot(a, params["fc2_w"]) + params["fc2_b"])


if __name__ == "__main__":
    key = jax.random.PRNGKey(0)
    B, H, W = 2, 8, 8
    C, num_heads, mlp_ratio = 32, 4, 2.0
    N = H * W
    hidden = int(C * mlp_ratio)

    ks = jax.random.split(key, 8)
    std = 0.02  # trunc_normal_(std=0.02) analogue
    params = dict(
        g1=jnp.ones((1, C), jnp.float32), b1=jnp.zeros((1, C), jnp.float32),
        wq=std * jax.random.normal(ks[0], (C, C), jnp.float32),
        wkv=std * jax.random.normal(ks[1], (C, 2 * C), jnp.float32),
        wproj=std * jax.random.normal(ks[2], (C, C), jnp.float32),
        bproj=jnp.zeros((1, C), jnp.float32),
        g2=jnp.ones((1, C), jnp.float32), b2=jnp.zeros((1, C), jnp.float32),
        fc1_w=std * jax.random.normal(ks[3], (C, hidden), jnp.float32),
        fc1_b=jnp.zeros((1, hidden), jnp.float32),
        dw_w=((2.0 / 9.0) ** 0.5) * jax.random.normal(ks[4], (9, hidden), jnp.float32),
        dw_b=jnp.zeros((1, hidden), jnp.float32),
        fc2_w=std * jax.random.normal(ks[5], (hidden, C), jnp.float32),
        fc2_b=jnp.zeros((1, C), jnp.float32),
    )
    x = jax.random.normal(ks[6], (B, N, C), jnp.float32)

    out = pvt_block_forward(x, params, H, W, num_heads, q_tile=32)
    out = jax.block_until_ready(out)

    # Tight check vs a numerics-matched reference (bf16 MXU operands, f32 accum).
    ref_matched = pvt_block_reference(x, params, H, W, num_heads, mxu_dtype=jnp.bfloat16)
    err_matched = float(jnp.max(jnp.abs(out - ref_matched)))
    # Loose check vs the pure-f32 PyTorch-style reference (difference = bf16 MXU rounding).
    ref_f32 = pvt_block_reference(x, params, H, W, num_heads, mxu_dtype=jnp.float32)
    err_f32 = float(jnp.max(jnp.abs(out - ref_f32)))
    assert err_matched < 5e-3, f"bf16-matched max abs error {err_matched}"
    assert err_f32 < 5e-2, f"f32 reference max abs error {err_f32}"
    print("KERNEL_OK")
</pallas_src>

<mosaic_0001>
module attributes {stable_mosaic.version = 11 : i64} {
  func.func @_block_kernel(%arg0: i32, %arg1: i32, %arg2: memref<1x64x32xf32, #tpu.memory_space<vmem>>, %arg3: memref<1x32xf32, #tpu.memory_space<vmem>>, %arg4: memref<1x32xf32, #tpu.memory_space<vmem>>, %arg5: memref<4x32x8xbf16, #tpu.memory_space<vmem>>, %arg6: memref<4x32x8xbf16, #tpu.memory_space<vmem>>, %arg7: memref<4x32x8xbf16, #tpu.memory_space<vmem>>, %arg8: memref<4x8x32xbf16, #tpu.memory_space<vmem>>, %arg9: memref<1x32xf32, #tpu.memory_space<vmem>>, %arg10: memref<1x32xf32, #tpu.memory_space<vmem>>, %arg11: memref<1x32xf32, #tpu.memory_space<vmem>>, %arg12: memref<32x64xbf16, #tpu.memory_space<vmem>>, %arg13: memref<1x64xf32, #tpu.memory_space<vmem>>, %arg14: memref<9x64xf32, #tpu.memory_space<vmem>>, %arg15: memref<1x64xf32, #tpu.memory_space<vmem>>, %arg16: memref<64x32xbf16, #tpu.memory_space<vmem>>, %arg17: memref<1x32xf32, #tpu.memory_space<vmem>>, %arg18: memref<1x64x32xf32, #tpu.memory_space<vmem>>, %arg19: memref<64x32xbf16, #tpu.memory_space<vmem>>, %arg20: memref<4x64x8xbf16, #tpu.memory_space<vmem>>, %arg21: memref<4x64x8xbf16, #tpu.memory_space<vmem>>, %arg22: memref<64x32xf32, #tpu.memory_space<vmem>>) attributes {dimension_semantics = [#tpu.dimension_semantics<parallel>, #tpu.dimension_semantics<arbitrary>], iteration_bounds = array<i64: 2, 2>, scalar_prefetch = 0 : i64, scratch_operands = 4 : i64, tpu.core_type = #tpu.core_type<tc>, window_params = [{transform_indices = @transform_0, window_bounds = array<i64: 1, 64, 32>}, {pipeline_mode = #tpu.pipeline_mode<synchronous>, transform_indices = @transform_1, window_bounds = array<i64: 1, 32>}, {pipeline_mode = #tpu.pipeline_mode<synchronous>, transform_indices = @transform_2, window_bounds = array<i64: 1, 32>}, {pipeline_mode = #tpu.pipeline_mode<synchronous>, transform_indices = @transform_3, window_bounds = array<i64: 4, 32, 8>}, {pipeline_mode = #tpu.pipeline_mode<synchronous>, transform_indices = @transform_4, window_bounds = array<i64: 4, 32, 8>}, {pipeline_mode = #tpu.pipeline_mode<synchronous>, transform_indices = @transform_5, window_bounds = array<i64: 4, 32, 8>}, {pipeline_mode = #tpu.pipeline_mode<synchronous>, transform_indices = @transform_6, window_bounds = array<i64: 4, 8, 32>}, {pipeline_mode = #tpu.pipeline_mode<synchronous>, transform_indices = @transform_7, window_bounds = array<i64: 1, 32>}, {pipeline_mode = #tpu.pipeline_mode<synchronous>, transform_indices = @transform_8, window_bounds = array<i64: 1, 32>}, {pipeline_mode = #tpu.pipeline_mode<synchronous>, transform_indices = @transform_9, window_bounds = array<i64: 1, 32>}, {pipeline_mode = #tpu.pipeline_mode<synchronous>, transform_indices = @transform_10, window_bounds = array<i64: 32, 64>}, {pipeline_mode = #tpu.pipeline_mode<synchronous>, transform_indices = @transform_11, window_bounds = array<i64: 1, 64>}, {pipeline_mode = #tpu.pipeline_mode<synchronous>, transform_indices = @transform_12, window_bounds = array<i64: 9, 64>}, {pipeline_mode = #tpu.pipeline_mode<synchronous>, transform_indices = @transform_13, window_bounds = array<i64: 1, 64>}, {pipeline_mode = #tpu.pipeline_mode<synchronous>, transform_indices = @transform_14, window_bounds = array<i64: 64, 32>}, {pipeline_mode = #tpu.pipeline_mode<synchronous>, transform_indices = @transform_15, window_bounds = array<i64: 1, 32>}, {transform_indices = @transform_16, window_bounds = array<i64: 1, 64, 32>}]} {
    %c0_i32 = arith.constant 0 : i32
    %0 = arith.cmpi eq, %arg1, %c0_i32 : i32
    %1 = arith.extui %0 : i1 to i32
    %c0_i32_0 = arith.constant 0 : i32
    %2 = arith.cmpi ne, %1, %c0_i32_0 : i32
    scf.if %2 {
      %c0_80 = arith.constant 0 : index
      %c0_81 = arith.constant 0 : index
      %c0_82 = arith.constant 0 : index
      %132 = vector.load %arg2[%c0_80, %c0_81, %c0_82] : memref<1x64x32xf32, #tpu.memory_space<vmem>>, vector<1x64x32xf32>
      %133 = vector.shape_cast %132 : vector<1x64x32xf32> to vector<64x32xf32>
      %c0_83 = arith.constant 0 : index
      %c0_84 = arith.constant 0 : index
      %134 = vector.load %arg3[%c0_83, %c0_84] : memref<1x32xf32, #tpu.memory_space<vmem>>, vector<1x32xf32>
      %c0_85 = arith.constant 0 : index
      %c0_86 = arith.constant 0 : index
      %135 = vector.load %arg4[%c0_85, %c0_86] : memref<1x32xf32, #tpu.memory_space<vmem>>, vector<1x32xf32>
      %cst_87 = arith.constant dense<0.000000e+00> : vector<64xf32>
      %136 = vector.multi_reduction <add>, %133, %cst_87 [1] : vector<64x32xf32> to vector<64xf32>
      %137 = vector.shape_cast %136 : vector<64xf32> to vector<64x1xf32>
      %cst_88 = arith.constant 3.200000e+01 : f32
      %138 = vector.broadcast %cst_88 : f32 to vector<64x1xf32>
      %139 = arith.divf %137, %138 : vector<64x1xf32>
      %140 = vector.broadcast %139 : vector<64x1xf32> to vector<64x32xf32>
      %141 = arith.subf %133, %140 : vector<64x32xf32>
      %142 = arith.mulf %141, %141 : vector<64x32xf32>
      %cst_89 = arith.constant dense<0.000000e+00> : vector<64xf32>
      %143 = vector.multi_reduction <add>, %142, %cst_89 [1] : vector<64x32xf32> to vector<64xf32>
      %144 = vector.shape_cast %143 : vector<64xf32> to vector<64x1xf32>
      %cst_90 = arith.constant 3.200000e+01 : f32
      %145 = vector.broadcast %cst_90 : f32 to vector<64x1xf32>
      %146 = arith.divf %144, %145 : vector<64x1xf32>
      %147 = vector.broadcast %139 : vector<64x1xf32> to vector<64x32xf32>
      %148 = arith.subf %133, %147 : vector<64x32xf32>
      %cst_91 = arith.constant 9.99999974E-6 : f32
      %149 = vector.broadcast %cst_91 : f32 to vector<64x1xf32>
      %150 = arith.addf %146, %149 : vector<64x1xf32>
      %151 = math.rsqrt %150 : vector<64x1xf32>
      %152 = vector.broadcast %151 : vector<64x1xf32> to vector<64x32xf32>
      %153 = arith.mulf %148, %152 : vector<64x32xf32>
      %154 = vector.broadcast %134 : vector<1x32xf32> to vector<64x32xf32>
      %155 = arith.mulf %153, %154 : vector<64x32xf32>
      %156 = vector.broadcast %135 : vector<1x32xf32> to vector<64x32xf32>
      %157 = arith.addf %155, %156 : vector<64x32xf32>
      %158 = arith.truncf %157 : vector<64x32xf32> to vector<64x32xbf16>
      %c0_92 = arith.constant 0 : index
      %c0_93 = arith.constant 0 : index
      %159 = vector.load %arg19[%c0_92, %c0_93] : memref<64x32xbf16, #tpu.memory_space<vmem>>, vector<64x32xbf16>
      tpu.vector_store %arg19[%c0_92, %c0_93], %158 {strides = array<i32>} : memref<64x32xbf16, #tpu.memory_space<vmem>>, vector<64x32xbf16>,
      %c0_94 = arith.constant 0 : index
      %c0_95 = arith.constant 0 : index
      %c0_96 = arith.constant 0 : index
      %160 = vector.load %arg6[%c0_94, %c0_95, %c0_96] : memref<4x32x8xbf16, #tpu.memory_space<vmem>>, vector<1x32x8xbf16>
      %161 = vector.shape_cast %160 : vector<1x32x8xbf16> to vector<32x8xbf16>
      %cst_97 = arith.constant dense<0.000000e+00> : vector<64x8xf32>
      %162 = tpu.matmul %158, %161, %cst_97 {dimension_numbers = #tpu.dot_dimension_numbers<[1], [0], [0], [1], [0, 0, 1, 1], [], []>} : vector<64x32xbf16>, vector<32x8xbf16>, vector<64x8xf32> -> vector<64x8xf32>
      %163 = arith.truncf %162 : vector<64x8xf32> to vector<64x8xbf16>
      %c0_98 = arith.constant 0 : index
      %c0_99 = arith.constant 0 : index
      %c0_100 = arith.constant 0 : index
      %164 = vector.load %arg20[%c0_98, %c0_99, %c0_100] : memref<4x64x8xbf16, #tpu.memory_space<vmem>>, vector<1x64x8xbf16>
      %165 = vector.shape_cast %164 : vector<1x64x8xbf16> to vector<64x8xbf16>
      %166 = vector.shape_cast %163 : vector<64x8xbf16> to vector<1x64x8xbf16>
      tpu.vector_store %arg20[%c0_98, %c0_99, %c0_100], %166 {strides = array<i32>} : memref<4x64x8xbf16, #tpu.memory_space<vmem>>, vector<1x64x8xbf16>,
      %c0_101 = arith.constant 0 : index
      %c0_102 = arith.constant 0 : index
      %c0_103 = arith.constant 0 : index
      %167 = vector.load %arg7[%c0_101, %c0_102, %c0_103] : memref<4x32x8xbf16, #tpu.memory_space<vmem>>, vector<1x32x8xbf16>
      %168 = vector.shape_cast %167 : vector<1x32x8xbf16> to vector<32x8xbf16>
      %cst_104 = arith.constant dense<0.000000e+00> : vector<64x8xf32>
      %169 = tpu.matmul %158, %168, %cst_104 {dimension_numbers = #tpu.dot_dimension_numbers<[1], [0], [0], [1], [0, 0, 1, 1], [], []>} : vector<64x32xbf16>, vector<32x8xbf16>, vector<64x8xf32> -> vector<64x8xf32>
      %170 = arith.truncf %169 : vector<64x8xf32> to vector<64x8xbf16>
      %c0_105 = arith.constant 0 : index
      %c0_106 = arith.constant 0 : index
      %c0_107 = arith.constant 0 : index
      %171 = vector.load %arg21[%c0_105, %c0_106, %c0_107] : memref<4x64x8xbf16, #tpu.memory_space<vmem>>, vector<1x64x8xbf16>
      %172 = vector.shape_cast %171 : vector<1x64x8xbf16> to vector<64x8xbf16>
      %173 = vector.shape_cast %170 : vector<64x8xbf16> to vector<1x64x8xbf16>
      tpu.vector_store %arg21[%c0_105, %c0_106, %c0_107], %173 {strides = array<i32>} : memref<4x64x8xbf16, #tpu.memory_space<vmem>>, vector<1x64x8xbf16>,
      %c1_108 = arith.constant 1 : index
      %c0_109 = arith.constant 0 : index
      %c0_110 = arith.constant 0 : index
      %174 = vector.load %arg6[%c1_108, %c0_109, %c0_110] : memref<4x32x8xbf16, #tpu.memory_space<vmem>>, vector<1x32x8xbf16>
      %175 = vector.shape_cast %174 : vector<1x32x8xbf16> to vector<32x8xbf16>
      %cst_111 = arith.constant dense<0.000000e+00> : vector<64x8xf32>
      %176 = tpu.matmul %158, %175, %cst_111 {dimension_numbers = #tpu.dot_dimension_numbers<[1], [0], [0], [1], [0, 0, 1, 1], [], []>} : vector<64x32xbf16>, vector<32x8xbf16>, vector<64x8xf32> -> vector<64x8xf32>
      %177 = arith.truncf %176 : vector<64x8xf32> to vector<64x8xbf16>
      %c1_112 = arith.constant 1 : index
      %c0_113 = arith.constant 0 : index
      %c0_114 = arith.constant 0 : index
      %178 = vector.load %arg20[%c1_112, %c0_113, %c0_114] : memref<4x64x8xbf16, #tpu.memory_space<vmem>>, vector<1x64x8xbf16>
      %179 = vector.shape_cast %178 : vector<1x64x8xbf16> to vector<64x8xbf16>
      %180 = vector.shape_cast %177 : vector<64x8xbf16> to vector<1x64x8xbf16>
      tpu.vector_store %arg20[%c1_112, %c0_113, %c0_114], %180 {strides = array<i32>} : memref<4x64x8xbf16, #tpu.memory_space<vmem>>, vector<1x64x8xbf16>,
      %c1_115 = arith.constant 1 : index
      %c0_116 = arith.constant 0 : index
      %c0_117 = arith.constant 0 : index
      %181 = vector.load %arg7[%c1_115, %c0_116, %c0_117] : memref<4x32x8xbf16, #tpu.memory_space<vmem>>, vector<1x32x8xbf16>
      %182 = vector.shape_cast %181 : vector<1x32x8xbf16> to vector<32x8xbf16>
      %cst_118 = arith.constant dense<0.000000e+00> : vector<64x8xf32>
      %183 = tpu.matmul %158, %182, %cst_118 {dimension_numbers = #tpu.dot_dimension_numbers<[1], [0], [0], [1], [0, 0, 1, 1], [], []>} : vector<64x32xbf16>, vector<32x8xbf16>, vector<64x8xf32> -> vector<64x8xf32>
      %184 = arith.truncf %183 : vector<64x8xf32> to vector<64x8xbf16>
      %c1_119 = arith.constant 1 : index
      %c0_120 = arith.constant 0 : index
      %c0_121 = arith.constant 0 : index
      %185 = vector.load %arg21[%c1_119, %c0_120, %c0_121] : memref<4x64x8xbf16, #tpu.memory_space<vmem>>, vector<1x64x8xbf16>
      %186 = vector.shape_cast %185 : vector<1x64x8xbf16> to vector<64x8xbf16>
      %187 = vector.shape_cast %184 : vector<64x8xbf16> to vector<1x64x8xbf16>
      tpu.vector_store %arg21[%c1_119, %c0_120, %c0_121], %187 {strides = array<i32>} : memref<4x64x8xbf16, #tpu.memory_space<vmem>>, vector<1x64x8xbf16>,
      %c2_122 = arith.constant 2 : index
      %c0_123 = arith.constant 0 : index
      %c0_124 = arith.constant 0 : index
      %188 = vector.load %arg6[%c2_122, %c0_123, %c0_124] : memref<4x32x8xbf16, #tpu.memory_space<vmem>>, vector<1x32x8xbf16>
      %189 = vector.shape_cast %188 : vector<1x32x8xbf16> to vector<32x8xbf16>
      %cst_125 = arith.constant dense<0.000000e+00> : vector<64x8xf32>
      %190 = tpu.matmul %158, %189, %cst_125 {dimension_numbers = #tpu.dot_dimension_numbers<[1], [0], [0], [1], [0, 0, 1, 1], [], []>} : vector<64x32xbf16>, vector<32x8xbf16>, vector<64x8xf32> -> vector<64x8xf32>
      %191 = arith.truncf %190 : vector<64x8xf32> to vector<64x8xbf16>
      %c2_126 = arith.constant 2 : index
      %c0_127 = arith.constant 0 : index
      %c0_128 = arith.constant 0 : index
      %192 = vector.load %arg20[%c2_126, %c0_127, %c0_128] : memref<4x64x8xbf16, #tpu.memory_space<vmem>>, vector<1x64x8xbf16>
      %193 = vector.shape_cast %192 : vector<1x64x8xbf16> to vector<64x8xbf16>
      %194 = vector.shape_cast %191 : vector<64x8xbf16> to vector<1x64x8xbf16>
      tpu.vector_store %arg20[%c2_126, %c0_127, %c0_128], %194 {strides = array<i32>} : memref<4x64x8xbf16, #tpu.memory_space<vmem>>, vector<1x64x8xbf16>,
      %c2_129 = arith.constant 2 : index
      %c0_130 = arith.constant 0 : index
      %c0_131 = arith.constant 0 : index
      %195 = vector.load %arg7[%c2_129, %c0_130, %c0_131] : memref<4x32x8xbf16, #tpu.memory_space<vmem>>, vector<1x32x8xbf16>
      %196 = vector.shape_cast %195 : vector<1x32x8xbf16> to vector<32x8xbf16>
      %cst_132 = arith.constant dense<0.000000e+00> : vector<64x8xf32>
      %197 = tpu.matmul %158, %196, %cst_132 {dimension_numbers = #tpu.dot_dimension_numbers<[1], [0], [0], [1], [0, 0, 1, 1], [], []>} : vector<64x32xbf16>, vector<32x8xbf16>, vector<64x8xf32> -> vector<64x8xf32>
      %198 = arith.truncf %197 : vector<64x8xf32> to vector<64x8xbf16>
      %c2_133 = arith.constant 2 : index
      %c0_134 = arith.constant 0 : index
      %c0_135 = arith.constant 0 : index
      %199 = vector.load %arg21[%c2_133, %c0_134, %c0_135] : memref<4x64x8xbf16, #tpu.memory_space<vmem>>, vector<1x64x8xbf16>
      %200 = vector.shape_cast %199 : vector<1x64x8xbf16> to vector<64x8xbf16>
      %201 = vector.shape_cast %198 : vector<64x8xbf16> to vector<1x64x8xbf16>
      tpu.vector_store %arg21[%c2_133, %c0_134, %c0_135], %201 {strides = array<i32>} : memref<4x64x8xbf16, #tpu.memory_space<vmem>>, vector<1x64x8xbf16>,
      %c3_136 = arith.constant 3 : index
      %c0_137 = arith.constant 0 : index
      %c0_138 = arith.constant 0 : index
      %202 = vector.load %arg6[%c3_136, %c0_137, %c0_138] : memref<4x32x8xbf16, #tpu.memory_space<vmem>>, vector<1x32x8xbf16>
      %203 = vector.shape_cast %202 : vector<1x32x8xbf16> to vector<32x8xbf16>
      %cst_139 = arith.constant dense<0.000000e+00> : vector<64x8xf32>
      %204 = tpu.matmul %158, %203, %cst_139 {dimension_numbers = #tpu.dot_dimension_numbers<[1], [0], [0], [1], [0, 0, 1, 1], [], []>} : vector<64x32xbf16>, vector<32x8xbf16>, vector<64x8xf32> -> vector<64x8xf32>
      %205 = arith.truncf %204 : vector<64x8xf32> to vector<64x8xbf16>
      %c3_140 = arith.constant 3 : index
      %c0_141 = arith.constant 0 : index
      %c0_142 = arith.constant 0 : index
      %206 = vector.load %arg20[%c3_140, %c0_141, %c0_142] : memref<4x64x8xbf16, #tpu.memory_space<vmem>>, vector<1x64x8xbf16>
      %207 = vector.shape_cast %206 : vector<1x64x8xbf16> to vector<64x8xbf16>
      %208 = vector.shape_cast %205 : vector<64x8xbf16> to vector<1x64x8xbf16>
      tpu.vector_store %arg20[%c3_140, %c0_141, %c0_142], %208 {strides = array<i32>} : memref<4x64x8xbf16, #tpu.memory_space<vmem>>, vector<1x64x8xbf16>,
      %c3_143 = arith.constant 3 : index
      %c0_144 = arith.constant 0 : index
      %c0_145 = arith.constant 0 : index
      %209 = vector.load %arg7[%c3_143, %c0_144, %c0_145] : memref<4x32x8xbf16, #tpu.memory_space<vmem>>, vector<1x32x8xbf16>
      %210 = vector.shape_cast %209 : vector<1x32x8xbf16> to vector<32x8xbf16>
      %cst_146 = arith.constant dense<0.000000e+00> : vector<64x8xf32>
      %211 = tpu.matmul %158, %210, %cst_146 {dimension_numbers = #tpu.dot_dimension_numbers<[1], [0], [0], [1], [0, 0, 1, 1], [], []>} : vector<64x32xbf16>, vector<32x8xbf16>, vector<64x8xf32> -> vector<64x8xf32>
      %212 = arith.truncf %211 : vector<64x8xf32> to vector<64x8xbf16>
      %c3_147 = arith.constant 3 : index
      %c0_148 = arith.constant 0 : index
      %c0_149 = arith.constant 0 : index
      %213 = vector.load %arg21[%c3_147, %c0_148, %c0_149] : memref<4x64x8xbf16, #tpu.memory_space<vmem>>, vector<1x64x8xbf16>
      %214 = vector.shape_cast %213 : vector<1x64x8xbf16> to vector<64x8xbf16>
      %215 = vector.shape_cast %212 : vector<64x8xbf16> to vector<1x64x8xbf16>
      tpu.vector_store %arg21[%c3_147, %c0_148, %c0_149], %215 {strides = array<i32>} : memref<4x64x8xbf16, #tpu.memory_space<vmem>>, vector<1x64x8xbf16>,
    } else {
    }
    %c32_i32 = arith.constant 32 : i32
    %3 = arith.muli %arg1, %c32_i32 : i32
    %4 = tpu.assume_multiple %3, 32 : i32
    %c0 = arith.constant 0 : index
    %5 = arith.index_cast %4 : i32 to index
    %c0_1 = arith.constant 0 : index
    %6 = vector.load %arg2[%c0, %5, %c0_1] : memref<1x64x32xf32, #tpu.memory_space<vmem>>, vector<1x32x32xf32>
    %7 = vector.shape_cast %6 : vector<1x32x32xf32> to vector<32x32xf32>
    %8 = arith.index_cast %4 : i32 to index
    %c0_2 = arith.constant 0 : index
    %9 = vector.load %arg19[%8, %c0_2] : memref<64x32xbf16, #tpu.memory_space<vmem>>, vector<32x32xbf16>
    %cst = arith.constant 0.000000e+00 : f32
    %10 = vector.broadcast %cst : f32 to vector<32x32xf32>
    %c0_3 = arith.constant 0 : index
    %c0_4 = arith.constant 0 : index
    %c0_5 = arith.constant 0 : index
    %11 = vector.load %arg5[%c0_3, %c0_4, %c0_5] : memref<4x32x8xbf16, #tpu.memory_space<vmem>>, vector<1x32x8xbf16>
    %12 = vector.shape_cast %11 : vector<1x32x8xbf16> to vector<32x8xbf16>
    %cst_6 = arith.constant dense<0.000000e+00> : vector<32x8xf32>
    %13 = tpu.matmul %9, %12, %cst_6 {dimension_numbers = #tpu.dot_dimension_numbers<[1], [0], [0], [1], [0, 0, 1, 1], [], []>} : vector<32x32xbf16>, vector<32x8xbf16>, vector<32x8xf32> -> vector<32x8xf32>
    %cst_7 = arith.constant 0.353553385 : f32
    %14 = vector.broadcast %cst_7 : f32 to vector<32x8xf32>
    %15 = arith.mulf %13, %14 : vector<32x8xf32>
    %16 = arith.truncf %15 : vector<32x8xf32> to vector<32x8xbf16>
    %c0_8 = arith.constant 0 : index
    %c0_9 = arith.constant 0 : index
    %c0_10 = arith.constant 0 : index
    %17 = vector.load %arg20[%c0_8, %c0_9, %c0_10] : memref<4x64x8xbf16, #tpu.memory_space<vmem>>, vector<1x64x8xbf16>
    %18 = vector.shape_cast %17 : vector<1x64x8xbf16> to vector<64x8xbf16>
    %cst_11 = arith.constant dense<0.000000e+00> : vector<32x64xf32>
    %19 = tpu.matmul %16, %18, %cst_11 {dimension_numbers = #tpu.dot_dimension_numbers<[1], [1], [0], [0], [0, 0, 1, 0], [], []>} : vector<32x8xbf16>, vector<64x8xbf16>, vector<32x64xf32> -> vector<32x64xf32>
    %cst_12 = arith.constant dense<0xFF800000> : vector<32xf32>
    %20 = vector.multi_reduction <maximumf>, %19, %cst_12 [1] : vector<32x64xf32> to vector<32xf32>
    %21 = vector.shape_cast %20 : vector<32xf32> to vector<32x1xf32>
    %22 = vector.broadcast %21 : vector<32x1xf32> to vector<32x64xf32>
    %23 = arith.subf %19, %22 : vector<32x64xf32>
    %24 = math.exp %23 : vector<32x64xf32>
    %cst_13 = arith.constant dense<0.000000e+00> : vector<32xf32>
    %25 = vector.multi_reduction <add>, %24, %cst_13 [1] : vector<32x64xf32> to vector<32xf32>
    %26 = vector.shape_cast %25 : vector<32xf32> to vector<32x1xf32>
    %27 = tpu.reciprocal %26 {approx = true} : vector<32x1xf32> -> vector<32x1xf32>
    %28 = arith.truncf %24 : vector<32x64xf32> to vector<32x64xbf16>
    %c0_14 = arith.constant 0 : index
    %c0_15 = arith.constant 0 : index
    %c0_16 = arith.constant 0 : index
    %29 = vector.load %arg21[%c0_14, %c0_15, %c0_16] : memref<4x64x8xbf16, #tpu.memory_space<vmem>>, vector<1x64x8xbf16>
    %30 = vector.shape_cast %29 : vector<1x64x8xbf16> to vector<64x8xbf16>
    %cst_17 = arith.constant dense<0.000000e+00> : vector<32x8xf32>
    %31 = tpu.matmul %28, %30, %cst_17 {dimension_numbers = #tpu.dot_dimension_numbers<[1], [0], [0], [1], [0, 0, 1, 1], [], []>} : vector<32x64xbf16>, vector<64x8xbf16>, vector<32x8xf32> -> vector<32x8xf32>
    %32 = vector.broadcast %27 : vector<32x1xf32> to vector<32x8xf32>
    %33 = arith.mulf %31, %32 : vector<32x8xf32>
    %34 = arith.truncf %33 : vector<32x8xf32> to vector<32x8xbf16>
    %c0_18 = arith.constant 0 : index
    %c0_19 = arith.constant 0 : index
    %c0_20 = arith.constant 0 : index
    %35 = vector.load %arg8[%c0_18, %c0_19, %c0_20] : memref<4x8x32xbf16, #tpu.memory_space<vmem>>, vector<1x8x32xbf16>
    %36 = vector.shape_cast %35 : vector<1x8x32xbf16> to vector<8x32xbf16>
    %cst_21 = arith.constant dense<0.000000e+00> : vector<32x32xf32>
    %37 = tpu.matmul %34, %36, %cst_21 {dimension_numbers = #tpu.dot_dimension_numbers<[1], [0], [0], [1], [0, 0, 1, 1], [], []>} : vector<32x8xbf16>, vector<8x32xbf16>, vector<32x32xf32> -> vector<32x32xf32>
    %38 = arith.addf %10, %37 : vector<32x32xf32>
    %c1 = arith.constant 1 : index
    %c0_22 = arith.constant 0 : index
    %c0_23 = arith.constant 0 : index
    %39 = vector.load %arg5[%c1, %c0_22, %c0_23] : memref<4x32x8xbf16, #tpu.memory_space<vmem>>, vector<1x32x8xbf16>
    %40 = vector.shape_cast %39 : vector<1x32x8xbf16> to vector<32x8xbf16>
    %cst_24 = arith.constant dense<0.000000e+00> : vector<32x8xf32>
    %41 = tpu.matmul %9, %40, %cst_24 {dimension_numbers = #tpu.dot_dimension_numbers<[1], [0], [0], [1], [0, 0, 1, 1], [], []>} : vector<32x32xbf16>, vector<32x8xbf16>, vector<32x8xf32> -> vector<32x8xf32>
    %cst_25 = arith.constant 0.353553385 : f32
    %42 = vector.broadcast %cst_25 : f32 to vector<32x8xf32>
    %43 = arith.mulf %41, %42 : vector<32x8xf32>
    %44 = arith.truncf %43 : vector<32x8xf32> to vector<32x8xbf16>
    %c1_26 = arith.constant 1 : index
    %c0_27 = arith.constant 0 : index
    %c0_28 = arith.constant 0 : index
    %45 = vector.load %arg20[%c1_26, %c0_27, %c0_28] : memref<4x64x8xbf16, #tpu.memory_space<vmem>>, vector<1x64x8xbf16>
    %46 = vector.shape_cast %45 : vector<1x64x8xbf16> to vector<64x8xbf16>
    %cst_29 = arith.constant dense<0.000000e+00> : vector<32x64xf32>
    %47 = tpu.matmul %44, %46, %cst_29 {dimension_numbers = #tpu.dot_dimension_numbers<[1], [1], [0], [0], [0, 0, 1, 0], [], []>} : vector<32x8xbf16>, vector<64x8xbf16>, vector<32x64xf32> -> vector<32x64xf32>
    %cst_30 = arith.constant dense<0xFF800000> : vector<32xf32>
    %48 = vector.multi_reduction <maximumf>, %47, %cst_30 [1] : vector<32x64xf32> to vector<32xf32>
    %49 = vector.shape_cast %48 : vector<32xf32> to vector<32x1xf32>
    %50 = vector.broadcast %49 : vector<32x1xf32> to vector<32x64xf32>
    %51 = arith.subf %47, %50 : vector<32x64xf32>
    %52 = math.exp %51 : vector<32x64xf32>
    %cst_31 = arith.constant dense<0.000000e+00> : vector<32xf32>
    %53 = vector.multi_reduction <add>, %52, %cst_31 [1] : vector<32x64xf32> to vector<32xf32>
    %54 = vector.shape_cast %53 : vector<32xf32> to vector<32x1xf32>
    %55 = tpu.reciprocal %54 {approx = true} : vector<32x1xf32> -> vector<32x1xf32>
    %56 = arith.truncf %52 : vector<32x64xf32> to vector<32x64xbf16>
    %c1_32 = arith.constant 1 : index
    %c0_33 = arith.constant 0 : index
    %c0_34 = arith.constant 0 : index
    %57 = vector.load %arg21[%c1_32, %c0_33, %c0_34] : memref<4x64x8xbf16, #tpu.memory_space<vmem>>, vector<1x64x8xbf16>
    %58 = vector.shape_cast %57 : vector<1x64x8xbf16> to vector<64x8xbf16>
    %cst_35 = arith.constant dense<0.000000e+00> : vector<32x8xf32>
    %59 = tpu.matmul %56, %58, %cst_35 {dimension_numbers = #tpu.dot_dimension_numbers<[1], [0], [0], [1], [0, 0, 1, 1], [], []>} : vector<32x64xbf16>, vector<64x8xbf16>, vector<32x8xf32> -> vector<32x8xf32>
    %60 = vector.broadcast %55 : vector<32x1xf32> to vector<32x8xf32>
    %61 = arith.mulf %59, %60 : vector<32x8xf32>
    %62 = arith.truncf %61 : vector<32x8xf32> to vector<32x8xbf16>
    %c1_36 = arith.constant 1 : index
    %c0_37 = arith.constant 0 : index
    %c0_38 = arith.constant 0 : index
    %63 = vector.load %arg8[%c1_36, %c0_37, %c0_38] : memref<4x8x32xbf16, #tpu.memory_space<vmem>>, vector<1x8x32xbf16>
    %64 = vector.shape_cast %63 : vector<1x8x32xbf16> to vector<8x32xbf16>
    %cst_39 = arith.constant dense<0.000000e+00> : vector<32x32xf32>
    %65 = tpu.matmul %62, %64, %cst_39 {dimension_numbers = #tpu.dot_dimension_numbers<[1], [0], [0], [1], [0, 0, 1, 1], [], []>} : vector<32x8xbf16>, vector<8x32xbf16>, vector<32x32xf32> -> vector<32x32xf32>
    %66 = arith.addf %38, %65 : vector<32x32xf32>
    %c2 = arith.constant 2 : index
    %c0_40 = arith.constant 0 : index
    %c0_41 = arith.constant 0 : index
    %67 = vector.load %arg5[%c2, %c0_40, %c0_41] : memref<4x32x8xbf16, #tpu.memory_space<vmem>>, vector<1x32x8xbf16>
    %68 = vector.shape_cast %67 : vector<1x32x8xbf16> to vector<32x8xbf16>
    %cst_42 = arith.constant dense<0.000000e+00> : vector<32x8xf32>
    %69 = tpu.matmul %9, %68, %cst_42 {dimension_numbers = #tpu.dot_dimension_numbers<[1], [0], [0], [1], [0, 0, 1, 1], [], []>} : vector<32x32xbf16>, vector<32x8xbf16>, vector<32x8xf32> -> vector<32x8xf32>
    %cst_43 = arith.constant 0.353553385 : f32
    %70 = vector.broadcast %cst_43 : f32 to vector<32x8xf32>
    %71 = arith.mulf %69, %70 : vector<32x8xf32>
    %72 = arith.truncf %71 : vector<32x8xf32> to vector<32x8xbf16>
    %c2_44 = arith.constant 2 : index
    %c0_45 = arith.constant 0 : index
    %c0_46 = arith.constant 0 : index
    %73 = vector.load %arg20[%c2_44, %c0_45, %c0_46] : memref<4x64x8xbf16, #tpu.memory_space<vmem>>, vector<1x64x8xbf16>
    %74 = vector.shape_cast %73 : vector<1x64x8xbf16> to vector<64x8xbf16>
    %cst_47 = arith.constant dense<0.000000e+00> : vector<32x64xf32>
    %75 = tpu.matmul %72, %74, %cst_47 {dimension_numbers = #tpu.dot_dimension_numbers<[1], [1], [0], [0], [0, 0, 1, 0], [], []>} : vector<32x8xbf16>, vector<64x8xbf16>, vector<32x64xf32> -> vector<32x64xf32>
    %cst_48 = arith.constant dense<0xFF800000> : vector<32xf32>
    %76 = vector.multi_reduction <maximumf>, %75, %cst_48 [1] : vector<32x64xf32> to vector<32xf32>
    %77 = vector.shape_cast %76 : vector<32xf32> to vector<32x1xf32>
    %78 = vector.broadcast %77 : vector<32x1xf32> to vector<32x64xf32>
    %79 = arith.subf %75, %78 : vector<32x64xf32>
    %80 = math.exp %79 : vector<32x64xf32>
    %cst_49 = arith.constant dense<0.000000e+00> : vector<32xf32>
    %81 = vector.multi_reduction <add>, %80, %cst_49 [1] : vector<32x64xf32> to vector<32xf32>
    %82 = vector.shape_cast %81 : vector<32xf32> to vector<32x1xf32>
    %83 = tpu.reciprocal %82 {approx = true} : vector<32x1xf32> -> vector<32x1xf32>
    %84 = arith.truncf %80 : vector<32x64xf32> to vector<32x64xbf16>
    %c2_50 = arith.constant 2 : index
    %c0_51 = arith.constant 0 : index
    %c0_52 = arith.constant 0 : index
    %85 = vector.load %arg21[%c2_50, %c0_51, %c0_52] : memref<4x64x8xbf16, #tpu.memory_space<vmem>>, vector<1x64x8xbf16>
    %86 = vector.shape_cast %85 : vector<1x64x8xbf16> to vector<64x8xbf16>
    %cst_53 = arith.constant dense<0.000000e+00> : vector<32x8xf32>
    %87 = tpu.matmul %84, %86, %cst_53 {dimension_numbers = #tpu.dot_dimension_numbers<[1], [0], [0], [1], [0, 0, 1, 1], [], []>} : vector<32x64xbf16>, vector<64x8xbf16>, vector<32x8xf32> -> vector<32x8xf32>
    %88 = vector.broadcast %83 : vector<32x1xf32> to vector<32x8xf32>
    %89 = arith.mulf %87, %88 : vector<32x8xf32>
    %90 = arith.truncf %89 : vector<32x8xf32> to vector<32x8xbf16>
    %c2_54 = arith.constant 2 : index
    %c0_55 = arith.constant 0 : index
    %c0_56 = arith.constant 0 : index
    %91 = vector.load %arg8[%c2_54, %c0_55, %c0_56] : memref<4x8x32xbf16, #tpu.memory_space<vmem>>, vector<1x8x32xbf16>
    %92 = vector.shape_cast %91 : vector<1x8x32xbf16> to vector<8x32xbf16>
    %cst_57 = arith.constant dense<0.000000e+00> : vector<32x32xf32>
    %93 = tpu.matmul %90, %92, %cst_57 {dimension_numbers = #tpu.dot_dimension_numbers<[1], [0], [0], [1], [0, 0, 1, 1], [], []>} : vector<32x8xbf16>, vector<8x32xbf16>, vector<32x32xf32> -> vector<32x32xf32>
    %94 = arith.addf %66, %93 : vector<32x32xf32>
    %c3 = arith.constant 3 : index
    %c0_58 = arith.constant 0 : index
    %c0_59 = arith.constant 0 : index
    %95 = vector.load %arg5[%c3, %c0_58, %c0_59] : memref<4x32x8xbf16, #tpu.memory_space<vmem>>, vector<1x32x8xbf16>
    %96 = vector.shape_cast %95 : vector<1x32x8xbf16> to vector<32x8xbf16>
    %cst_60 = arith.constant dense<0.000000e+00> : vector<32x8xf32>
    %97 = tpu.matmul %9, %96, %cst_60 {dimension_numbers = #tpu.dot_dimension_numbers<[1], [0], [0], [1], [0, 0, 1, 1], [], []>} : vector<32x32xbf16>, vector<32x8xbf16>, vector<32x8xf32> -> vector<32x8xf32>
    %cst_61 = arith.constant 0.353553385 : f32
    %98 = vector.broadcast %cst_61 : f32 to vector<32x8xf32>
    %99 = arith.mulf %97, %98 : vector<32x8xf32>
    %100 = arith.truncf %99 : vector<32x8xf32> to vector<32x8xbf16>
    %c3_62 = arith.constant 3 : index
    %c0_63 = arith.constant 0 : index
    %c0_64 = arith.constant 0 : index
    %101 = vector.load %arg20[%c3_62, %c0_63, %c0_64] : memref<4x64x8xbf16, #tpu.memory_space<vmem>>, vector<1x64x8xbf16>
    %102 = vector.shape_cast %101 : vector<1x64x8xbf16> to vector<64x8xbf16>
    %cst_65 = arith.constant dense<0.000000e+00> : vector<32x64xf32>
    %103 = tpu.matmul %100, %102, %cst_65 {dimension_numbers = #tpu.dot_dimension_numbers<[1], [1], [0], [0], [0, 0, 1, 0], [], []>} : vector<32x8xbf16>, vector<64x8xbf16>, vector<32x64xf32> -> vector<32x64xf32>
    %cst_66 = arith.constant dense<0xFF800000> : vector<32xf32>
    %104 = vector.multi_reduction <maximumf>, %103, %cst_66 [1] : vector<32x64xf32> to vector<32xf32>
    %105 = vector.shape_cast %104 : vector<32xf32> to vector<32x1xf32>
    %106 = vector.broadcast %105 : vector<32x1xf32> to vector<32x64xf32>
    %107 = arith.subf %103, %106 : vector<32x64xf32>
    %108 = math.exp %107 : vector<32x64xf32>
    %cst_67 = arith.constant dense<0.000000e+00> : vector<32xf32>
    %109 = vector.multi_reduction <add>, %108, %cst_67 [1] : vector<32x64xf32> to vector<32xf32>
    %110 = vector.shape_cast %109 : vector<32xf32> to vector<32x1xf32>
    %111 = tpu.reciprocal %110 {approx = true} : vector<32x1xf32> -> vector<32x1xf32>
    %112 = arith.truncf %108 : vector<32x64xf32> to vector<32x64xbf16>
    %c3_68 = arith.constant 3 : index
    %c0_69 = arith.constant 0 : index
    %c0_70 = arith.constant 0 : index
    %113 = vector.load %arg21[%c3_68, %c0_69, %c0_70] : memref<4x64x8xbf16, #tpu.memory_space<vmem>>, vector<1x64x8xbf16>
    %114 = vector.shape_cast %113 : vector<1x64x8xbf16> to vector<64x8xbf16>
    %cst_71 = arith.constant dense<0.000000e+00> : vector<32x8xf32>
    %115 = tpu.matmul %112, %114, %cst_71 {dimension_numbers = #tpu.dot_dimension_numbers<[1], [0], [0], [1], [0, 0, 1, 1], [], []>} : vector<32x64xbf16>, vector<64x8xbf16>, vector<32x8xf32> -> vector<32x8xf32>
    %116 = vector.broadcast %111 : vector<32x1xf32> to vector<32x8xf32>
    %117 = arith.mulf %115, %116 : vector<32x8xf32>
    %118 = arith.truncf %117 : vector<32x8xf32> to vector<32x8xbf16>
    %c3_72 = arith.constant 3 : index
    %c0_73 = arith.constant 0 : index
    %c0_74 = arith.constant 0 : index
    %119 = vector.load %arg8[%c3_72, %c0_73, %c0_74] : memref<4x8x32xbf16, #tpu.memory_space<vmem>>, vector<1x8x32xbf16>
    %120 = vector.shape_cast %119 : vector<1x8x32xbf16> to vector<8x32xbf16>
    %cst_75 = arith.constant dense<0.000000e+00> : vector<32x32xf32>
    %121 = tpu.matmul %118, %120, %cst_75 {dimension_numbers = #tpu.dot_dimension_numbers<[1], [0], [0], [1], [0, 0, 1, 1], [], []>} : vector<32x8xbf16>, vector<8x32xbf16>, vector<32x32xf32> -> vector<32x32xf32>
    %122 = arith.addf %94, %121 : vector<32x32xf32>
    %123 = arith.addf %7, %122 : vector<32x32xf32>
    %c0_76 = arith.constant 0 : index
    %c0_77 = arith.constant 0 : index
    %124 = vector.load %arg9[%c0_76, %c0_77] : memref<1x32xf32, #tpu.memory_space<vmem>>, vector<1x32xf32>
    %125 = vector.broadcast %124 : vector<1x32xf32> to vector<32x32xf32>
    %126 = arith.addf %123, %125 : vector<32x32xf32>
    %127 = arith.index_cast %4 : i32 to index
    %c0_78 = arith.constant 0 : index
    %128 = vector.load %arg22[%127, %c0_78] : memref<64x32xf32, #tpu.memory_space<vmem>>, vector<32x32xf32>
    tpu.vector_store %arg22[%127, %c0_78], %126 {strides = array<i32>} : memref<64x32xf32, #tpu.memory_space<vmem>>, vector<32x32xf32>,
    %c1_i32 = arith.constant 1 : i32
    %129 = arith.cmpi eq, %arg1, %c1_i32 : i32
    %130 = arith.extui %129 : i1 to i32
    %c0_i32_79 = arith.constant 0 : i32
    %131 = arith.cmpi ne, %130, %c0_i32_79 : i32
    scf.if %131 {
      %c0_80 = arith.constant 0 : index
      %c0_81 = arith.constant 0 : index
      %132 = vector.load %arg22[%c0_80, %c0_81] : memref<64x32xf32, #tpu.memory_space<vmem>>, vector<64x32xf32>
      %c0_82 = arith.constant 0 : index
      %c0_83 = arith.constant 0 : index
      %133 = vector.load %arg10[%c0_82, %c0_83] : memref<1x32xf32, #tpu.memory_space<vmem>>, vector<1x32xf32>
      %c0_84 = arith.constant 0 : index
      %c0_85 = arith.constant 0 : index
      %134 = vector.load %arg11[%c0_84, %c0_85] : memref<1x32xf32, #tpu.memory_space<vmem>>, vector<1x32xf32>
      %cst_86 = arith.constant dense<0.000000e+00> : vector<64xf32>
      %135 = vector.multi_reduction <add>, %132, %cst_86 [1] : vector<64x32xf32> to vector<64xf32>
      %136 = vector.shape_cast %135 : vector<64xf32> to vector<64x1xf32>
      %cst_87 = arith.constant 3.200000e+01 : f32
      %137 = vector.broadcast %cst_87 : f32 to vector<64x1xf32>
      %138 = arith.divf %136, %137 : vector<64x1xf32>
      %139 = vector.broadcast %138 : vector<64x1xf32> to vector<64x32xf32>
      %140 = arith.subf %132, %139 : vector<64x32xf32>
      %141 = arith.mulf %140, %140 : vector<64x32xf32>
      %cst_88 = arith.constant dense<0.000000e+00> : vector<64xf32>
      %142 = vector.multi_reduction <add>, %141, %cst_88 [1] : vector<64x32xf32> to vector<64xf32>
      %143 = vector.shape_cast %142 : vector<64xf32> to vector<64x1xf32>
      %cst_89 = arith.constant 3.200000e+01 : f32
      %144 = vector.broadcast %cst_89 : f32 to vector<64x1xf32>
      %145 = arith.divf %143, %144 : vector<64x1xf32>
      %146 = vector.broadcast %138 : vector<64x1xf32> to vector<64x32xf32>
      %147 = arith.subf %132, %146 : vector<64x32xf32>
      %cst_90 = arith.constant 9.99999974E-6 : f32
      %148 = vector.broadcast %cst_90 : f32 to vector<64x1xf32>
      %149 = arith.addf %145, %148 : vector<64x1xf32>
      %150 = math.rsqrt %149 : vector<64x1xf32>
      %151 = vector.broadcast %150 : vector<64x1xf32> to vector<64x32xf32>
      %152 = arith.mulf %147, %151 : vector<64x32xf32>
      %153 = vector.broadcast %133 : vector<1x32xf32> to vector<64x32xf32>
      %154 = arith.mulf %152, %153 : vector<64x32xf32>
      %155 = vector.broadcast %134 : vector<1x32xf32> to vector<64x32xf32>
      %156 = arith.addf %154, %155 : vector<64x32xf32>
      %157 = arith.truncf %156 : vector<64x32xf32> to vector<64x32xbf16>
      %c0_91 = arith.constant 0 : index
      %c0_92 = arith.constant 0 : index
      %158 = vector.load %arg12[%c0_91, %c0_92] : memref<32x64xbf16, #tpu.memory_space<vmem>>, vector<32x64xbf16>
      %cst_93 = arith.constant dense<0.000000e+00> : vector<64x64xf32>
      %159 = tpu.matmul %157, %158, %cst_93 {dimension_numbers = #tpu.dot_dimension_numbers<[1], [0], [0], [1], [0, 0, 1, 1], [], []>} : vector<64x32xbf16>, vector<32x64xbf16>, vector<64x64xf32> -> vector<64x64xf32>
      %c0_94 = arith.constant 0 : index
      %c0_95 = arith.constant 0 : index
      %160 = vector.load %arg13[%c0_94, %c0_95] : memref<1x64xf32, #tpu.memory_space<vmem>>, vector<1x64xf32>
      %161 = vector.broadcast %160 : vector<1x64xf32> to vector<64x64xf32>
      %162 = arith.addf %159, %161 : vector<64x64xf32>
      %c0_96 = arith.constant 0 : index
      %c0_97 = arith.constant 0 : index
      %163 = vector.load %arg14[%c0_96, %c0_97] : memref<9x64xf32, #tpu.memory_space<vmem>>, vector<9x64xf32>
      %164 = tpu.iota {dimensions = array<i32: 0>} : vector<64x1xi32>
      %c8_i32 = arith.constant 8 : i32
      %c0_i32_98 = arith.constant 0 : i32
      %165 = arith.cmpi eq, %c8_i32, %c0_i32_98 : i32
      %c1_i32_99 = arith.constant 1 : i32
      %166 = arith.select %165, %c1_i32_99, %c8_i32 : i32
      %167 = vector.broadcast %166 : i32 to vector<64x1xi32>
      %168 = arith.remsi %164, %167 : vector<64x1xi32>
      %c0_i32_100 = arith.constant 0 : i32
      %169 = vector.broadcast %c0_i32_100 : i32 to vector<64x1xi32>
      %170 = arith.cmpi ne, %168, %169 : vector<64x1xi32>
      %c0_i32_101 = arith.constant 0 : i32
      %171 = vector.broadcast %c0_i32_101 : i32 to vector<64x1xi32>
      %172 = arith.cmpi slt, %168, %171 : vector<64x1xi32>
      %c0_i32_102 = arith.constant 0 : i32
      %173 = arith.cmpi slt, %166, %c0_i32_102 : i32
      %174 = vector.broadcast %173 : i1 to vector<64x1xi1>
      %175 = vector.broadcast %174 : vector<64x1xi1> to vector<64x1xi1>
      %176 = arith.xori %172, %175 : vector<64x1xi1>
      %177 = arith.andi %176, %170 : vector<64x1xi1>
      %178 = vector.broadcast %166 : i32 to vector<64x1xi32>
      %179 = arith.addi %168, %178 : vector<64x1xi32>
      %180 = arith.select %177, %179, %168 : vector<64x1xi1>, vector<64x1xi32>
      %c8_i32_103 = arith.constant 8 : i32
      %181 = vector.broadcast %c8_i32_103 : i32 to vector<64x1xi32>
      %182 = arith.cmpi sge, %164, %181 : vector<64x1xi32>
      %c56_i32 = arith.constant 56 : i32
      %183 = vector.broadcast %c56_i32 : i32 to vector<64x1xi32>
      %184 = arith.cmpi slt, %164, %183 : vector<64x1xi32>
      %c1_i32_104 = arith.constant 1 : i32
      %185 = vector.broadcast %c1_i32_104 : i32 to vector<64x1xi32>
      %186 = arith.cmpi sge, %180, %185 : vector<64x1xi32>
      %c6_i32 = arith.constant 6 : i32
      %187 = vector.broadcast %c6_i32 : i32 to vector<64x1xi32>
      %188 = arith.cmpi sle, %180, %187 : vector<64x1xi32>
      %cst_105 = arith.constant 0.000000e+00 : f32
      %189 = vector.broadcast %cst_105 : f32 to vector<64x64xf32>
      %c0_106 = arith.constant 0 : index
      %c0_107 = arith.constant 0 : index
      %190 = vector.load %arg15[%c0_106, %c0_107] : memref<1x64xf32, #tpu.memory_space<vmem>>, vector<1x64xf32>
      %191 = vector.broadcast %190 : vector<1x64xf32> to vector<64x64xf32>
      %192 = arith.addf %189, %191 : vector<64x64xf32>
      %c8_i32_108 = arith.constant 8 : i32
      %193 = tpu.dynamic_rotate %162 by %c8_i32_108 dim 0 : vector<64x64xf32>, i32 -> vector<64x64xf32>
      %cst_109 = arith.constant 0.000000e+00 : f32
      %194 = vector.shape_cast %182 : vector<64x1xi1> to vector<64x1xi1>
      %195 = vector.broadcast %194 : vector<64x1xi1> to vector<64x64xi1>
      %196 = vector.broadcast %cst_109 : f32 to vector<64x64xf32>
      %197 = arith.select %195, %193, %196 : vector<64x64xi1>, vector<64x64xf32>
      %c1_i32_110 = arith.constant 1 : i32
      %198 = tpu.dynamic_rotate %197 by %c1_i32_110 dim 0 : vector<64x64xf32>, i32 -> vector<64x64xf32>
      %cst_111 = arith.constant 0.000000e+00 : f32
      %199 = vector.shape_cast %186 : vector<64x1xi1> to vector<64x1xi1>
      %200 = vector.broadcast %199 : vector<64x1xi1> to vector<64x64xi1>
      %201 = vector.broadcast %cst_111 : f32 to vector<64x64xf32>
      %202 = arith.select %200, %198, %201 : vector<64x64xi1>, vector<64x64xf32>
      %203 = vector.extract_strided_slice %163 {offsets = [0, 0], sizes = [1, 64], strides = [1, 1]} : vector<9x64xf32> to vector<1x64xf32>
      %204 = vector.broadcast %203 : vector<1x64xf32> to vector<64x64xf32>
      %205 = arith.mulf %202, %204 : vector<64x64xf32>
      %206 = arith.addf %192, %205 : vector<64x64xf32>
      %207 = vector.extract_strided_slice %163 {offsets = [1, 0], sizes = [1, 64], strides = [1, 1]} : vector<9x64xf32> to vector<1x64xf32>
      %208 = vector.broadcast %207 : vector<1x64xf32> to vector<64x64xf32>
      %209 = arith.mulf %197, %208 : vector<64x64xf32>
      %210 = arith.addf %206, %209 : vector<64x64xf32>
      %c63_i32 = arith.constant 63 : i32
      %211 = tpu.dynamic_rotate %197 by %c63_i32 dim 0 : vector<64x64xf32>, i32 -> vector<64x64xf32>
      %cst_112 = arith.constant 0.000000e+00 : f32
      %212 = vector.shape_cast %188 : vector<64x1xi1> to vector<64x1xi1>
      %213 = vector.broadcast %212 : vector<64x1xi1> to vector<64x64xi1>
      %214 = vector.broadcast %cst_112 : f32 to vector<64x64xf32>
      %215 = arith.select %213, %211, %214 : vector<64x64xi1>, vector<64x64xf32>
      %216 = vector.extract_strided_slice %163 {offsets = [2, 0], sizes = [1, 64], strides = [1, 1]} : vector<9x64xf32> to vector<1x64xf32>
      %217 = vector.broadcast %216 : vector<1x64xf32> to vector<64x64xf32>
      %218 = arith.mulf %215, %217 : vector<64x64xf32>
      %219 = arith.addf %210, %218 : vector<64x64xf32>
      %c1_i32_113 = arith.constant 1 : i32
      %220 = tpu.dynamic_rotate %162 by %c1_i32_113 dim 0 : vector<64x64xf32>, i32 -> vector<64x64xf32>
      %cst_114 = arith.constant 0.000000e+00 : f32
      %221 = vector.shape_cast %186 : vector<64x1xi1> to vector<64x1xi1>
      %222 = vector.broadcast %221 : vector<64x1xi1> to vector<64x64xi1>
      %223 = vector.broadcast %cst_114 : f32 to vector<64x64xf32>
      %224 = arith.select %222, %220, %223 : vector<64x64xi1>, vector<64x64xf32>
      %225 = vector.extract_strided_slice %163 {offsets = [3, 0], sizes = [1, 64], strides = [1, 1]} : vector<9x64xf32> to vector<1x64xf32>
      %226 = vector.broadcast %225 : vector<1x64xf32> to vector<64x64xf32>
      %227 = arith.mulf %224, %226 : vector<64x64xf32>
      %228 = arith.addf %219, %227 : vector<64x64xf32>
      %229 = vector.extract_strided_slice %163 {offsets = [4, 0], sizes = [1, 64], strides = [1, 1]} : vector<9x64xf32> to vector<1x64xf32>
      %230 = vector.broadcast %229 : vector<1x64xf32> to vector<64x64xf32>
      %231 = arith.mulf %162, %230 : vector<64x64xf32>
      %232 = arith.addf %228, %231 : vector<64x64xf32>
      %c63_i32_115 = arith.constant 63 : i32
      %233 = tpu.dynamic_rotate %162 by %c63_i32_115 dim 0 : vector<64x64xf32>, i32 -> vector<64x64xf32>
      %cst_116 = arith.constant 0.000000e+00 : f32
      %234 = vector.shape_cast %188 : vector<64x1xi1> to vector<64x1xi1>
      %235 = vector.broadcast %234 : vector<64x1xi1> to vector<64x64xi1>
      %236 = vector.broadcast %cst_116 : f32 to vector<64x64xf32>
      %237 = arith.select %235, %233, %236 : vector<64x64xi1>, vector<64x64xf32>
      %238 = vector.extract_strided_slice %163 {offsets = [5, 0], sizes = [1, 64], strides = [1, 1]} : vector<9x64xf32> to vector<1x64xf32>
      %239 = vector.broadcast %238 : vector<1x64xf32> to vector<64x64xf32>
      %240 = arith.mulf %237, %239 : vector<64x64xf32>
      %241 = arith.addf %232, %240 : vector<64x64xf32>
      %c56_i32_117 = arith.constant 56 : i32
      %242 = tpu.dynamic_rotate %162 by %c56_i32_117 dim 0 : vector<64x64xf32>, i32 -> vector<64x64xf32>
      %cst_118 = arith.constant 0.000000e+00 : f32
      %243 = vector.shape_cast %184 : vector<64x1xi1> to vector<64x1xi1>
      %244 = vector.broadcast %243 : vector<64x1xi1> to vector<64x64xi1>
      %245 = vector.broadcast %cst_118 : f32 to vector<64x64xf32>
      %246 = arith.select %244, %242, %245 : vector<64x64xi1>, vector<64x64xf32>
      %c1_i32_119 = arith.constant 1 : i32
      %247 = tpu.dynamic_rotate %246 by %c1_i32_119 dim 0 : vector<64x64xf32>, i32 -> vector<64x64xf32>
      %cst_120 = arith.constant 0.000000e+00 : f32
      %248 = vector.shape_cast %186 : vector<64x1xi1> to vector<64x1xi1>
      %249 = vector.broadcast %248 : vector<64x1xi1> to vector<64x64xi1>
      %250 = vector.broadcast %cst_120 : f32 to vector<64x64xf32>
      %251 = arith.select %249, %247, %250 : vector<64x64xi1>, vector<64x64xf32>
      %252 = vector.extract_strided_slice %163 {offsets = [6, 0], sizes = [1, 64], strides = [1, 1]} : vector<9x64xf32> to vector<1x64xf32>
      %253 = vector.broadcast %252 : vector<1x64xf32> to vector<64x64xf32>
      %254 = arith.mulf %251, %253 : vector<64x64xf32>
      %255 = arith.addf %241, %254 : vector<64x64xf32>
      %256 = vector.extract_strided_slice %163 {offsets = [7, 0], sizes = [1, 64], strides = [1, 1]} : vector<9x64xf32> to vector<1x64xf32>
      %257 = vector.broadcast %256 : vector<1x64xf32> to vector<64x64xf32>
      %258 = arith.mulf %246, %257 : vector<64x64xf32>
      %259 = arith.addf %255, %258 : vector<64x64xf32>
      %c63_i32_121 = arith.constant 63 : i32
      %260 = tpu.dynamic_rotate %246 by %c63_i32_121 dim 0 : vector<64x64xf32>, i32 -> vector<64x64xf32>
      %cst_122 = arith.constant 0.000000e+00 : f32
      %261 = vector.shape_cast %188 : vector<64x1xi1> to vector<64x1xi1>
      %262 = vector.broadcast %261 : vector<64x1xi1> to vector<64x64xi1>
      %263 = vector.broadcast %cst_122 : f32 to vector<64x64xf32>
      %264 = arith.select %262, %260, %263 : vector<64x64xi1>, vector<64x64xf32>
      %265 = vector.extract_strided_slice %163 {offsets = [8, 0], sizes = [1, 64], strides = [1, 1]} : vector<9x64xf32> to vector<1x64xf32>
      %266 = vector.broadcast %265 : vector<1x64xf32> to vector<64x64xf32>
      %267 = arith.mulf %264, %266 : vector<64x64xf32>
      %268 = arith.addf %259, %267 : vector<64x64xf32>
      %269 = arith.mulf %268, %268 : vector<64x64xf32>
      %270 = arith.mulf %268, %269 : vector<64x64xf32>
      %cst_123 = arith.constant 4.471500e-02 : f32
      %271 = vector.broadcast %cst_123 : f32 to vector<64x64xf32>
      %272 = arith.mulf %271, %270 : vector<64x64xf32>
      %273 = arith.addf %268, %272 : vector<64x64xf32>
      %cst_124 = arith.constant 0.797884583 : f32
      %274 = vector.broadcast %cst_124 : f32 to vector<64x64xf32>
      %275 = arith.mulf %274, %273 : vector<64x64xf32>
      %276 = math.tanh %275 : vector<64x64xf32>
      %cst_125 = arith.constant 1.000000e+00 : f32
      %277 = vector.broadcast %cst_125 : f32 to vector<64x64xf32>
      %278 = arith.addf %277, %276 : vector<64x64xf32>
      %cst_126 = arith.constant 5.000000e-01 : f32
      %279 = vector.broadcast %cst_126 : f32 to vector<64x64xf32>
      %280 = arith.mulf %279, %278 : vector<64x64xf32>
      %281 = arith.mulf %268, %280 : vector<64x64xf32>
      %282 = arith.truncf %281 : vector<64x64xf32> to vector<64x64xbf16>
      %c0_127 = arith.constant 0 : index
      %c0_128 = arith.constant 0 : index
      %283 = vector.load %arg16[%c0_127, %c0_128] : memref<64x32xbf16, #tpu.memory_space<vmem>>, vector<64x32xbf16>
      %cst_129 = arith.constant dense<0.000000e+00> : vector<64x32xf32>
      %284 = tpu.matmul %282, %283, %cst_129 {dimension_numbers = #tpu.dot_dimension_numbers<[1], [0], [0], [1], [0, 0, 1, 1], [], []>} : vector<64x64xbf16>, vector<64x32xbf16>, vector<64x32xf32> -> vector<64x32xf32>
      %c0_130 = arith.constant 0 : index
      %c0_131 = arith.constant 0 : index
      %285 = vector.load %arg17[%c0_130, %c0_131] : memref<1x32xf32, #tpu.memory_space<vmem>>, vector<1x32xf32>
      %286 = vector.broadcast %285 : vector<1x32xf32> to vector<64x32xf32>
      %287 = arith.addf %284, %286 : vector<64x32xf32>
      %288 = arith.addf %132, %287 : vector<64x32xf32>
      %c0_132 = arith.constant 0 : index
      %c0_133 = arith.constant 0 : index
      %c0_134 = arith.constant 0 : index
      %289 = vector.load %arg18[%c0_132, %c0_133, %c0_134] : memref<1x64x32xf32, #tpu.memory_space<vmem>>, vector<1x64x32xf32>
      %290 = vector.shape_cast %289 : vector<1x64x32xf32> to vector<64x32xf32>
      %291 = vector.shape_cast %288 : vector<64x32xf32> to vector<1x64x32xf32>
      tpu.vector_store %arg18[%c0_132, %c0_133, %c0_134], %291 {strides = array<i32>} : memref<1x64x32xf32, #tpu.memory_space<vmem>>, vector<1x64x32xf32>,
    } else {
    }
    return
  }
  func.func @transform_0(%arg0: i32, %arg1: i32) -> (i32, i32, i32) {
    %c0_i32 = arith.constant 0 : i32
    %c0_i32_0 = arith.constant 0 : i32
    %c0_i32_1 = arith.constant 0 : i32
    return %arg0, %c0_i32, %c0_i32_0 : i32, i32, i32
  }
  func.func @transform_1(%arg0: i32, %arg1: i32) -> (i32, i32) {
    %c0_i32 = arith.constant 0 : i32
    %c0_i32_0 = arith.constant 0 : i32
    %c0_i32_1 = arith.constant 0 : i32
    return %c0_i32, %c0_i32_0 : i32, i32
  }
  func.func @transform_2(%arg0: i32, %arg1: i32) -> (i32, i32) {
    %c0_i32 = arith.constant 0 : i32
    %c0_i32_0 = arith.constant 0 : i32
    %c0_i32_1 = arith.constant 0 : i32
    return %c0_i32, %c0_i32_0 : i32, i32
  }
  func.func @transform_3(%arg0: i32, %arg1: i32) -> (i32, i32, i32) {
    %c0_i32 = arith.constant 0 : i32
    %c0_i32_0 = arith.constant 0 : i32
    %c0_i32_1 = arith.constant 0 : i32
    %c0_i32_2 = arith.constant 0 : i32
    return %c0_i32, %c0_i32_0, %c0_i32_1 : i32, i32, i32
  }
  func.func @transform_4(%arg0: i32, %arg1: i32) -> (i32, i32, i32) {
    %c0_i32 = arith.constant 0 : i32
    %c0_i32_0 = arith.constant 0 : i32
    %c0_i32_1 = arith.constant 0 : i32
    %c0_i32_2 = arith.constant 0 : i32
    return %c0_i32, %c0_i32_0, %c0_i32_1 : i32, i32, i32
  }
  func.func @transform_5(%arg0: i32, %arg1: i32) -> (i32, i32, i32) {
    %c0_i32 = arith.constant 0 : i32
    %c0_i32_0 = arith.constant 0 : i32
    %c0_i32_1 = arith.constant 0 : i32
    %c0_i32_2 = arith.constant 0 : i32
    return %c0_i32, %c0_i32_0, %c0_i32_1 : i32, i32, i32
  }
  func.func @transform_6(%arg0: i32, %arg1: i32) -> (i32, i32, i32) {
    %c0_i32 = arith.constant 0 : i32
    %c0_i32_0 = arith.constant 0 : i32
    %c0_i32_1 = arith.constant 0 : i32
    %c0_i32_2 = arith.constant 0 : i32
    return %c0_i32, %c0_i32_0, %c0_i32_1 : i32, i32, i32
  }
  func.func @transform_7(%arg0: i32, %arg1: i32) -> (i32, i32) {
    %c0_i32 = arith.constant 0 : i32
    %c0_i32_0 = arith.constant 0 : i32
    %c0_i32_1 = arith.constant 0 : i32
    return %c0_i32, %c0_i32_0 : i32, i32
  }
  func.func @transform_8(%arg0: i32, %arg1: i32) -> (i32, i32) {
    %c0_i32 = arith.constant 0 : i32
    %c0_i32_0 = arith.constant 0 : i32
    %c0_i32_1 = arith.constant 0 : i32
    return %c0_i32, %c0_i32_0 : i32, i32
  }
  func.func @transform_9(%arg0: i32, %arg1: i32) -> (i32, i32) {
    %c0_i32 = arith.constant 0 : i32
    %c0_i32_0 = arith.constant 0 : i32
    %c0_i32_1 = arith.constant 0 : i32
    return %c0_i32, %c0_i32_0 : i32, i32
  }
  func.func @transform_10(%arg0: i32, %arg1: i32) -> (i32, i32) {
    %c0_i32 = arith.constant 0 : i32
    %c0_i32_0 = arith.constant 0 : i32
    %c0_i32_1 = arith.constant 0 : i32
    return %c0_i32, %c0_i32_0 : i32, i32
  }
  func.func @transform_11(%arg0: i32, %arg1: i32) -> (i32, i32) {
    %c0_i32 = arith.constant 0 : i32
    %c0_i32_0 = arith.constant 0 : i32
    %c0_i32_1 = arith.constant 0 : i32
    return %c0_i32, %c0_i32_0 : i32, i32
  }
  func.func @transform_12(%arg0: i32, %arg1: i32) -> (i32, i32) {
    %c0_i32 = arith.constant 0 : i32
    %c0_i32_0 = arith.constant 0 : i32
    %c0_i32_1 = arith.constant 0 : i32
    return %c0_i32, %c0_i32_0 : i32, i32
  }
  func.func @transform_13(%arg0: i32, %arg1: i32) -> (i32, i32) {
    %c0_i32 = arith.constant 0 : i32
    %c0_i32_0 = arith.constant 0 : i32
    %c0_i32_1 = arith.constant 0 : i32
    return %c0_i32, %c0_i32_0 : i32, i32
  }
  func.func @transform_14(%arg0: i32, %arg1: i32) -> (i32, i32) {
    %c0_i32 = arith.constant 0 : i32
    %c0_i32_0 = arith.constant 0 : i32
    %c0_i32_1 = arith.constant 0 : i32
    return %c0_i32, %c0_i32_0 : i32, i32
  }
  func.func @transform_15(%arg0: i32, %arg1: i32) -> (i32, i32) {
    %c0_i32 = arith.constant 0 : i32
    %c0_i32_0 = arith.constant 0 : i32
    %c0_i32_1 = arith.constant 0 : i32
    return %c0_i32, %c0_i32_0 : i32, i32
  }
  func.func @transform_16(%arg0: i32, %arg1: i32) -> (i32, i32, i32) {
    %c0_i32 = arith.constant 0 : i32
    %c0_i32_0 = arith.constant 0 : i32
    %c0_i32_1 = arith.constant 0 : i32
    return %arg0, %c0_i32, %c0_i32_0 : i32, i32, i32
  }
}

</mosaic_0001>

<bundles_post_ra>
// kernel: tpu_custom_call.1
= control target key start
LH: loop header
LB: loop body
LE: loop exit
PB: predicated region body
PF: predicated region fallthrough
CT: control target
= control target key end

     0   :  { %s5445_s21 = smov 0   ;;  %s5447_s22 = smov 0   ;;  %s6739_s0 = inlined_call_operand.vmem [shape: f32[2,64,32], index: 0, kind: input, shape index: {}]   ;;  %s6740_s1 = inlined_call_operand.vmem [shape: f32[1,32], index: 1, kind: input, shape index: {}]   ;;  %s6741_s2 = inlined_call_operand.vmem [shape: f32[1,32], index: 2, kind: input, shape index: {}]   ;;  %s6742_s3 = inlined_call_operand.vmem [shape: bf16[4,32,8], index: 3, kind: input, shape index: {}]   ;;  %s6743_s4 = inlined_call_operand.vmem [shape: bf16[4,32,8], index: 4, kind: input, shape index: {}]   ;;  %s6744_s5 = inlined_call_operand.vmem [shape: bf16[4,32,8], index: 5, kind: input, shape index: {}]   ;;  %s6745_s6 = inlined_call_operand.vmem [shape: bf16[4,8,32], index: 6, kind: input, shape index: {}]   ;;  %s6746_s7 = inlined_call_operand.vmem [shape: f32[1,32], index: 7, kind: input, shape index: {}]   ;;  %s6747_s8 = inlined_call_operand.vmem [shape: f32[1,32], index: 8, kind: input, shape index: {}]   ;;  %s6748_s9 = inlined_call_operand.vmem [shape: f32[1,32], index: 9, kind: input, shape index: {}]   ;;  %s6749_s10 = inlined_call_operand.vmem [shape: bf16[32,64], index: 10, kind: input, shape index: {}]   ;;  %s6750_s11 = inlined_call_operand.vmem [shape: f32[1,64], index: 11, kind: input, shape index: {}]   ;;  %s6751_s12 = inlined_call_operand.vmem [shape: f32[9,64], index: 12, kind: input, shape index: {}]   ;;  %s6752_s13 = inlined_call_operand.vmem [shape: f32[1,64], index: 13, kind: input, shape index: {}]   ;;  %s6753_s14 = inlined_call_operand.vmem [shape: bf16[64,32], index: 14, kind: input, shape index: {}]   ;;  %s6754_s15 = inlined_call_operand.vmem [shape: f32[1,32], index: 15, kind: input, shape index: {}]   ;;  %s6755_s16 = inlined_call_operand.vmem [shape: f32[2,64,32], index: 16, kind: output, shape index: {}]  }
   0x1   :  { %6776 = sst [smem:[#allocation23_spill]] %s6739_s0  ;;  %s5449_s23 = smov 0  }
   0x2   :  { %6777 = sst [smem:[#allocation24_spill]] %s6755_s16  ;;  %s5451_s24 = smov 0  }
   0x3   :  { %s5453_s25 = smov 0  }
   0x4 LB: > { %s35_s26 = sadd.s32 1, %s5349_s23  ;;  %s38_s27 = sadd.s32 1, %s5353_s24  ;;  %s5357_s25 = sphi %s5453_s25, %s26_s25   ;;  %s5353_s24 = sphi %s5451_s24, %s6886_s24   ;;  %s5349_s23 = sphi %s5449_s23, %s6885_s23   ;;  %s5345_s22 = sphi %s5447_s22, %s6884_s22   ;;  %s5341_s21 = sphi %s5445_s21, %s6883_s21  }
   0x5   : > { %p36_p0 = scmp.ge.s32.totalorder %s35_s26, 2  ;;  %p4319_p1 = scmp.ge.s32.totalorder %s5357_s25, 1 }
   0x6   : > { %p474_p2 = scmp.lt.s32.totalorder %s5357_s25, 5 }
   0x7   : > { %s6888_s26 = smov (%p36_p0, %s35_s26), 0  ;;  %s6890_s27 = smov (!%p36_p0, %s38_s27), %s5353_s24 }
   0x8   : > { %p475_p3 = pnand %p4319_p1, %p474_p2  ;;  %p40_p4 = scmp.ge.s32.totalorder %s6890_s27, 2 }
   0x9   : > { %p524_p5 = scmp.lt.s32.totalorder (!%p475_p3), %s5345_s22, 1  ;;  %s6778_s0 = sld [smem:[#allocation23_spill]] (!%p475_p3) }
   0xa   : > { %s6892_s27 = smov (%p40_p4, %s6890_s27), 0  ;;  %478 = sbr.rel (%p475_p3) target bundleno = 4369 (0x1111), region = 84 }
   0xb   : > { %s6779_s16 = sld [smem:[#allocation24_spill]] (!%p475_p3)  ;;  %p4324_p6 = scmp.ne.s32.totalorder (!%p475_p3), %s5341_s21, 0 }
   0xf   : > { %s6894_s22 = smov (!%p524_p5, %s5345_s22), 1  ;;  %538 = sbr.rel (%p4324_p6) target bundleno = 597 (0x255), region = 88 }
  0x10   : > { %s4586_s28 = sshll.u32 %s6894_s22, 6 }
  0x11   : > { %s5480_s17 = scalar_lea.vmem %s6778_s0, %s4586_s28  ;;  %s5485_s20 = scalar_lea.vmem %s6779_s16, %s4586_s28 }
  0x14   : > { %v539_v0 = vld [vmem:[%s5480_s17] sm:$0xff]  ;;  %vm549_vm0 = vcmask 261120   ;;  %v541_v1 = vld [vmem:[%s5480_s17 + $0x10] sm:$0xff]  ;;  %v540_v2 = vld [vmem:[%s5480_s17 + $0x8] sm:$0xff]  ;;  %vm715_vm1 = vcmask 257024   ;;  %vm849_vm2 = vcmask 60416  }
  0x15   : > { %v550_v3 = vsel %vm549_vm0, %v539_v0, 0.0  ;;  %v556_v4 = vsel %vm549_vm0, %v541_v1, 0.0  ;;  %v542_v5 = vld [vmem:[%s5480_s17 + $0x18] sm:$0xff]  ;;  %v543_v6 = vld [vmem:[%s5480_s17 + $0x20] sm:$0xff]  ;;  %v544_v7 = vld [vmem:[%s5480_s17 + $0x28] sm:$0xff]  ;;  %v553_v8 = vsel %vm549_vm0, %v540_v2, 0.0 }
  0x16   : > { %551 = vadd.xlane.f32.xlu0 %v550_v3  ;;  %557 = vadd.xlane.f32.xlu1 %v556_v4  ;;  %v559_v9 = vsel %vm549_vm0, %v542_v5, 0.0  ;;  %v562_v10 = vsel %vm549_vm0, %v543_v6, 0.0  ;;  %v565_v11 = vsel %vm549_vm0, %v544_v7, 0.0  ;;  %v545_v12 = vld [vmem:[%s5480_s17 + $0x30] sm:$0xff]  ;;  %v546_v13 = vld [vmem:[%s5480_s17 + $0x38] sm:$0xff]  ;;  %v5135_v56 = vld [vmem:[%s6743_s4 + $0x8] sm:$0xff]  }
  0x17   : > { %v568_v14 = vsel %vm549_vm0, %v545_v12, 0.0  ;;  %v571_v15 = vsel %vm549_vm0, %v546_v13, 0.0  ;;  %v5136_v57 = vld [vmem:[%s6744_s5 + $0x8] sm:$0xff]   ;;  %4798 = vmatprep.subr.bf16.mxu0 %v5135_v56  ;;  %v5137_v58 = vld [vmem:[%s6743_s4] sm:$0xff]   ;;  %v5559_v60 = vld [vmem:[%s6743_s4 + $0x18] sm:$0xff]  }
  0x18   : > { %4810 = vmatprep.subr.bf16.mxu1 %v5136_v57  ;;  %4799 = vmatpush3.bf16.msra.mxu0 %v5135_v56  ;;  %v5138_v59 = vld [vmem:[%s6744_s5] sm:$0xff]   ;;  %v5564_v61 = vld [vmem:[%s6744_s5 + $0x18] sm:$0xff]  }
  0x19   : > { %4811 = vmatpush3.bf16.msra.mxu1 %v5136_v57  ;;  %4800 = vmatprep.subr.bf16.mxu0 %v5137_v58 }
  0x1a   : > { %554 = vadd.xlane.f32.xlu0 %v553_v8  ;;  %560 = vadd.xlane.f32.xlu1 %v559_v9 }
  0x1b   : > { %4812 = vmatprep.subr.bf16.mxu1 %v5138_v59 }
  0x1c   : > { %4801 = vmatpush3.bf16.msra.mxu0 %v5137_v58  ;;  %v5141_v58 = vld [vmem:[%s6743_s4 + $0x10] sm:$0xff]  }
  0x1d   : > { %4813 = vmatpush3.bf16.msra.mxu1 %v5138_v59  ;;  %4822 = vmatprep.subr.bf16.mxu0 %v5559_v60 }
  0x1e   : > { %563 = vadd.xlane.f32.xlu0 %v562_v10  ;;  %566 = vadd.xlane.f32.xlu1 %v565_v11 }
  0x1f   : > { %4834 = vmatprep.subr.bf16.mxu1 %v5564_v61 }
  0x22   : > { %569 = vadd.xlane.f32.xlu0 %v568_v14  ;;  %572 = vadd.xlane.f32.xlu1 %v571_v15 }
  0x9f   : > { %v552_v16 = vpop.xlane.xlu0 %551  ;;  %v558_v17 = vpop.xlane.xlu1 %557 }
  0xa0   : > { %v575_v18 = vmul.f32 0.03125, %v552_v16  ;;  %v577_v19 = vmul.f32 0.03125, %v558_v17 }
  0xa2   : > { %v5504_v20 = vsub.f32 %v539_v0, %v575_v18  ;;  %v5506_v21 = vsub.f32 %v541_v1, %v577_v19 }
  0xa3   : > { %v555_v22 = vpop.xlane.xlu0 %554  ;;  %v561_v23 = vpop.xlane.xlu1 %560 }
  0xa4   : > { %v576_v24 = vmul.f32 0.03125, %v555_v22  ;;  %v578_v25 = vmul.f32 0.03125, %v561_v23  ;;  %v591_v26 = vmul.f32 %v5504_v20, %v5504_v20  ;;  %v593_v27 = vmul.f32 %v5506_v21, %v5506_v21 }
  0xa6   : > { %v5512_v28 = vsub.f32 %v540_v2, %v576_v24  ;;  %v5514_v29 = vsub.f32 %v542_v5, %v578_v25  ;;  %v599_v30 = vsel %vm549_vm0, %v591_v26, 0.0  ;;  %v605_v33 = vsel %vm549_vm0, %v593_v27, 0.0  ;;  %v4325_v24 = vld [vmem:[%s6740_s1] ss:$0 sm:$0xff] }
  0xa7   : > { %600 = vadd.xlane.f32.xlu0 %v599_v30  ;;  %v564_v31 = vpop.xlane.xlu0 %563  ;;  %v567_v32 = vpop.xlane.xlu1 %566  ;;  %v4326_v27 = vld [vmem:[%s6741_s2] ss:$0 sm:$0xff] }
  0xa8   : > { %v579_v34 = vmul.f32 0.03125, %v564_v31  ;;  %v580_v35 = vmul.f32 0.03125, %v567_v32  ;;  %v592_v36 = vmul.f32 %v5512_v28, %v5512_v28  ;;  %v594_v37 = vmul.f32 %v5514_v29, %v5514_v29 }
  0xaa   : > { %v5522_v38 = vsub.f32 %v543_v6, %v579_v34  ;;  %v5524_v39 = vsub.f32 %v544_v7, %v580_v35  ;;  %v602_v40 = vsel %vm549_vm0, %v592_v36, 0.0  ;;  %v608_v43 = vsel %vm549_vm0, %v594_v37, 0.0 }
  0xab   : > { %606 = vadd.xlane.f32.xlu0 %v605_v33  ;;  %603 = vadd.xlane.f32.xlu1 %v602_v40  ;;  %v570_v41 = vpop.xlane.xlu0 %569  ;;  %v573_v42 = vpop.xlane.xlu1 %572 }
  0xac   : > { %v581_v44 = vmul.f32 0.03125, %v570_v41  ;;  %v582_v45 = vmul.f32 0.03125, %v573_v42  ;;  %v595_v46 = vmul.f32 %v5522_v38, %v5522_v38  ;;  %v596_v47 = vmul.f32 %v5524_v39, %v5524_v39 }
  0xae   : > { %v5532_v48 = vsub.f32 %v545_v12, %v581_v44  ;;  %v5534_v49 = vsub.f32 %v546_v13, %v582_v45  ;;  %v611_v50 = vsel %vm549_vm0, %v595_v46, 0.0  ;;  %v614_v51 = vsel %vm549_vm0, %v596_v47, 0.0 }
  0xaf   : > { %609 = vadd.xlane.f32.xlu1 %v608_v43  ;;  %612 = vadd.xlane.f32.xlu0 %v611_v50 }
  0xb0   : > { %v597_v52 = vmul.f32 %v5532_v48, %v5532_v48  ;;  %v598_v53 = vmul.f32 %v5534_v49, %v5534_v49 }
  0xb2   : > { %v617_v54 = vsel %vm549_vm0, %v597_v52, 0.0  ;;  %v620_v55 = vsel %vm549_vm0, %v598_v53, 0.0 }
  0xb3   : > { %615 = vadd.xlane.f32.xlu1 %v614_v51  ;;  %618 = vadd.xlane.f32.xlu0 %v617_v54 }
  0xb7   : > { %621 = vadd.xlane.f32.xlu1 %v620_v55 }
 0x130   : > { %v601_v62 = vpop.xlane.xlu0 %600 }
 0x131   : > { %v623_v63 = vmul.f32 0.03125, %v601_v62 }
 0x133   : > { %v631_v0 = vadd.f32 1e-05, %v623_v63 }
 0x134   : > { %v604_v1 = vpop.xlane.xlu1 %603  ;;  %v607_v2 = vpop.xlane.xlu0 %606 }
 0x135   : > { %5151 = vrsqrt.f32 %v631_v0  ;;  %v624_v3 = vmul.f32 0.03125, %v604_v1  ;;  %v625_v4 = vmul.f32 0.03125, %v607_v2 }
 0x137   : > { %v632_v5 = vadd.f32 1e-05, %v624_v3  ;;  %v633_v6 = vadd.f32 1e-05, %v625_v4 }
 0x138   : > { %v610_v7 = vpop.xlane.xlu1 %609  ;;  %v613_v8 = vpop.xlane.xlu0 %612 }
 0x139   : > { %5153 = vrsqrt.f32 %v632_v5  ;;  %v626_v9 = vmul.f32 0.03125, %v610_v7  ;;  %v627_v10 = vmul.f32 0.03125, %v613_v8  ;;  %v5144_v5 = vld [vmem:[%s6744_s5 + $0x28] sm:$0xff]   ;;  %v5145_v8 = vld [vmem:[%s6743_s4 + $0x20] sm:$0xff]  }
 0x13a   : > { %5155 = vrsqrt.f32 %v633_v6 }
 0x13b   : > { %v634_v11 = vadd.f32 1e-05, %v626_v9  ;;  %v635_v12 = vadd.f32 1e-05, %v627_v10  ;;  %v5146_v9 = vld [vmem:[%s6744_s5 + $0x20] sm:$0xff]   ;;  %v5147_v10 = vld [vmem:[%s6743_s4 + $0x38] sm:$0xff]  }
 0x13c   : > { %v616_v13 = vpop.xlane.xlu1 %615  ;;  %v619_v14 = vpop.xlane.xlu0 %618 }
 0x13d   : > { %5157 = vrsqrt.f32 %v634_v11  ;;  %v628_v15 = vmul.f32 0.03125, %v616_v13  ;;  %v629_v16 = vmul.f32 0.03125, %v619_v14  ;;  %v5148_v11 = vld [vmem:[%s6744_s5 + $0x38] sm:$0xff]   ;;  %v5150_v13 = vld [vmem:[%s6744_s5 + $0x30] sm:$0xff]  }
 0x13e   : > { %5159 = vrsqrt.f32 %v635_v12  ;;  %v5149_v12 = vld [vmem:[%s6743_s4 + $0x30] sm:$0xff]  }
 0x13f   : > { %v636_v17 = vadd.f32 1e-05, %v628_v15  ;;  %v637_v18 = vadd.f32 1e-05, %v629_v16 }
 0x140   : > { %v622_v19 = vpop.xlane.xlu1 %621 }
 0x141   : > { %5161 = vrsqrt.f32 %v636_v17  ;;  %v630_v22 = vmul.f32 0.03125, %v622_v19 }
 0x142   : > { %v5152_v23 = vpop.eup %5151  ;;  %5163 = vrsqrt.f32 %v637_v18 }
 0x143   : > { %v647_v25 = vmul.f32 %v5152_v23, %v5504_v20  ;;  %v638_v26 = vadd.f32 1e-05, %v630_v22 }
 0x145   : > { %v661_v30 = vmul.f32 %v4325_v24, %v647_v25  ;;  %5165 = vrsqrt.f32 %v638_v26 }
 0x146   : > { %v5154_v31 = vpop.eup %5153 }
 0x147   : > { %v5156_v32 = vpop.eup %5155  ;;  %v675_v33 = vadd.f32 %v4326_v27, %v661_v30  ;;  %v648_v34 = vmul.f32 %v5154_v31, %v5512_v28 }
 0x148   : > { %v649_v35 = vmul.f32 %v5156_v32, %v5506_v21 }
 0x149   : > { %v4588_v36 = vpack.c.bf16 %v675_v33, %v675_v33  ;;  %v662_v37 = vmul.f32 %v4325_v24, %v648_v34 }
 0x14a   : > { %v5158_v40 = vpop.eup %5157  ;;  %v663_v41 = vmul.f32 %v4325_v24, %v649_v35 }
 0x14b   : > { %v5160_v20 = vpop.eup %5159  ;;  %716 = vst.msk [vmem:[#allocation2] sm:$0xf] %vm715_vm1, %v4588_v36  ;;  %v676_v42 = vadd.f32 %v4326_v27, %v662_v37  ;;  %v650_v43 = vmul.f32 %v5158_v40, %v5514_v29 }
 0x14c   : > { %v677_v44 = vadd.f32 %v4326_v27, %v663_v41  ;;  %v651_v45 = vmul.f32 %v5160_v20, %v5522_v38 }
 0x14d   : > { %v5580_v46 = vpack.c.bf16 %v676_v42, %v675_v33  ;;  %v4589_v47 = vpack.c.bf16 %v676_v42, %v676_v42  ;;  %v664_v28 = vmul.f32 %v4325_v24, %v650_v43 }
 0x14e   : > { %v5162_v50 = vpop.eup %5161  ;;  %v4590_v51 = vpack.c.bf16 %v677_v44, %v677_v44  ;;  %v665_v21 = vmul.f32 %v4325_v24, %v651_v45 }
 0x14f   : > { %v5164_v52 = vpop.eup %5163  ;;  %717 = vst.msk [vmem:[#allocation2 + $0x4] sm:$0xf] %vm715_vm1, %v4589_v47  ;;  %v678_v53 = vadd.f32 %v4326_v27, %v664_v28  ;;  %v652_v54 = vmul.f32 %v5162_v50, %v5524_v39  ;;  %4802 = vmatprep.mubr.msk.bf16.mxu0 %vm549_vm0, %v5580_v46  ;;  %4814 = vmatprep.mubr.msk.bf16.mxu1 %vm549_vm0, %v5580_v46  ;;  %v5142_v39 = vld [vmem:[%s6744_s5 + $0x10] sm:$0xff]  }
 0x150   : > { %718 = vst.msk [vmem:[#allocation2 + $0x8] sm:$0xf] %vm715_vm1, %v4590_v51  ;;  %v679_v29 = vadd.f32 %v4326_v27, %v665_v21  ;;  %v653_v38 = vmul.f32 %v5164_v52, %v5532_v48 }
 0x151   : > { %v5590_v55 = vpack.c.bf16 %v678_v53, %v677_v44  ;;  %v4591_v56 = vpack.c.bf16 %v678_v53, %v678_v53  ;;  %v666_v57 = vmul.f32 %v4325_v24, %v652_v54 }
 0x152   : > { %v5166_v59 = vpop.eup %5165  ;;  %v4592_v62 = vpack.c.bf16 %v679_v29, %v679_v29  ;;  %v667_v63 = vmul.f32 %v4325_v24, %v653_v38 }
 0x153   : > { %719 = vst.msk [vmem:[#allocation2 + $0xc] sm:$0xf] %vm715_vm1, %v4591_v56  ;;  %v680_v0 = vadd.f32 %v4326_v27, %v666_v57  ;;  %v654_v48 = vmul.f32 %v5166_v59, %v5534_v49  ;;  %4803 = vmatmul.mubr.msk.bf16.vlgmr.msra.gmra.mxu0 %vm549_vm0, %v5590_v55  ;;  %4815 = vmatmul.mubr.msk.bf16.vlgmr.msra.gmra.mxu1 %vm549_vm0, %v5590_v55  ;;  %v5143_v49 = vld [vmem:[%s6743_s4 + $0x28] sm:$0xff]  }
 0x154   : > { %720 = vst.msk [vmem:[#allocation2 + $0x10] sm:$0xf] %vm715_vm1, %v4592_v62  ;;  %v681_v1 = vadd.f32 %v4326_v27, %v667_v63  ;;  %4823 = vmatpush3.bf16.msra.mxu0 %v5559_v60  ;;  %4835 = vmatpush3.bf16.msra.mxu1 %v5564_v61 }
 0x155   : > { %v5607_v2 = vpack.c.bf16 %v680_v0, %v679_v29  ;;  %v4593_v3 = vpack.c.bf16 %v680_v0, %v680_v0  ;;  %v668_v4 = vmul.f32 %v4325_v24, %v654_v48  ;;  %4824 = vmatprep.subr.bf16.mxu0 %v5141_v58  ;;  %4836 = vmatprep.subr.bf16.mxu1 %v5142_v39 }
 0x156   : > { %v4594_v6 = vpack.c.bf16 %v681_v1, %v681_v1 }
 0x157   : > { %721 = vst.msk [vmem:[#allocation2 + $0x14] sm:$0xf] %vm715_vm1, %v4593_v3  ;;  %v682_v60 = vadd.f32 %v4326_v27, %v668_v4  ;;  %4806 = vmatprep.mubr.msk.bf16.mxu0 %vm549_vm0, %v5607_v2  ;;  %4818 = vmatprep.mubr.msk.bf16.mxu1 %vm549_vm0, %v5607_v2 }
 0x158   : > { %722 = vst.msk [vmem:[#allocation2 + $0x18] sm:$0xf] %vm715_vm1, %v4594_v6  ;;  %4825 = vmatpush3.bf16.msra.mxu0 %v5141_v58  ;;  %4837 = vmatpush3.bf16.msra.mxu1 %v5142_v39 }
 0x159   : > { %v686_v61 = vpack.c.bf16 %v682_v60, %v681_v1  ;;  %v4595_v7 = vpack.c.bf16 %v682_v60, %v682_v60  ;;  %4846 = vmatprep.subr.bf16.mxu0 %v5143_v49  ;;  %4858 = vmatprep.subr.bf16.mxu1 %v5144_v5 }
 0x15b   : > { %723 = vst.msk [vmem:[#allocation2 + $0x1c] sm:$0xf] %vm715_vm1, %v4595_v7  ;;  %4807 = vmatmul.mubr.msk.bf16.gmra.mxu0 %vm549_vm0, %v686_v61  ;;  %4819 = vmatmul.mubr.msk.bf16.gmra.mxu1 %vm549_vm0, %v686_v61 }
 0x15c   : > { %4826 = vmatprep.mubr.msk.bf16.mxu0 %vm549_vm0, %v5580_v46  ;;  %4838 = vmatprep.mubr.msk.bf16.mxu1 %vm549_vm0, %v5580_v46 }
 0x163   : > { %4827 = vmatmul.mubr.msk.bf16.vlgmr.msra.gmra.mxu0 %vm549_vm0, %v5590_v55  ;;  %4839 = vmatmul.mubr.msk.bf16.vlgmr.msra.gmra.mxu1 %vm549_vm0, %v5590_v55 }
 0x164   : > { %4847 = vmatpush3.bf16.msra.mxu0 %v5143_v49  ;;  %4859 = vmatpush3.bf16.msra.mxu1 %v5144_v5 }
 0x165   : > { %4830 = vmatprep.mubr.msk.bf16.mxu0 %vm549_vm0, %v5607_v2  ;;  %4842 = vmatprep.mubr.msk.bf16.mxu1 %vm549_vm0, %v5607_v2 }
 0x166   : > { %4848 = vmatprep.subr.bf16.mxu0 %v5145_v8  ;;  %4860 = vmatprep.subr.bf16.mxu1 %v5146_v9 }
 0x168   : > { %4849 = vmatpush3.bf16.msra.mxu0 %v5145_v8  ;;  %4861 = vmatpush3.bf16.msra.mxu1 %v5146_v9 }
 0x169   : > { %4870 = vmatprep.subr.bf16.mxu0 %v5147_v10  ;;  %4882 = vmatprep.subr.bf16.mxu1 %v5148_v11 }
 0x16b   : > { %4831 = vmatmul.mubr.msk.bf16.gmra.mxu0 %vm549_vm0, %v686_v61  ;;  %4843 = vmatmul.mubr.msk.bf16.gmra.mxu1 %vm549_vm0, %v686_v61 }
 0x16c   : > { %4850 = vmatprep.mubr.msk.bf16.mxu0 %vm549_vm0, %v5580_v46  ;;  %4862 = vmatprep.mubr.msk.bf16.mxu1 %vm549_vm0, %v5580_v46 }
 0x173   : > { %4851 = vmatmul.mubr.msk.bf16.vlgmr.msra.gmra.mxu0 %vm549_vm0, %v5590_v55  ;;  %4863 = vmatmul.mubr.msk.bf16.vlgmr.msra.gmra.mxu1 %vm549_vm0, %v5590_v55 }
 0x174   : > { %4871 = vmatpush3.bf16.msra.mxu0 %v5147_v10  ;;  %4883 = vmatpush3.bf16.msra.mxu1 %v5148_v11 }
 0x175   : > { %4854 = vmatprep.mubr.msk.bf16.mxu0 %vm549_vm0, %v5607_v2  ;;  %4866 = vmatprep.mubr.msk.bf16.mxu1 %vm549_vm0, %v5607_v2 }
 0x176   : > { %4872 = vmatprep.subr.bf16.mxu0 %v5149_v12  ;;  %4884 = vmatprep.subr.bf16.mxu1 %v5150_v13 }
 0x178   : > { %4873 = vmatpush3.bf16.msra.mxu0 %v5149_v12  ;;  %4885 = vmatpush3.bf16.msra.mxu1 %v5150_v13 }
 0x17b   : > { %4855 = vmatmul.mubr.msk.bf16.gmra.mxu0 %vm549_vm0, %v686_v61  ;;  %4867 = vmatmul.mubr.msk.bf16.gmra.mxu1 %vm549_vm0, %v686_v61 }
 0x17c   : > { %4874 = vmatprep.mubr.msk.bf16.mxu0 %vm549_vm0, %v5580_v46  ;;  %4886 = vmatprep.mubr.msk.bf16.mxu1 %vm549_vm0, %v5580_v46 }
 0x183   : > { %4875 = vmatmul.mubr.msk.bf16.vlgmr.msra.gmra.mxu0 %vm549_vm0, %v5590_v55  ;;  %4887 = vmatmul.mubr.msk.bf16.vlgmr.msra.gmra.mxu1 %vm549_vm0, %v5590_v55 }
 0x184   : > { %4878 = vmatprep.mubr.msk.bf16.mxu0 %vm549_vm0, %v5607_v2  ;;  %4890 = vmatprep.mubr.msk.bf16.mxu1 %vm549_vm0, %v5607_v2 }
 0x18b   : > { %4879 = vmatmul.mubr.msk.bf16.gmra.mxu0 %vm549_vm0, %v686_v61  ;;  %4891 = vmatmul.mubr.msk.bf16.gmra.mxu1 %vm549_vm0, %v686_v61 }
 0x213   : > { %v4804_v14 = vpop.f32.mrf.mxu0  ;;  %v4816_v15 = vpop.f32.mrf.mxu1 }
 0x214   : > { %v4598_v16 = vpack.c.bf16 %v4804_v14, %v4804_v14  ;;  %v4606_v17 = vpack.c.bf16 %v4816_v15, %v4816_v15 }
 0x215   : > { %v786_v18 = vpop.f32.mrf.mxu0  ;;  %v908_v19 = vpop.f32.mrf.mxu1 }
 0x216   : > { %852 = vst.msk [vmem:[#allocation3 + $0x8] sm:$0xf] %vm849_vm2, %v4598_v16  ;;  %973 = vst.msk [vmem:[#allocation4 + $0x8] sm:$0xf] %vm849_vm2, %v4606_v17  ;;  %v4596_v22 = vpack.c.bf16 %v786_v18, %v786_v18  ;;  %v4604_v23 = vpack.c.bf16 %v908_v19, %v908_v19 }
 0x217   : > { %v4805_v24 = vpop.f32.mrf.mxu0  ;;  %v4817_v25 = vpop.f32.mrf.mxu1 }
 0x218   : > { %850 = vst.msk [vmem:[#allocation3] sm:$0xf] %vm849_vm2, %v4596_v22  ;;  %971 = vst.msk [vmem:[#allocation4] sm:$0xf] %vm849_vm2, %v4604_v23  ;;  %v4599_v26 = vpack.c.bf16 %v4805_v24, %v4805_v24  ;;  %v4607_v27 = vpack.c.bf16 %v4817_v25, %v4817_v25 }
 0x219   : > { %v789_v30 = vpop.f32.mrf.mxu0  ;;  %v911_v31 = vpop.f32.mrf.mxu1 }
 0x21a   : > { %853 = vst.msk [vmem:[#allocation3 + $0xc] sm:$0xf] %vm849_vm2, %v4599_v26  ;;  %974 = vst.msk [vmem:[#allocation4 + $0xc] sm:$0xf] %vm849_vm2, %v4607_v27  ;;  %v4597_v32 = vpack.c.bf16 %v789_v30, %v789_v30  ;;  %v4605_v33 = vpack.c.bf16 %v911_v31, %v911_v31 }
 0x21b   : > { %v4808_v34 = vpop.f32.mrf.mxu0  ;;  %v4820_v35 = vpop.f32.mrf.mxu1 }
 0x21c   : > { %851 = vst.msk [vmem:[#allocation3 + $0x4] sm:$0xf] %vm849_vm2, %v4597_v32  ;;  %972 = vst.msk [vmem:[#allocation4 + $0x4] sm:$0xf] %vm849_vm2, %v4605_v33  ;;  %v4602_v36 = vpack.c.bf16 %v4808_v34, %v4808_v34  ;;  %v4610_v37 = vpack.c.bf16 %v4820_v35, %v4820_v35 }
 0x21d   : > { %v802_v40 = vpop.f32.mrf.mxu0  ;;  %v924_v41 = vpop.f32.mrf.mxu1 }
 0x21e   : > { %856 = vst.msk [vmem:[#allocation3 + $0x18] sm:$0xf] %vm849_vm2, %v4602_v36  ;;  %977 = vst.msk [vmem:[#allocation4 + $0x18] sm:$0xf] %vm849_vm2, %v4610_v37  ;;  %v4600_v20 = vpack.c.bf16 %v802_v40, %v802_v40  ;;  %v4608_v42 = vpack.c.bf16 %v924_v41, %v924_v41 }
 0x21f   : > { %v4809_v43 = vpop.f32.mrf.mxu0  ;;  %v4821_v44 = vpop.f32.mrf.mxu1 }
 0x220   : > { %854 = vst.msk [vmem:[#allocation3 + $0x10] sm:$0xf] %vm849_vm2, %v4600_v20  ;;  %975 = vst.msk [vmem:[#allocation4 + $0x10] sm:$0xf] %vm849_vm2, %v4608_v42  ;;  %v4603_v45 = vpack.c.bf16 %v4809_v43, %v4809_v43  ;;  %v4611_v46 = vpack.c.bf16 %v4821_v44, %v4821_v44 }
 0x221   : > { %v805_v47 = vpop.f32.mrf.mxu0  ;;  %v927_v28 = vpop.f32.mrf.mxu1 }
 0x222   : > { %857 = vst.msk [vmem:[#allocation3 + $0x1c] sm:$0xf] %vm849_vm2, %v4603_v45  ;;  %978 = vst.msk [vmem:[#allocation4 + $0x1c] sm:$0xf] %vm849_vm2, %v4611_v46  ;;  %v4601_v50 = vpack.c.bf16 %v805_v47, %v805_v47  ;;  %v4609_v51 = vpack.c.bf16 %v927_v28, %v927_v28 }
 0x223   : > { %v4828_v21 = vpop.f32.mrf.mxu0  ;;  %v4840_v52 = vpop.f32.mrf.mxu1 }
 0x224   : > { %855 = vst.msk [vmem:[#allocation3 + $0x14] sm:$0xf] %vm849_vm2, %v4601_v50  ;;  %976 = vst.msk [vmem:[#allocation4 + $0x14] sm:$0xf] %vm849_vm2, %v4609_v51  ;;  %v4614_v53 = vpack.c.bf16 %v4828_v21, %v4828_v21  ;;  %v4622_v54 = vpack.c.bf16 %v4840_v52, %v4840_v52 }
 0x225   : > { %v1030_v29 = vpop.f32.mrf.mxu0  ;;  %v1153_v38 = vpop.f32.mrf.mxu1 }
 0x226   : > { %1096 = vst.msk [vmem:[#allocation3 + $0x28] sm:$0xf] %vm849_vm2, %v4614_v53  ;;  %1219 = vst.msk [vmem:[#allocation4 + $0x28] sm:$0xf] %vm849_vm2, %v4622_v54  ;;  %v4612_v55 = vpack.c.bf16 %v1030_v29, %v1030_v29  ;;  %v4620_v56 = vpack.c.bf16 %v1153_v38, %v1153_v38 }
 0x227   : > { %v4829_v57 = vpop.f32.mrf.mxu0  ;;  %v4841_v58 = vpop.f32.mrf.mxu1 }
 0x228   : > { %1094 = vst.msk [vmem:[#allocation3 + $0x20] sm:$0xf] %vm849_vm2, %v4612_v55  ;;  %1217 = vst.msk [vmem:[#allocation4 + $0x20] sm:$0xf] %vm849_vm2, %v4620_v56  ;;  %v4615_v39 = vpack.c.bf16 %v4829_v57, %v4829_v57  ;;  %v4623_v59 = vpack.c.bf16 %v4841_v58, %v4841_v58 }
 0x229   : > { %v1033_v62 = vpop.f32.mrf.mxu0  ;;  %v1156_v63 = vpop.f32.mrf.mxu1 }
 0x22a   : > { %1097 = vst.msk [vmem:[#allocation3 + $0x2c] sm:$0xf] %vm849_vm2, %v4615_v39  ;;  %1220 = vst.msk [vmem:[#allocation4 + $0x2c] sm:$0xf] %vm849_vm2, %v4623_v59  ;;  %v4613_v0 = vpack.c.bf16 %v1033_v62, %v1033_v62  ;;  %v4621_v48 = vpack.c.bf16 %v1156_v63, %v1156_v63 }
 0x22b   : > { %v4832_v1 = vpop.f32.mrf.mxu0  ;;  %v4844_v2 = vpop.f32.mrf.mxu1 }
 0x22c   : > { %1095 = vst.msk [vmem:[#allocation3 + $0x24] sm:$0xf] %vm849_vm2, %v4613_v0  ;;  %1218 = vst.msk [vmem:[#allocation4 + $0x24] sm:$0xf] %vm849_vm2, %v4621_v48  ;;  %v4618_v3 = vpack.c.bf16 %v4832_v1, %v4832_v1  ;;  %v4626_v4 = vpack.c.bf16 %v4844_v2, %v4844_v2 }
 0x22d   : > { %v1046_v49 = vpop.f32.mrf.mxu0  ;;  %v1169_v5 = vpop.f32.mrf.mxu1 }
 0x22e   : > { %1100 = vst.msk [vmem:[#allocation3 + $0x38] sm:$0xf] %vm849_vm2, %v4618_v3  ;;  %1223 = vst.msk [vmem:[#allocation4 + $0x38] sm:$0xf] %vm849_vm2, %v4626_v4  ;;  %v4616_v6 = vpack.c.bf16 %v1046_v49, %v1046_v49  ;;  %v4624_v60 = vpack.c.bf16 %v1169_v5, %v1169_v5 }
 0x22f   : > { %v4833_v61 = vpop.f32.mrf.mxu0  ;;  %v4845_v7 = vpop.f32.mrf.mxu1 }
 0x230   : > { %1098 = vst.msk [vmem:[#allocation3 + $0x30] sm:$0xf] %vm849_vm2, %v4616_v6  ;;  %1221 = vst.msk [vmem:[#allocation4 + $0x30] sm:$0xf] %vm849_vm2, %v4624_v60  ;;  %v4619_v8 = vpack.c.bf16 %v4833_v61, %v4833_v61  ;;  %v4627_v9 = vpack.c.bf16 %v4845_v7, %v4845_v7 }
 0x231   : > { %v1049_v10 = vpop.f32.mrf.mxu0  ;;  %v1172_v11 = vpop.f32.mrf.mxu1 }
 0x232   : > { %1101 = vst.msk [vmem:[#allocation3 + $0x3c] sm:$0xf] %vm849_vm2, %v4619_v8  ;;  %1224 = vst.msk [vmem:[#allocation4 + $0x3c] sm:$0xf] %vm849_vm2, %v4627_v9  ;;  %v4617_v12 = vpack.c.bf16 %v1049_v10, %v1049_v10  ;;  %v4625_v13 = vpack.c.bf16 %v1172_v11, %v1172_v11 }
 0x233   : > { %v4852_v14 = vpop.f32.mrf.mxu0  ;;  %v4864_v15 = vpop.f32.mrf.mxu1 }
 0x234   : > { %1099 = vst.msk [vmem:[#allocation3 + $0x34] sm:$0xf] %vm849_vm2, %v4617_v12  ;;  %1222 = vst.msk [vmem:[#allocation4 + $0x34] sm:$0xf] %vm849_vm2, %v4625_v13  ;;  %v4630_v16 = vpack.c.bf16 %v4852_v14, %v4852_v14  ;;  %v4638_v17 = vpack.c.bf16 %v4864_v15, %v4864_v15 }
 0x235   : > { %v1276_v18 = vpop.f32.mrf.mxu0  ;;  %v1399_v19 = vpop.f32.mrf.mxu1 }
 0x236   : > { %1342 = vst.msk [vmem:[#allocation3 + $0x48] sm:$0xf] %vm849_vm2, %v4630_v16  ;;  %1465 = vst.msk [vmem:[#allocation4 + $0x48] sm:$0xf] %vm849_vm2, %v4638_v17  ;;  %v4628_v22 = vpack.c.bf16 %v1276_v18, %v1276_v18  ;;  %v4636_v23 = vpack.c.bf16 %v1399_v19, %v1399_v19 }
 0x237   : > { %v4853_v24 = vpop.f32.mrf.mxu0  ;;  %v4865_v25 = vpop.f32.mrf.mxu1 }
 0x238   : > { %1340 = vst.msk [vmem:[#allocation3 + $0x40] sm:$0xf] %vm849_vm2, %v4628_v22  ;;  %1463 = vst.msk [vmem:[#allocation4 + $0x40] sm:$0xf] %vm849_vm2, %v4636_v23  ;;  %v4631_v26 = vpack.c.bf16 %v4853_v24, %v4853_v24  ;;  %v4639_v27 = vpack.c.bf16 %v4865_v25, %v4865_v25 }
 0x239   : > { %v1279_v30 = vpop.f32.mrf.mxu0  ;;  %v1402_v31 = vpop.f32.mrf.mxu1 }
 0x23a   : > { %1343 = vst.msk [vmem:[#allocation3 + $0x4c] sm:$0xf] %vm849_vm2, %v4631_v26  ;;  %1466 = vst.msk [vmem:[#allocation4 + $0x4c] sm:$0xf] %vm849_vm2, %v4639_v27  ;;  %v4629_v32 = vpack.c.bf16 %v1279_v30, %v1279_v30  ;;  %v4637_v33 = vpack.c.bf16 %v1402_v31, %v1402_v31 }
 0x23b   : > { %v4856_v34 = vpop.f32.mrf.mxu0  ;;  %v4868_v35 = vpop.f32.mrf.mxu1 }
 0x23c   : > { %1341 = vst.msk [vmem:[#allocation3 + $0x44] sm:$0xf] %vm849_vm2, %v4629_v32  ;;  %1464 = vst.msk [vmem:[#allocation4 + $0x44] sm:$0xf] %vm849_vm2, %v4637_v33  ;;  %v4634_v36 = vpack.c.bf16 %v4856_v34, %v4856_v34  ;;  %v4642_v37 = vpack.c.bf16 %v4868_v35, %v4868_v35 }
 0x23d   : > { %v1292_v40 = vpop.f32.mrf.mxu0  ;;  %v1415_v41 = vpop.f32.mrf.mxu1 }
 0x23e   : > { %1346 = vst.msk [vmem:[#allocation3 + $0x58] sm:$0xf] %vm849_vm2, %v4634_v36  ;;  %1469 = vst.msk [vmem:[#allocation4 + $0x58] sm:$0xf] %vm849_vm2, %v4642_v37  ;;  %v4632_v20 = vpack.c.bf16 %v1292_v40, %v1292_v40  ;;  %v4640_v42 = vpack.c.bf16 %v1415_v41, %v1415_v41 }
 0x23f   : > { %v4857_v43 = vpop.f32.mrf.mxu0  ;;  %v4869_v44 = vpop.f32.mrf.mxu1 }
 0x240   : > { %1344 = vst.msk [vmem:[#allocation3 + $0x50] sm:$0xf] %vm849_vm2, %v4632_v20  ;;  %1467 = vst.msk [vmem:[#allocation4 + $0x50] sm:$0xf] %vm849_vm2, %v4640_v42  ;;  %v4635_v45 = vpack.c.bf16 %v4857_v43, %v4857_v43  ;;  %v4643_v46 = vpack.c.bf16 %v4869_v44, %v4869_v44 }
 0x241   : > { %v1295_v47 = vpop.f32.mrf.mxu0  ;;  %v1418_v28 = vpop.f32.mrf.mxu1 }
 0x242   : > { %1347 = vst.msk [vmem:[#allocation3 + $0x5c] sm:$0xf] %vm849_vm2, %v4635_v45  ;;  %1470 = vst.msk [vmem:[#allocation4 + $0x5c] sm:$0xf] %vm849_vm2, %v4643_v46  ;;  %v4633_v50 = vpack.c.bf16 %v1295_v47, %v1295_v47  ;;  %v4641_v51 = vpack.c.bf16 %v1418_v28, %v1418_v28 }
 0x243   : > { %v4876_v21 = vpop.f32.mrf.mxu0  ;;  %v4888_v52 = vpop.f32.mrf.mxu1 }
 0x244   : > { %1345 = vst.msk [vmem:[#allocation3 + $0x54] sm:$0xf] %vm849_vm2, %v4633_v50  ;;  %1468 = vst.msk [vmem:[#allocation4 + $0x54] sm:$0xf] %vm849_vm2, %v4641_v51  ;;  %v4646_v53 = vpack.c.bf16 %v4876_v21, %v4876_v21  ;;  %v4654_v54 = vpack.c.bf16 %v4888_v52, %v4888_v52 }
 0x245   : > { %v1522_v29 = vpop.f32.mrf.mxu0  ;;  %v1645_v38 = vpop.f32.mrf.mxu1 }
 0x246   : > { %1588 = vst.msk [vmem:[#allocation3 + $0x68] sm:$0xf] %vm849_vm2, %v4646_v53  ;;  %1711 = vst.msk [vmem:[#allocation4 + $0x68] sm:$0xf] %vm849_vm2, %v4654_v54  ;;  %v4644_v55 = vpack.c.bf16 %v1522_v29, %v1522_v29  ;;  %v4652_v56 = vpack.c.bf16 %v1645_v38, %v1645_v38 }
 0x247   : > { %v4877_v57 = vpop.f32.mrf.mxu0  ;;  %v4889_v58 = vpop.f32.mrf.mxu1 }
 0x248   : > { %1586 = vst.msk [vmem:[#allocation3 + $0x60] sm:$0xf] %vm849_vm2, %v4644_v55  ;;  %1709 = vst.msk [vmem:[#allocation4 + $0x60] sm:$0xf] %vm849_vm2, %v4652_v56  ;;  %v4647_v39 = vpack.c.bf16 %v4877_v57, %v4877_v57  ;;  %v4655_v59 = vpack.c.bf16 %v4889_v58, %v4889_v58 }
 0x249   : > { %v1525_v62 = vpop.f32.mrf.mxu0  ;;  %v1648_v63 = vpop.f32.mrf.mxu1 }
 0x24a   : > { %1589 = vst.msk [vmem:[#allocation3 + $0x6c] sm:$0xf] %vm849_vm2, %v4647_v39  ;;  %1712 = vst.msk [vmem:[#allocation4 + $0x6c] sm:$0xf] %vm849_vm2, %v4655_v59  ;;  %v4645_v0 = vpack.c.bf16 %v1525_v62, %v1525_v62  ;;  %v4653_v48 = vpack.c.bf16 %v1648_v63, %v1648_v63 }
 0x24b   : > { %v4880_v1 = vpop.f32.mrf.mxu0  ;;  %v4892_v2 = vpop.f32.mrf.mxu1 }
 0x24c   : > { %1587 = vst.msk [vmem:[#allocation3 + $0x64] sm:$0xf] %vm849_vm2, %v4645_v0  ;;  %1710 = vst.msk [vmem:[#allocation4 + $0x64] sm:$0xf] %vm849_vm2, %v4653_v48  ;;  %v4650_v3 = vpack.c.bf16 %v4880_v1, %v4880_v1  ;;  %v4658_v4 = vpack.c.bf16 %v4892_v2, %v4892_v2 }
 0x24d   : > { %v1538_v49 = vpop.f32.mrf.mxu0  ;;  %v1661_v5 = vpop.f32.mrf.mxu1 }
 0x24e   : > { %1592 = vst.msk [vmem:[#allocation3 + $0x78] sm:$0xf] %vm849_vm2, %v4650_v3  ;;  %1715 = vst.msk [vmem:[#allocation4 + $0x78] sm:$0xf] %vm849_vm2, %v4658_v4  ;;  %v4648_v6 = vpack.c.bf16 %v1538_v49, %v1538_v49  ;;  %v4656_v60 = vpack.c.bf16 %v1661_v5, %v1661_v5 }
 0x24f   : > { %v4881_v61 = vpop.f32.mrf.mxu0  ;;  %v4893_v7 = vpop.f32.mrf.mxu1 }
 0x250   : > { %1590 = vst.msk [vmem:[#allocation3 + $0x70] sm:$0xf] %vm849_vm2, %v4648_v6  ;;  %1713 = vst.msk [vmem:[#allocation4 + $0x70] sm:$0xf] %vm849_vm2, %v4656_v60  ;;  %v4651_v8 = vpack.c.bf16 %v4881_v61, %v4881_v61  ;;  %v4659_v9 = vpack.c.bf16 %v4893_v7, %v4893_v7 }
 0x251   : > { %v1541_v10 = vpop.f32.mrf.mxu0  ;;  %v1664_v11 = vpop.f32.mrf.mxu1 }
 0x252   : > { %1593 = vst.msk [vmem:[#allocation3 + $0x7c] sm:$0xf] %vm849_vm2, %v4651_v8  ;;  %1716 = vst.msk [vmem:[#allocation4 + $0x7c] sm:$0xf] %vm849_vm2, %v4659_v9  ;;  %v4649_v12 = vpack.c.bf16 %v1541_v10, %v1541_v10  ;;  %v4657_v13 = vpack.c.bf16 %v1664_v11, %v1664_v11 }
 0x254   : > { %1591 = vst.msk [vmem:[#allocation3 + $0x74] sm:$0xf] %vm849_vm2, %v4649_v12  ;;  %1714 = vst.msk [vmem:[#allocation4 + $0x74] sm:$0xf] %vm849_vm2, %v4657_v13 }
 0x255 PF: > { %v5167_v14 = vld [vmem:[%s6742_s3 + $0x8] sm:$0xff]   ;;  %s5752_s18 = sshll.u32 %s5341_s21, 5  ;;  %v5168_v15 = vld [vmem:[%s6742_s3] sm:$0xff]   ;;  %vm6764_vm3 = vcmask 261120   ;;  %v5171_v16 = vld [vmem:[#allocation3 + $0x18] sm:$0xff]   ;;  %vm1847_vm4 = vcmask 64512  }
 0x256   : > { %s1723_s28 = sshra.s32 %s5752_s18, 3  ;;  %4894 = vmatprep.subr.bf16.mxu0 %v5167_v14  ;;  %v5172_v17 = vld [vmem:[#allocation3 + $0x10] sm:$0xff]   ;;  %5074 = vmatprep.subr.msk.bf16.mxu1 %vm1847_vm4, %v5171_v16  ;;  %v1864_v22 = vsel %vm1847_vm4, %v5171_v16, 0  ;;  %v5173_v23 = vld [vmem:[#allocation3 + $0x8] sm:$0xff]   ;;  %v5174_v26 = vld [vmem:[#allocation3] sm:$0xff]   ;;  %vm6765_vm5 = vcmask 523264  }
 0x257   : > { %s4472_s29 = sshll.u32 %s1723_s28, 2  ;;  %4895 = vmatpush3.bf16.msra.mxu0 %v5167_v14  ;;  %4903 = vmatpush3.bf16.xpose.msra.mxu1 %v1864_v22  ;;  %v1861_v24 = vsel %vm1847_vm4, %v5172_v17, 0  ;;  %v1858_v25 = vsel %vm1847_vm4, %v5173_v23, 0  ;;  %v1855_v27 = vsel %vm1847_vm4, %v5174_v26, 0  ;;  %v5175_v50 = vld [vmem:[#allocation4 + $0x18] sm:$0xff]   ;;  %v5176_v51 = vld [vmem:[#allocation4 + $0x10] sm:$0xff]  }
 0x258   : > { %4896 = vmatprep.subr.bf16.mxu0 %v5168_v15  ;;  %s1726_s30 = scalar_lea.vmem [#allocation2], %s4472_s29  ;;  %5075 = vmatprep.subr.msk.bf16.mxu1 %vm1847_vm4, %v5172_v17  ;;  %v5177_v21 = vld [vmem:[#allocation4 + $0x8] sm:$0xff]   ;;  %v5178_v52 = vld [vmem:[#allocation4] sm:$0xff]   ;;  %v5179_v53 = vld [vmem:[%s6742_s3 + $0x18] sm:$0xff]   ;;  %vm2364_vm6 = vcmask 1043456   ;;  %p4563_p7 = scmp.ne.s32.totalorder %s5341_s21, 1 }
 0x259   : > { %v5758_v18 = vld [vmem:[%s1726_s30] sm:$0xff]   ;;  %v5760_v19 = vld [vmem:[%s1726_s30 + $0x8] sm:$0xff]   ;;  %v5180_v5 = vld [vmem:[%s6742_s3 + $0x10] sm:$0xff]   ;;  %s1718_s30 = scalar_lea.vmem %s5480_s17, %s5752_s18  ;;  %s3226_s17 = scalar_lea.vmem [#allocation5], %s5752_s18 }
 0x25a   : > { %4898 = vmatprep.mubr.msk.bf16.mxu0 %vm6764_vm3, %v5758_v18  ;;  %v5181_v6 = vld [vmem:[#allocation3 + $0x38] sm:$0xff]   ;;  %v5182_v61 = vld [vmem:[#allocation3 + $0x30] sm:$0xff]   ;;  %v5183_v8 = vld [vmem:[#allocation3 + $0x28] sm:$0xff]  }
 0x25b   : > { %4897 = vmatpush3.bf16.msra.mxu0 %v5168_v15  ;;  %v2169_v60 = vsel %vm1847_vm4, %v5181_v6, 0  ;;  %v2166_v7 = vsel %vm1847_vm4, %v5182_v61, 0  ;;  %v2163_v9 = vsel %vm1847_vm4, %v5183_v8, 0  ;;  %v5184_v10 = vld [vmem:[#allocation3 + $0x20] sm:$0xff]  }
 0x25c   : > { %4914 = vmatprep.subr.bf16.mxu0 %v5175_v50  ;;  %v2160_v11 = vsel %vm1847_vm4, %v5184_v10, 0 }
 0x25e   : > { %4899 = vmatmul.mubr.msk.bf16.vlgmr.msra.gmra.mxu0 %vm6764_vm3, %v5760_v19 }
 0x25f   : > { %4905 = vmatpush3.bf16.xpose.msra.mxu1 %v1861_v24  ;;  %4915 = vmatpush3.bf16.msra.mxu0 %v5175_v50 }
 0x260   : > { %5076 = vmatprep.subr.msk.bf16.mxu1 %vm1847_vm4, %v5173_v23  ;;  %4916 = vmatprep.subr.bf16.mxu0 %v5176_v51 }
 0x263   : > { %4917 = vmatpush3.bf16.msra.mxu0 %v5176_v51 }
 0x264   : > { %4918 = vmatprep.subr.bf16.mxu0 %v5177_v21 }
 0x267   : > { %4907 = vmatpush3.bf16.xpose.msra.mxu1 %v1858_v25  ;;  %4919 = vmatpush3.bf16.msra.mxu0 %v5177_v21 }
 0x268   : > { %5077 = vmatprep.subr.msk.bf16.mxu1 %vm1847_vm4, %v5174_v26  ;;  %4920 = vmatprep.subr.bf16.mxu0 %v5178_v52 }
 0x26b   : > { %4921 = vmatpush3.bf16.msra.mxu0 %v5178_v52 }
 0x26c   : > { %4926 = vmatprep.subr.bf16.mxu0 %v5179_v53 }
 0x26f   : > { %4909 = vmatpush3.bf16.xpose.msra.mxu1 %v1855_v27 }
 0x31e   : > { %v4900_v30 = vpop.f32.mrf.mxu0 }
 0x31f   : > { %v1815_v37 = vmul.f32 0.35355338, %v4900_v30 }
 0x320   : > { %v1798_v31 = vpop.f32.mrf.mxu0 }
 0x321   : > { %v1813_v35 = vmul.f32 0.35355338, %v1798_v31 }
 0x322   : > { %v4901_v32 = vpop.f32.mrf.mxu0 }
 0x323   : > { %v1816_v33 = vmul.f32 0.35355338, %v4901_v32 }
 0x324   : > { %v1801_v34 = vpop.f32.mrf.mxu0 }
 0x325   : > { %v1814_v36 = vmul.f32 0.35355338, %v1801_v34  ;;  %v1818_v41 = vpack.c.bf16 %v1816_v33, %v1815_v37 }
 0x327   : > { %v1817_v40 = vpack.c.bf16 %v1814_v36, %v1813_v35 }
 0x329   : > { %4910 = vmatprep.mubr.msk.bf16.mxu1 %vm1847_vm4, %v1817_v40 }
 0x32a   : > { %4911 = vmatmul.mubr.msk.bf16.vlgmr.msra.gmra.mxu1 %vm1847_vm4, %v1818_v41 }
 0x3ea   : > { %v4912_v20 = vpop.f32.mrf.mxu1 }
 0x3eb   : > { %v1922_v42 = vsel %vm6765_vm5, %v4912_v20, -inf }
 0x3ec   : > { %1923 = vmax.xlane.f32.xlu1 %v1922_v42  ;;  %v1900_v43 = vpop.f32.mrf.mxu1  ;;  %v5186_v42 = vld [vmem:[#allocation4 + $0x30] sm:$0xff]  }
 0x3ed   : > { %v1916_v44 = vsel %vm6765_vm5, %v1900_v43, -inf }
 0x3ee   : > { %1917 = vmax.xlane.f32.xlu0 %v1916_v44  ;;  %v4913_v45 = vpop.f32.mrf.mxu1  ;;  %v5188_v44 = vld [vmem:[#allocation4 + $0x20] sm:$0xff]  }
 0x3ef   : > { %v1925_v46 = vsel %vm6765_vm5, %v4913_v45, -inf }
 0x3f0   : > { %1926 = vmax.xlane.f32.xlu1 %v1925_v46  ;;  %v1903_v47 = vpop.f32.mrf.mxu1  ;;  %v5190_v46 = vld [vmem:[%s6742_s3 + $0x20] sm:$0xff]  }
 0x3f1   : > { %v1919_v28 = vsel %vm6765_vm5, %v1903_v47, -inf }
 0x3f2   : > { %1920 = vmax.xlane.f32.xlu0 %v1919_v28 }
 0x475   : > { %v1924_v54 = vpop.xlane.xlu1 %1923 }
 0x476   : > { %v1930_v55 = vsub.f32 %v4912_v20, %v1924_v54  ;;  %v5185_v20 = vld [vmem:[#allocation4 + $0x38] sm:$0xff]  }
 0x477   : > { %v1918_v29 = vpop.xlane.xlu0 %1917  ;;  %4946 = vmatprep.subr.bf16.mxu1 %v5185_v20 }
 0x478   : > { %v1928_v38 = vsub.f32 %v1900_v43, %v1918_v29  ;;  %v1936_v63 = vmul.f32 1.442695, %v1930_v55  ;;  %4947 = vmatpush3.bf16.msra.mxu1 %v5185_v20  ;;  %v5187_v43 = vld [vmem:[#allocation4 + $0x28] sm:$0xff]  }
 0x479   : > { %v1927_v56 = vpop.xlane.xlu1 %1926  ;;  %4948 = vmatprep.subr.bf16.mxu1 %v5186_v42 }
 0x47a   : > { %v1932_v57 = vmul.f32 1.442695, %v1928_v38  ;;  %v1931_v58 = vsub.f32 %v4913_v45, %v1927_v56  ;;  %v5189_v45 = vld [vmem:[%s6742_s3 + $0x28] sm:$0xff]  }
 0x47b   : > { %v1921_v39 = vpop.xlane.xlu0 %1920 }
 0x47c   : > { %v1938_v59 = vmul.f32 1.442695, %v1931_v58  ;;  %v1929_v62 = vsub.f32 %v1903_v47, %v1921_v39  ;;  %5209 = vpow2.f32 %v1932_v57  ;;  %4949 = vmatpush3.bf16.msra.mxu1 %v5186_v42 }
 0x47d   : > { %4950 = vmatprep.subr.bf16.mxu1 %v5187_v43 }
 0x47e   : > { %v1934_v0 = vmul.f32 1.442695, %v1929_v62  ;;  %5211 = vpow2.f32 %v1938_v59 }
 0x480   : > { %5213 = vpow2.f32 %v1934_v0  ;;  %4951 = vmatpush3.bf16.msra.mxu1 %v5187_v43 }
 0x481   : > { %5215 = vpow2.f32 %v1936_v63  ;;  %4952 = vmatprep.subr.bf16.mxu1 %v5188_v44 }
 0x484   : > { %4953 = vmatpush3.bf16.msra.mxu1 %v5188_v44 }
 0x489   : > { %v5783_v48 = vpop.eup %5209 }
 0x48b   : > { %v5785_v1 = vpop.eup %5211 }
 0x48d   : > { %v5787_v2 = vpop.eup %5213 }
 0x48e   : > { %v5789_v3 = vpop.eup %5215  ;;  %v1956_v4 = vpack.c.bf16 %v5787_v2, %v5783_v48 }
 0x48f   : > { %v1957_v49 = vpack.c.bf16 %v5785_v1, %v5789_v3 }
 0x490   : > { %4922 = vmatprep.mubr.msk.bf16.mxu0 %vm6765_vm5, %v1956_v4 }
 0x491   : > { %4923 = vmatmul.mubr.msk.bf16.vlgmr.msra.gmra.mxu0 %vm6765_vm5, %v1957_v49  ;;  %v1940_v49 = vsel %vm6765_vm5, %v5783_v48, 0.0  ;;  %v4511_v48 = vld [vmem:[%s6745_s6 + $0x4] sm:$0xf] }
 0x492   : > { %4927 = vmatpush3.bf16.msra.mxu0 %v5179_v53  ;;  %4930 = vmatprep.mubr.msk.bf16.mxu0 %vm6764_vm3, %v5758_v18 }
 0x493   : > { %4928 = vmatprep.subr.bf16.mxu0 %v5180_v5  ;;  %5082 = vmatprep.subr.msk.bf16.mxu1 %vm2364_vm6, %v4511_v48 }
 0x496   : > { %4929 = vmatpush3.bf16.msra.mxu0 %v5180_v5 }
 0x497   : > { %5078 = vmatprep.subr.msk.bf16.mxu0 %vm1847_vm4, %v5181_v6 }
 0x499   : > { %4931 = vmatmul.mubr.msk.bf16.vlgmr.msra.gmra.mxu0 %vm6764_vm3, %v5760_v19 }
 0x49a   : > { %4935 = vmatpush3.bf16.xpose.msra.mxu0 %v2169_v60  ;;  %v1946_v60 = vsel %vm6765_vm5, %v5789_v3, 0.0  ;;  %v2051_v3 = vld [vmem:[%s6745_s6] sm:$0xf] }
 0x49b   : > { %5079 = vmatprep.subr.msk.bf16.mxu0 %vm1847_vm4, %v5182_v61  ;;  %v1943_v61 = vsel %vm6765_vm5, %v5787_v2, 0.0 }
 0x4a2   : > { %4937 = vmatpush3.bf16.xpose.msra.mxu0 %v2166_v7  ;;  %v1949_v7 = vsel %vm6765_vm5, %v5785_v1, 0.0 }
 0x4a3   : > { %5080 = vmatprep.subr.msk.bf16.mxu0 %vm1847_vm4, %v5183_v8  ;;  %v2366_v8 = vsel %vm2364_vm6, %v4511_v48, 0 }
 0x4aa   : > { %4939 = vmatpush3.bf16.xpose.msra.mxu0 %v2163_v9 }
 0x4ab   : > { %5081 = vmatprep.subr.msk.bf16.mxu0 %vm1847_vm4, %v5184_v10 }
 0x4b2   : > { %4941 = vmatpush3.bf16.xpose.msra.mxu0 %v2160_v11 }
 0x4b3   : > { %4970 = vmatprep.subr.bf16.mxu0 %v5189_v45 }
 0x551   : > { %v5812_v12 = vpop.f32.mrf.mxu0 }
 0x553   : > { %v5814_v13 = vpop.f32.mrf.mxu0 }
 0x555   : > { %v5816_v14 = vpop.f32.mrf.mxu0 }
 0x557   : > { %v5818_v15 = vpop.f32.mrf.mxu0 }
 0x559   : > { %v4932_v16 = vpop.f32.mrf.mxu0 }
 0x55a   : > { %v2120_v27 = vmul.f32 0.35355338, %v4932_v16 }
 0x55b   : > { %v2103_v17 = vpop.f32.mrf.mxu0 }
 0x55c   : > { %v2118_v25 = vmul.f32 0.35355338, %v2103_v17 }
 0x55d   : > { %v4933_v22 = vpop.f32.mrf.mxu0 }
 0x55e   : > { %v2121_v23 = vmul.f32 0.35355338, %v4933_v22 }
 0x55f   : > { %v2106_v24 = vpop.f32.mrf.mxu0 }
 0x560   : > { %v2119_v26 = vmul.f32 0.35355338, %v2106_v24  ;;  %v2123_v31 = vpack.c.bf16 %v2121_v23, %v2120_v27 }
 0x562   : > { %v2122_v30 = vpack.c.bf16 %v2119_v26, %v2118_v25 }
 0x564   : > { %4942 = vmatprep.mubr.msk.bf16.mxu0 %vm1847_vm4, %v2122_v30 }
 0x565   : > { %4943 = vmatmul.mubr.msk.bf16.vlgmr.msra.gmra.mxu0 %vm1847_vm4, %v2123_v31 }
 0x566   : > { %4974 = vmatprep.mubr.msk.bf16.mxu0 %vm6764_vm3, %v5758_v18  ;;  %4971 = vmatpush3.bf16.msra.mxu0 %v5189_v45 }
 0x567   : > { %4972 = vmatprep.subr.bf16.mxu0 %v5190_v46 }
 0x56a   : > { %4973 = vmatpush3.bf16.msra.mxu0 %v5190_v46 }
 0x56d   : > { %4975 = vmatmul.mubr.msk.bf16.vlgmr.msra.gmra.mxu0 %vm6764_vm3, %v5760_v19 }
 0x625   : > { %v4944_v32 = vpop.f32.mrf.mxu0 }
 0x626   : > { %v2226_v37 = vsel %vm6765_vm5, %v4944_v32, -inf }
 0x627   : > { %v2205_v33 = vpop.f32.mrf.mxu0 }
 0x628   : > { %v2220_v34 = vsel %vm6765_vm5, %v2205_v33, -inf }
 0x629   : > { %2221 = vmax.xlane.f32.xlu0 %v2220_v34  ;;  %v4945_v35 = vpop.f32.mrf.mxu0 }
 0x62a   : > { %v2229_v41 = vsel %vm6765_vm5, %v4945_v35, -inf }
 0x62b   : > { %v2208_v36 = vpop.f32.mrf.mxu0 }
 0x62c   : > { %v2223_v40 = vsel %vm6765_vm5, %v2208_v36, -inf }
 0x62d   : > { %2227 = vmax.xlane.f32.xlu0 %v2226_v37  ;;  %2224 = vmax.xlane.f32.xlu1 %v2223_v40  ;;  %v4976_v23 = vpop.f32.mrf.mxu0 }
 0x62f   : > { %v2526_v27 = vpop.f32.mrf.mxu0 }
 0x631   : > { %2230 = vmax.xlane.f32.xlu1 %v2229_v41  ;;  %v4977_v37 = vpop.f32.mrf.mxu0 }
 0x6b2   : > { %v2222_v47 = vpop.xlane.xlu0 %2221 }
 0x6b3   : > { %v2232_v28 = vsub.f32 %v2205_v33, %v2222_v47  ;;  %v2424_v47 = vsel %vm2364_vm6, %v2051_v3, 0 }
 0x6b5   : > { %v2236_v50 = vmul.f32 1.442695, %v2232_v28  ;;  %v5191_v28 = vld [vmem:[#allocation3 + $0x58] sm:$0xff]  }
 0x6b6   : > { %v2228_v51 = vpop.xlane.xlu0 %2227  ;;  %v2225_v21 = vpop.xlane.xlu1 %2224 }
 0x6b7   : > { %5217 = vpow2.f32 %v2236_v50  ;;  %v2234_v52 = vsub.f32 %v4944_v32, %v2228_v51  ;;  %v2233_v53 = vsub.f32 %v2208_v36, %v2225_v21  ;;  %v2529_v50 = vpop.f32.mrf.mxu0 }
 0x6b9   : > { %v2240_v54 = vmul.f32 1.442695, %v2234_v52  ;;  %v2238_v29 = vmul.f32 1.442695, %v2233_v53  ;;  %v2542_v53 = vmul.f32 0.35355338, %v2529_v50 }
 0x6ba   : > { %v2231_v38 = vpop.xlane.xlu1 %2230 }
 0x6bb   : > { %5219 = vpow2.f32 %v2240_v54  ;;  %v2235_v55 = vsub.f32 %v4945_v35, %v2231_v38 }
 0x6bc   : > { %5221 = vpow2.f32 %v2238_v29 }
 0x6bd   : > { %v2242_v56 = vmul.f32 1.442695, %v2235_v55  ;;  %v2592_v55 = vsel %vm1847_vm4, %v5191_v28, 0 }
 0x6bf   : > { %5223 = vpow2.f32 %v2242_v56  ;;  %v5192_v56 = vld [vmem:[#allocation3 + $0x50] sm:$0xff]  }
 0x6c4   : > { %v5218_v57 = vpop.eup %5217 }
 0x6c5   : > { %v2244_v58 = vsel %vm6765_vm5, %v5218_v57, 0.0 }
 0x6c6   : > { %2245 = vadd.xlane.f32.xlu0 %v2244_v58  ;;  %v5193_v58 = vld [vmem:[#allocation3 + $0x48] sm:$0xff]  }
 0x6c8   : > { %v5220_v39 = vpop.eup %5219 }
 0x6c9   : > { %v5222_v59 = vpop.eup %5221  ;;  %v2250_v62 = vsel %vm6765_vm5, %v5220_v39, 0.0 }
 0x6ca   : > { %2251 = vadd.xlane.f32.xlu0 %v2250_v62  ;;  %v2247_v63 = vsel %vm6765_vm5, %v5222_v59, 0.0  ;;  %v2260_v0 = vpack.c.bf16 %v5222_v59, %v5218_v57  ;;  %v2589_v57 = vsel %vm1847_vm4, %v5192_v56, 0  ;;  %v2543_v59 = vmul.f32 0.35355338, %v4976_v23 }
 0x6cb   : > { %2248 = vadd.xlane.f32.xlu1 %v2247_v63  ;;  %v2544_v62 = vmul.f32 0.35355338, %v4977_v37 }
 0x6cc   : > { %v5224_v4 = vpop.eup %5223  ;;  %4954 = vmatprep.mubr.msk.bf16.mxu1 %vm6765_vm5, %v2260_v0 }
 0x6cd   : > { %v2253_v5 = vsel %vm6765_vm5, %v5224_v4, 0.0  ;;  %v2261_v6 = vpack.c.bf16 %v5224_v4, %v5220_v39  ;;  %v2546_v63 = vpack.c.bf16 %v2544_v62, %v2543_v59 }
 0x6ce   : > { %1941 = vadd.xlane.f32.xlu0 %v1940_v49 }
 0x6cf   : > { %2254 = vadd.xlane.f32.xlu1 %v2253_v5  ;;  %4955 = vmatmul.mubr.msk.bf16.vlgmr.msra.gmra.mxu1 %vm6765_vm5, %v2261_v6 }
 0x6d0   : > { %4959 = vmatpush3.bf16.msra.mxu1 %v2366_v8 }
 0x6d1   : > { %5083 = vmatprep.subr.msk.bf16.mxu1 %vm2364_vm6, %v2051_v3 }
 0x6d2   : > { %1947 = vadd.xlane.f32.xlu0 %v1946_v60 }
 0x6d3   : > { %1944 = vadd.xlane.f32.xlu1 %v1943_v61 }
 0x6d7   : > { %1950 = vadd.xlane.f32.xlu1 %v1949_v7 }
 0x74f   : > { %v2246_v9 = vpop.xlane.xlu0 %2245 }
 0x750   : > { %5225 = vrcp.f32 %v2246_v9 }
 0x753   : > { %v2252_v10 = vpop.xlane.xlu0 %2251 }
 0x754   : > { %v2249_v2 = vpop.xlane.xlu1 %2248 }
 0x755   : > { %5227 = vrcp.f32 %v2249_v2 }
 0x757   : > { %v1942_v16 = vpop.xlane.xlu0 %1941 }
 0x758   : > { %v2255_v1 = vpop.xlane.xlu1 %2254 }
 0x75b   : > { %v1948_v22 = vpop.xlane.xlu0 %1947 }
 0x75c   : > { %v1945_v11 = vpop.xlane.xlu1 %1944 }
 0x75d   : > { %5229 = vrcp.f32 %v1945_v11  ;;  %v5226_v25 = vpop.eup %5225 }
 0x75e   : > { %5231 = vrcp.f32 %v2255_v1 }
 0x75f   : > { %5233 = vrcp.f32 %v1942_v16 }
 0x760   : > { %5235 = vrcp.f32 %v2252_v10  ;;  %v1951_v17 = vpop.xlane.xlu1 %1950 }
 0x761   : > { %5237 = vrcp.f32 %v1951_v17 }
 0x762   : > { %5239 = vrcp.f32 %v1948_v22  ;;  %v5228_v30 = vpop.eup %5227 }
 0x76a   : > { %v5230_v31 = vpop.eup %5229 }
 0x76b   : > { %v5232_v33 = vpop.eup %5231  ;;  %v2046_v42 = vmul.f32 %v5230_v31, %v5818_v15  ;;  %v2541_v15 = vmul.f32 0.35355338, %v2526_v27  ;;  %v5198_v27 = vld [vmem:[#allocation4 + $0x40] sm:$0xff]  }
 0x76c   : > { %v5234_v34 = vpop.eup %5233 }
 0x76d   : > { %v5236_v40 = vpop.eup %5235  ;;  %v2045_v45 = vmul.f32 %v5234_v34, %v5814_v13  ;;  %v2545_v29 = vpack.c.bf16 %v2542_v53, %v2541_v15  ;;  %v4536_v15 = vld [vmem:[%s6745_s6 + $0x8] sm:$0xf] }
 0x76e   : > { %v5238_v51 = vpop.eup %5237  ;;  %v2788_v53 = vsel %vm2364_vm6, %v4536_v15, 0 }
 0x76f   : > { %v2049_v21 = vpack.c.bf16 %v2046_v42, %v2045_v45  ;;  %v5240_v52 = vpop.eup %5239  ;;  %v2048_v13 = vmul.f32 %v5238_v51, %v5816_v14  ;;  %v5194_v14 = vld [vmem:[#allocation3 + $0x40] sm:$0xff]  }
 0x770   : > { %v2047_v54 = vmul.f32 %v5240_v52, %v5812_v12  ;;  %v2586_v12 = vsel %vm1847_vm4, %v5193_v58, 0  ;;  %v2583_v39 = vsel %vm1847_vm4, %v5194_v14, 0 }
 0x772   : > { %v2050_v38 = vpack.c.bf16 %v2048_v13, %v2047_v54  ;;  %v5199_v13 = vld [vmem:[%s6742_s3 + $0x38] sm:$0xff]  }
 0x773   : > { %v5201_v54 = vld [vmem:[#allocation3 + $0x78] sm:$0xff]  }
 0x78f   : > { %v4956_v24 = vpop.f32.mrf.mxu1 }
 0x790   : > { %v2352_v43 = vmul.f32 %v5236_v40, %v4956_v24  ;;  %v5195_v24 = vld [vmem:[#allocation4 + $0x58] sm:$0xff]  }
 0x791   : > { %v2335_v26 = vpop.f32.mrf.mxu1  ;;  %4990 = vmatprep.subr.bf16.mxu0 %v5195_v24 }
 0x792   : > { %v2350_v41 = vmul.f32 %v5226_v25, %v2335_v26  ;;  %v5196_v25 = vld [vmem:[#allocation4 + $0x50] sm:$0xff]   ;;  %4991 = vmatpush3.bf16.msra.mxu0 %v5195_v24  ;;  %v5197_v26 = vld [vmem:[#allocation4 + $0x48] sm:$0xff]  }
 0x793   : > { %v4957_v32 = vpop.f32.mrf.mxu1  ;;  %4992 = vmatprep.subr.bf16.mxu0 %v5196_v25 }
 0x794   : > { %v2353_v35 = vmul.f32 %v5232_v33, %v4957_v32 }
 0x795   : > { %v2338_v36 = vpop.f32.mrf.mxu1 }
 0x796   : > { %v2351_v20 = vmul.f32 %v5228_v30, %v2338_v36  ;;  %v2355_v46 = vpack.c.bf16 %v2353_v35, %v2352_v43  ;;  %4993 = vmatpush3.bf16.msra.mxu0 %v5196_v25 }
 0x797   : > { %4994 = vmatprep.subr.bf16.mxu0 %v5197_v26 }
 0x798   : > { %v2354_v44 = vpack.c.bf16 %v2351_v20, %v2350_v41 }
 0x79a   : > { %4960 = vmatprep.mubr.msk.bf16.mxu1 %vm1847_vm4, %v2354_v44  ;;  %4995 = vmatpush3.bf16.msra.mxu0 %v5197_v26 }
 0x79b   : > { %4961 = vmatmul.mubr.msk.bf16.vlgmr.msra.gmra.mxu1 %vm1847_vm4, %v2355_v46  ;;  %4996 = vmatprep.subr.bf16.mxu0 %v5198_v27 }
 0x79c   : > { %4965 = vmatpush3.bf16.msra.mxu1 %v2424_v47  ;;  %4966 = vmatprep.mubr.msk.bf16.mxu1 %vm1847_vm4, %v2049_v21 }
 0x79d   : > { %5084 = vmatprep.subr.msk.bf16.mxu1 %vm1847_vm4, %v5191_v28 }
 0x79e   : > { %4997 = vmatpush3.bf16.msra.mxu0 %v5198_v27 }
 0x79f   : > { %5088 = vmatprep.subr.msk.bf16.mxu0 %vm2364_vm6, %v4536_v15 }
 0x7a3   : > { %4967 = vmatmul.mubr.msk.bf16.vlgmr.msra.gmra.mxu1 %vm1847_vm4, %v2050_v38  ;;  %v2960_v38 = vsel %vm1847_vm4, %v5201_v54, 0 }
 0x7a4   : > { %4979 = vmatpush3.bf16.xpose.msra.mxu1 %v2592_v55  ;;  %4986 = vmatprep.mubr.msk.bf16.mxu1 %vm1847_vm4, %v2545_v29  ;;  %v5202_v29 = vld [vmem:[#allocation3 + $0x70] sm:$0xff]  }
 0x7a5   : > { %5085 = vmatprep.subr.msk.bf16.mxu1 %vm1847_vm4, %v5192_v56  ;;  %v2957_v55 = vsel %vm1847_vm4, %v5202_v29, 0 }
 0x7ac   : > { %4981 = vmatpush3.bf16.xpose.msra.mxu1 %v2589_v57 }
 0x7ad   : > { %5086 = vmatprep.subr.msk.bf16.mxu1 %vm1847_vm4, %v5193_v58 }
 0x7b4   : > { %4983 = vmatpush3.bf16.xpose.msra.mxu1 %v2586_v12 }
 0x7b5   : > { %5087 = vmatprep.subr.msk.bf16.mxu1 %vm1847_vm4, %v5194_v14 }
 0x7bc   : > { %4985 = vmatpush3.bf16.xpose.msra.mxu1 %v2583_v39 }
 0x7bd   : > { %5089 = vmatprep.subr.msk.bf16.mxu1 %vm1847_vm4, %v5201_v54 }
 0x7c3   : > { %4987 = vmatmul.mubr.msk.bf16.vlgmr.msra.gmra.mxu1 %vm1847_vm4, %v2546_v63 }
 0x7c4   : > { %5017 = vmatpush3.bf16.xpose.msra.mxu1 %v2960_v38 }
 0x7c5   : > { %5090 = vmatprep.subr.msk.bf16.mxu1 %vm1847_vm4, %v5202_v29 }
 0x7cc   : > { %5019 = vmatpush3.bf16.xpose.msra.mxu1 %v2957_v55 }
 0x85b   : > { %v4962_v0 = vpop.f32.mrf.mxu1 }
 0x85d   : > { %v2402_v4 = vpop.f32.mrf.mxu1 }
 0x85f   : > { %v4963_v49 = vpop.f32.mrf.mxu1 }
 0x861   : > { %v2405_v5 = vpop.f32.mrf.mxu1 }
 0x863   : > { %v4968_v6 = vpop.f32.mrf.mxu1 }
 0x864   : > { %v5878_v60 = vadd.f32 %v4968_v6, %v4962_v0 }
 0x865   : > { %v2460_v61 = vpop.f32.mrf.mxu1 }
 0x866   : > { %v5880_v7 = vadd.f32 %v2460_v61, %v2402_v4 }
 0x867   : > { %v4969_v48 = vpop.f32.mrf.mxu1 }
 0x868   : > { %v5882_v8 = vadd.f32 %v4969_v48, %v4963_v49 }
 0x869   : > { %v2463_v3 = vpop.f32.mrf.mxu1 }
 0x86a   : > { %v5884_v2 = vadd.f32 %v2463_v3, %v2405_v5 }
 0x883   : > { %v4988_v9 = vpop.f32.mrf.mxu1 }
 0x884   : > { %v2649_v17 = vsel %vm6765_vm5, %v4988_v9, -inf }
 0x885   : > { %v2628_v1 = vpop.f32.mrf.mxu1 }
 0x886   : > { %v2643_v10 = vsel %vm6765_vm5, %v2628_v1, -inf }
 0x887   : > { %2644 = vmax.xlane.f32.xlu0 %v2643_v10  ;;  %v4989_v11 = vpop.f32.mrf.mxu1  ;;  %v5203_v10 = vld [vmem:[#allocation3 + $0x68] sm:$0xff]  }
 0x888   : > { %v2652_v23 = vsel %vm6765_vm5, %v4989_v11, -inf  ;;  %5091 = vmatprep.subr.msk.bf16.mxu1 %vm1847_vm4, %v5203_v10 }
 0x889   : > { %v2631_v16 = vpop.f32.mrf.mxu1 }
 0x88a   : > { %v2646_v22 = vsel %vm6765_vm5, %v2631_v16, -inf }
 0x88b   : > { %2650 = vmax.xlane.f32.xlu0 %v2649_v17  ;;  %2647 = vmax.xlane.f32.xlu1 %v2646_v22 }
 0x88f   : > { %2653 = vmax.xlane.f32.xlu1 %v2652_v23 }
 0x910   : > { %v2645_v30 = vpop.xlane.xlu0 %2644 }
 0x911   : > { %v2655_v31 = vsub.f32 %v2628_v1, %v2645_v30  ;;  %v5200_v1 = vld [vmem:[%s6742_s3 + $0x30] sm:$0xff]  }
 0x913   : > { %v2659_v32 = vmul.f32 1.442695, %v2655_v31 }
 0x914   : > { %v2651_v33 = vpop.xlane.xlu0 %2650  ;;  %v2648_v34 = vpop.xlane.xlu1 %2647 }
 0x915   : > { %5241 = vpow2.f32 %v2659_v32  ;;  %v2657_v35 = vsub.f32 %v4988_v9, %v2651_v33  ;;  %v2656_v36 = vsub.f32 %v2631_v16, %v2648_v34  ;;  %v5204_v16 = vld [vmem:[#allocation3 + $0x60] sm:$0xff]  }
 0x916   : > { %v2951_v17 = vsel %vm1847_vm4, %v5204_v16, 0 }
 0x917   : > { %v2663_v37 = vmul.f32 1.442695, %v2657_v35  ;;  %v2661_v40 = vmul.f32 1.442695, %v2656_v36 }
 0x918   : > { %v2654_v41 = vpop.xlane.xlu1 %2653 }
 0x919   : > { %5243 = vpow2.f32 %v2663_v37  ;;  %v2658_v20 = vsub.f32 %v4989_v11, %v2654_v41  ;;  %v2954_v11 = vsel %vm1847_vm4, %v5203_v10, 0 }
 0x91a   : > { %5245 = vpow2.f32 %v2661_v40  ;;  %5021 = vmatpush3.bf16.xpose.msra.mxu1 %v2954_v11 }
 0x91b   : > { %v2665_v42 = vmul.f32 1.442695, %v2658_v20  ;;  %5092 = vmatprep.subr.msk.bf16.mxu1 %vm1847_vm4, %v5204_v16 }
 0x91d   : > { %5247 = vpow2.f32 %v2665_v42 }
 0x922   : > { %v5242_v43 = vpop.eup %5241  ;;  %5023 = vmatpush3.bf16.xpose.msra.mxu1 %v2951_v17 }
 0x923   : > { %v2667_v44 = vsel %vm6765_vm5, %v5242_v43, 0.0 }
 0x924   : > { %2668 = vadd.xlane.f32.xlu0 %v2667_v44 }
 0x926   : > { %v5244_v45 = vpop.eup %5243 }
 0x927   : > { %v5246_v46 = vpop.eup %5245  ;;  %v2673_v47 = vsel %vm6765_vm5, %v5244_v45, 0.0 }
 0x928   : > { %2674 = vadd.xlane.f32.xlu0 %v2673_v47  ;;  %v2670_v28 = vsel %vm6765_vm5, %v5246_v46, 0.0  ;;  %v2683_v50 = vpack.c.bf16 %v5246_v46, %v5242_v43  ;;  %v5206_v46 = vld [vmem:[#allocation4 + $0x70] sm:$0xff]   ;;  %v5207_v47 = vld [vmem:[#allocation4 + $0x68] sm:$0xff]  }
 0x929   : > { %2671 = vadd.xlane.f32.xlu1 %v2670_v28  ;;  %v5208_v28 = vld [vmem:[#allocation4 + $0x60] sm:$0xff]  }
 0x92a   : > { %v5248_v51 = vpop.eup %5247  ;;  %4998 = vmatprep.mubr.msk.bf16.mxu0 %vm6765_vm5, %v2683_v50 }
 0x92b   : > { %v2676_v21 = vsel %vm6765_vm5, %v5248_v51, 0.0  ;;  %v2684_v52 = vpack.c.bf16 %v5248_v51, %v5244_v45  ;;  %v5205_v45 = vld [vmem:[#allocation4 + $0x78] sm:$0xff]  }
 0x92d   : > { %2677 = vadd.xlane.f32.xlu1 %v2676_v21  ;;  %4999 = vmatmul.mubr.msk.bf16.vlgmr.msra.gmra.mxu0 %vm6765_vm5, %v2684_v52 }
 0x92e   : > { %5003 = vmatpush3.bf16.msra.mxu0 %v2788_v53 }
 0x92f   : > { %5008 = vmatprep.subr.bf16.mxu0 %v5199_v13 }
 0x9ad   : > { %v2669_v57 = vpop.xlane.xlu0 %2668 }
 0x9ae   : > { %5249 = vrcp.f32 %v2669_v57 }
 0x9b1   : > { %v2675_v12 = vpop.xlane.xlu0 %2674 }
 0x9b2   : > { %v2672_v56 = vpop.xlane.xlu1 %2671 }
 0x9b6   : > { %v2678_v58 = vpop.xlane.xlu1 %2677 }
 0x9b7   : > { %5251 = vrcp.f32 %v2678_v58 }
 0x9b8   : > { %5253 = vrcp.f32 %v2672_v56 }
 0x9b9   : > { %5255 = vrcp.f32 %v2675_v12 }
 0x9bb   : > { %v5250_v59 = vpop.eup %5249 }
 0x9c4   : > { %v5252_v63 = vpop.eup %5251 }
 0x9c5   : > { %v5254_v0 = vpop.eup %5253 }
 0x9c6   : > { %v5256_v5 = vpop.eup %5255 }
 0x9ed   : > { %v5000_v14 = vpop.f32.mrf.mxu0 }
 0x9ee   : > { %v2775_v48 = vmul.f32 %v5256_v5, %v5000_v14 }
 0x9ef   : > { %v2758_v39 = vpop.f32.mrf.mxu0 }
 0x9f0   : > { %v2773_v6 = vmul.f32 %v5250_v59, %v2758_v39 }
 0x9f1   : > { %v5001_v62 = vpop.f32.mrf.mxu0 }
 0x9f2   : > { %v2776_v4 = vmul.f32 %v5252_v63, %v5001_v62 }
 0x9f3   : > { %v2761_v49 = vpop.f32.mrf.mxu0 }
 0x9f4   : > { %v2774_v61 = vmul.f32 %v5254_v0, %v2761_v49  ;;  %v2778_v9 = vpack.c.bf16 %v2776_v4, %v2775_v48  ;;  %v4559_v49 = vld [vmem:[%s6745_s6 + $0xc] sm:$0xf] }
 0x9f5   : > { %v3156_v5 = vsel %vm2364_vm6, %v4559_v49, 0 }
 0x9f6   : > { %v2777_v3 = vpack.c.bf16 %v2774_v61, %v2773_v6 }
 0x9f8   : > { %5004 = vmatprep.mubr.msk.bf16.mxu0 %vm1847_vm4, %v2777_v3 }
 0x9f9   : > { %5005 = vmatmul.mubr.msk.bf16.vlgmr.msra.gmra.mxu0 %vm1847_vm4, %v2778_v9 }
 0x9fa   : > { %5009 = vmatpush3.bf16.msra.mxu0 %v5199_v13  ;;  %5012 = vmatprep.mubr.msk.bf16.mxu0 %vm6764_vm3, %v5758_v18 }
 0x9fb   : > { %5010 = vmatprep.subr.bf16.mxu0 %v5200_v1 }
 0x9fe   : > { %5011 = vmatpush3.bf16.msra.mxu0 %v5200_v1 }
 0x9ff   : > { %5028 = vmatprep.subr.bf16.mxu0 %v5205_v45 }
 0xa01   : > { %5013 = vmatmul.mubr.msk.bf16.vlgmr.msra.gmra.mxu0 %vm6764_vm3, %v5760_v19 }
 0xa02   : > { %5029 = vmatpush3.bf16.msra.mxu0 %v5205_v45 }
 0xa03   : > { %5030 = vmatprep.subr.bf16.mxu0 %v5206_v46 }
 0xa06   : > { %5031 = vmatpush3.bf16.msra.mxu0 %v5206_v46 }
 0xa07   : > { %5032 = vmatprep.subr.bf16.mxu0 %v5207_v47 }
 0xa0a   : > { %5033 = vmatpush3.bf16.msra.mxu0 %v5207_v47 }
 0xa0b   : > { %5034 = vmatprep.subr.bf16.mxu0 %v5208_v28 }
 0xa0e   : > { %5035 = vmatpush3.bf16.msra.mxu0 %v5208_v28 }
 0xa0f   : > { %5093 = vmatprep.subr.msk.bf16.mxu0 %vm2364_vm6, %v4559_v49 }
 0xab9   : > { %v5006_v22 = vpop.f32.mrf.mxu0 }
 0xaba   : > { %v5922_v18 = vadd.f32 %v5006_v22, %v5878_v60 }
 0xabb   : > { %v2824_v23 = vpop.f32.mrf.mxu0 }
 0xabc   : > { %v5925_v24 = vadd.f32 %v2824_v23, %v5880_v7 }
 0xabd   : > { %v5007_v19 = vpop.f32.mrf.mxu0 }
 0xabe   : > { %v5928_v25 = vadd.f32 %v5007_v19, %v5882_v8 }
 0xabf   : > { %v2827_v26 = vpop.f32.mrf.mxu0 }
 0xac0   : > { %v5931_v27 = vadd.f32 %v2827_v26, %v5884_v2 }
 0xac1   : > { %v5014_v30 = vpop.f32.mrf.mxu0 }
 0xac2   : > { %v2911_v36 = vmul.f32 0.35355338, %v5014_v30 }
 0xac3   : > { %v2894_v31 = vpop.f32.mrf.mxu0 }
 0xac4   : > { %v2909_v35 = vmul.f32 0.35355338, %v2894_v31 }
 0xac5   : > { %v5015_v32 = vpop.f32.mrf.mxu0 }
 0xac6   : > { %v2912_v33 = vmul.f32 0.35355338, %v5015_v32 }
 0xac7   : > { %v2897_v34 = vpop.f32.mrf.mxu0 }
 0xac8   : > { %v2910_v60 = vmul.f32 0.35355338, %v2897_v34  ;;  %v2914_v40 = vpack.c.bf16 %v2912_v33, %v2911_v36  ;;  %v1721_v34 = vld [vmem:[%s1718_s30 + $0x10] sm:$0xff]  ;;  %v4562_v36 = vld [vmem:[%s6746_s7] ss:$0 sm:$0xff] }
 0xaca   : > { %v2913_v37 = vpack.c.bf16 %v2910_v60, %v2909_v35 }
 0xacc   : > { %5024 = vmatprep.mubr.msk.bf16.mxu1 %vm1847_vm4, %v2913_v37  ;;  %v1719_v37 = vld [vmem:[%s1718_s30] sm:$0xff] }
 0xacd   : > { %5025 = vmatmul.mubr.msk.bf16.vlgmr.msra.gmra.mxu1 %vm1847_vm4, %v2914_v40 }
 0xb8d   : > { %v5026_v7 = vpop.f32.mrf.mxu1 }
 0xb8e   : > { %v3017_v42 = vsel %vm6765_vm5, %v5026_v7, -inf }
 0xb8f   : > { %v2996_v8 = vpop.f32.mrf.mxu1 }
 0xb90   : > { %v3011_v41 = vsel %vm6765_vm5, %v2996_v8, -inf }
 0xb91   : > { %3012 = vmax.xlane.f32.xlu0 %v3011_v41  ;;  %v5027_v2 = vpop.f32.mrf.mxu1  ;;  %v1722_v41 = vld [vmem:[%s1718_s30 + $0x18] sm:$0xff] }
 0xb92   : > { %v3020_v44 = vsel %vm6765_vm5, %v5027_v2, -inf }
 0xb93   : > { %v2999_v20 = vpop.f32.mrf.mxu1 }
 0xb94   : > { %v3014_v43 = vsel %vm6765_vm5, %v2999_v20, -inf }
 0xb95   : > { %3018 = vmax.xlane.f32.xlu0 %v3017_v42  ;;  %3015 = vmax.xlane.f32.xlu1 %v3014_v43 }
 0xb99   : > { %3021 = vmax.xlane.f32.xlu1 %v3020_v44  ;;  %v1720_v44 = vld [vmem:[%s1718_s30 + $0x8] sm:$0xff] }
 0xc1a   : > { %v3013_v50 = vpop.xlane.xlu0 %3012 }
 0xc1b   : > { %v3023_v51 = vsub.f32 %v2996_v8, %v3013_v50 }
 0xc1d   : > { %v3027_v21 = vmul.f32 1.442695, %v3023_v51 }
 0xc1e   : > { %v3019_v52 = vpop.xlane.xlu0 %3018  ;;  %v3016_v15 = vpop.xlane.xlu1 %3015 }
 0xc1f   : > { %5257 = vpow2.f32 %v3027_v21  ;;  %v3025_v53 = vsub.f32 %v5026_v7, %v3019_v52  ;;  %v3024_v13 = vsub.f32 %v2999_v20, %v3016_v15 }
 0xc21   : > { %v3031_v54 = vmul.f32 1.442695, %v3025_v53  ;;  %v3029_v29 = vmul.f32 1.442695, %v3024_v13 }
 0xc22   : > { %v3022_v38 = vpop.xlane.xlu1 %3021 }
 0xc23   : > { %5259 = vpow2.f32 %v3031_v54  ;;  %v3026_v55 = vsub.f32 %v5027_v2, %v3022_v38 }
 0xc24   : > { %5261 = vpow2.f32 %v3029_v29 }
 0xc25   : > { %v3033_v56 = vmul.f32 1.442695, %v3026_v55 }
 0xc27   : > { %5263 = vpow2.f32 %v3033_v56 }
 0xc2c   : > { %v5258_v57 = vpop.eup %5257 }
 0xc2d   : > { %v3035_v58 = vsel %vm6765_vm5, %v5258_v57, 0.0 }
 0xc2e   : > { %3036 = vadd.xlane.f32.xlu0 %v3035_v58 }
 0xc30   : > { %v5260_v12 = vpop.eup %5259 }
 0xc31   : > { %v5262_v14 = vpop.eup %5261  ;;  %v3041_v39 = vsel %vm6765_vm5, %v5260_v12, 0.0 }
 0xc32   : > { %3042 = vadd.xlane.f32.xlu0 %v3041_v39  ;;  %v3038_v59 = vsel %vm6765_vm5, %v5262_v14, 0.0  ;;  %v3051_v62 = vpack.c.bf16 %v5262_v14, %v5258_v57 }
 0xc33   : > { %3039 = vadd.xlane.f32.xlu1 %v3038_v59 }
 0xc34   : > { %v5264_v63 = vpop.eup %5263  ;;  %5036 = vmatprep.mubr.msk.bf16.mxu0 %vm6765_vm5, %v3051_v62 }
 0xc35   : > { %v3044_v0 = vsel %vm6765_vm5, %v5264_v63, 0.0  ;;  %v3052_v4 = vpack.c.bf16 %v5264_v63, %v5260_v12 }
 0xc37   : > { %3045 = vadd.xlane.f32.xlu1 %v3044_v0  ;;  %5037 = vmatmul.mubr.msk.bf16.vlgmr.msra.gmra.mxu0 %vm6765_vm5, %v3052_v4 }
 0xc38   : > { %5041 = vmatpush3.bf16.msra.mxu0 %v3156_v5 }
 0xcb7   : > { %v3037_v61 = vpop.xlane.xlu0 %3036 }
 0xcb8   : > { %5265 = vrcp.f32 %v3037_v61 }
 0xcbb   : > { %v3043_v3 = vpop.xlane.xlu0 %3042 }
 0xcbc   : > { %v3040_v6 = vpop.xlane.xlu1 %3039 }
 0xcc0   : > { %v3046_v48 = vpop.xlane.xlu1 %3045 }
 0xcc1   : > { %5267 = vrcp.f32 %v3046_v48 }
 0xcc2   : > { %5269 = vrcp.f32 %v3040_v6 }
 0xcc3   : > { %5271 = vrcp.f32 %v3043_v3 }
 0xcc5   : > { %v5266_v10 = vpop.eup %5265 }
 0xcce   : > { %v5268_v16 = vpop.eup %5267 }
 0xccf   : > { %v5270_v17 = vpop.eup %5269 }
 0xcd0   : > { %v5272_v19 = vpop.eup %5271 }
 0xcf7   : > { %v5038_v9 = vpop.f32.mrf.mxu0 }
 0xcf8   : > { %v3143_v31 = vmul.f32 %v5272_v19, %v5038_v9 }
 0xcf9   : > { %v3126_v1 = vpop.f32.mrf.mxu0 }
 0xcfa   : > { %v3141_v26 = vmul.f32 %v5266_v10, %v3126_v1 }
 0xcfb   : > { %v5039_v11 = vpop.f32.mrf.mxu0 }
 0xcfc   : > { %v3144_v22 = vmul.f32 %v5268_v16, %v5039_v11 }
 0xcfd   : > { %v3129_v23 = vpop.f32.mrf.mxu0 }
 0xcfe   : > { %v3142_v30 = vmul.f32 %v5270_v17, %v3129_v23  ;;  %v3146_v33 = vpack.c.bf16 %v3144_v22, %v3143_v31 }
 0xd00   : > { %v3145_v32 = vpack.c.bf16 %v3142_v30, %v3141_v26 }
 0xd02   : > { %5042 = vmatprep.mubr.msk.bf16.mxu0 %vm1847_vm4, %v3145_v32 }
 0xd03   : > { %5043 = vmatmul.mubr.msk.bf16.vlgmr.msra.gmra.mxu0 %vm1847_vm4, %v3146_v33 }
 0xdc3   : > { %v5044_v35 = vpop.f32.mrf.mxu0 }
 0xdc4   : > { %v3209_v60 = vadd.f32 %v5044_v35, %v5922_v18 }
 0xdc5   : > { %v3192_v40 = vpop.f32.mrf.mxu0 }
 0xdc6   : > { %v3213_v7 = vadd.f32 %v3209_v60, %v1721_v34  ;;  %v3207_v8 = vadd.f32 %v3192_v40, %v5925_v24 }
 0xdc7   : > { %v5045_v2 = vpop.f32.mrf.mxu0 }
 0xdc8   : > { %v3224_v20 = vadd.f32 %v4562_v36, %v3213_v7  ;;  %v3211_v42 = vadd.f32 %v3207_v8, %v1719_v37  ;;  %v3210_v43 = vadd.f32 %v5045_v2, %v5928_v25 }
 0xdc9   : > { %v3195_v45 = vpop.f32.mrf.mxu0 }
 0xdca   : > { %3229 = vst.msk [vmem:[%s3226_s17 + $0x10] sm:$0xff] %vm6764_vm3, %v3224_v20  ;;  %v3222_v18 = vadd.f32 %v4562_v36, %v3211_v42  ;;  %v3214_v46 = vadd.f32 %v3210_v43, %v1722_v41  ;;  %v3208_v47 = vadd.f32 %v3195_v45, %v5931_v27 }
 0xdcc   : > { %3227 = vst.msk [vmem:[%s3226_s17] sm:$0xff] %vm6764_vm3, %v3222_v18  ;;  %v3225_v28 = vadd.f32 %v4562_v36, %v3214_v46  ;;  %v3212_v50 = vadd.f32 %v3208_v47, %v1720_v44  ;;  %3234 = sbr.rel (%p4563_p7) target bundleno = 4369 (0x1111), region = 92 }
 0xdce   : > { %3230 = vst.msk [vmem:[%s3226_s17 + $0x18] sm:$0xff] %vm6764_vm3, %v3225_v28  ;;  %v3223_v24 = vadd.f32 %v4562_v36, %v3212_v50 }
 0xdd0   : > { %3228 = vst.msk [vmem:[%s3226_s17 + $0x8] sm:$0xff] %vm6764_vm3, %v3223_v24 }
 0xdd1   : > { %v5273_v44 = vld [vmem:[%s6749_s10 + $0x8] sm:$0xff]   ;;  %v5274_v45 = vld [vmem:[%s6749_s10] sm:$0xff]  }
 0xdd2   : > { %5046 = vmatprep.subr.bf16.mxu0 %v5273_v44 }
 0xdd3   : > { %5047 = vmatpush3.bf16.msra.mxu0 %v5273_v44 }
 0xdd4   : > { %5048 = vmatprep.subr.bf16.mxu0 %v5274_v45 }
 0xdd7   : > { %v3235_v25 = vld [vmem:[#allocation5] sm:$0xff]  ;;  %v3237_v51 = vld [vmem:[#allocation5 + $0x10] sm:$0xff]  ;;  %v3236_v21 = vld [vmem:[#allocation5 + $0x8] sm:$0xff]  ;;  %5049 = vmatpush3.bf16.msra.mxu0 %v5274_v45 }
 0xdd8   : > { %v3245_v52 = vsel %vm6764_vm3, %v3235_v25, 0.0  ;;  %v3251_v15 = vsel %vm6764_vm3, %v3237_v51, 0.0  ;;  %v3238_v27 = vld [vmem:[#allocation5 + $0x18] sm:$0xff]  ;;  %v3248_v53 = vsel %vm6764_vm3, %v3236_v21, 0.0  ;;  %v3239_v13 = vld [vmem:[#allocation5 + $0x20] sm:$0xff]  ;;  %v3240_v29 = vld [vmem:[#allocation5 + $0x28] sm:$0xff] }
 0xdd9   : > { %3246 = vadd.xlane.f32.xlu0 %v3245_v52  ;;  %3252 = vadd.xlane.f32.xlu1 %v3251_v15  ;;  %v3254_v54 = vsel %vm6764_vm3, %v3238_v27, 0.0  ;;  %v3257_v38 = vsel %vm6764_vm3, %v3239_v13, 0.0  ;;  %v3260_v55 = vsel %vm6764_vm3, %v3240_v29, 0.0  ;;  %v3241_v56 = vld [vmem:[#allocation5 + $0x30] sm:$0xff]  ;;  %v3242_v57 = vld [vmem:[#allocation5 + $0x38] sm:$0xff] }
 0xdda   : > { %v3263_v58 = vsel %vm6764_vm3, %v3241_v56, 0.0  ;;  %v3266_v12 = vsel %vm6764_vm3, %v3242_v57, 0.0 }
 0xddd   : > { %3249 = vadd.xlane.f32.xlu0 %v3248_v53  ;;  %3255 = vadd.xlane.f32.xlu1 %v3254_v54 }
 0xde1   : > { %3258 = vadd.xlane.f32.xlu0 %v3257_v38  ;;  %3261 = vadd.xlane.f32.xlu1 %v3260_v55 }
 0xde5   : > { %3264 = vadd.xlane.f32.xlu0 %v3263_v58  ;;  %3267 = vadd.xlane.f32.xlu1 %v3266_v12 }
 0xe62   : > { %v3247_v14 = vpop.xlane.xlu0 %3246  ;;  %v3253_v39 = vpop.xlane.xlu1 %3252 }
 0xe63   : > { %v3270_v59 = vmul.f32 0.03125, %v3247_v14  ;;  %v3272_v62 = vmul.f32 0.03125, %v3253_v39 }
 0xe65   : > { %v5975_v63 = vsub.f32 %v3235_v25, %v3270_v59  ;;  %v5977_v0 = vsub.f32 %v3237_v51, %v3272_v62 }
 0xe66   : > { %v3250_v4 = vpop.xlane.xlu0 %3249  ;;  %v3256_v49 = vpop.xlane.xlu1 %3255 }
 0xe67   : > { %v3271_v5 = vmul.f32 0.03125, %v3250_v4  ;;  %v3273_v6 = vmul.f32 0.03125, %v3256_v49  ;;  %v3286_v61 = vmul.f32 %v5975_v63, %v5975_v63  ;;  %v3288_v48 = vmul.f32 %v5977_v0, %v5977_v0  ;;  %v4564_v4 = vld [vmem:[%s6747_s8] ss:$0 sm:$0xff] }
 0xe69   : > { %v5983_v3 = vsub.f32 %v3236_v21, %v3271_v5  ;;  %v5985_v9 = vsub.f32 %v3238_v27, %v3273_v6  ;;  %v3294_v1 = vsel %vm6764_vm3, %v3286_v61, 0.0  ;;  %v3300_v16 = vsel %vm6764_vm3, %v3288_v48, 0.0  ;;  %v4565_v48 = vld [vmem:[%s6748_s9] ss:$0 sm:$0xff] }
 0xe6a   : > { %3295 = vadd.xlane.f32.xlu0 %v3294_v1  ;;  %v3259_v10 = vpop.xlane.xlu0 %3258  ;;  %v3262_v11 = vpop.xlane.xlu1 %3261 }
 0xe6b   : > { %v3274_v17 = vmul.f32 0.03125, %v3259_v10  ;;  %v3275_v22 = vmul.f32 0.03125, %v3262_v11  ;;  %v3287_v23 = vmul.f32 %v5983_v3, %v5983_v3  ;;  %v3289_v19 = vmul.f32 %v5985_v9, %v5985_v9 }
 0xe6d   : > { %v5993_v26 = vsub.f32 %v3239_v13, %v3274_v17  ;;  %v5995_v30 = vsub.f32 %v3240_v29, %v3275_v22  ;;  %v3297_v31 = vsel %vm6764_vm3, %v3287_v23, 0.0  ;;  %v3303_v34 = vsel %vm6764_vm3, %v3289_v19, 0.0 }
 0xe6e   : > { %3301 = vadd.xlane.f32.xlu0 %v3300_v16  ;;  %3298 = vadd.xlane.f32.xlu1 %v3297_v31  ;;  %v3265_v32 = vpop.xlane.xlu0 %3264  ;;  %v3268_v33 = vpop.xlane.xlu1 %3267 }
 0xe6f   : > { %v3276_v35 = vmul.f32 0.03125, %v3265_v32  ;;  %v3277_v60 = vmul.f32 0.03125, %v3268_v33  ;;  %v3290_v36 = vmul.f32 %v5993_v26, %v5993_v26  ;;  %v3291_v37 = vmul.f32 %v5995_v30, %v5995_v30 }
 0xe71   : > { %v6003_v40 = vsub.f32 %v3241_v56, %v3276_v35  ;;  %v6005_v7 = vsub.f32 %v3242_v57, %v3277_v60  ;;  %v3306_v8 = vsel %vm6764_vm3, %v3290_v36, 0.0  ;;  %v3309_v41 = vsel %vm6764_vm3, %v3291_v37, 0.0 }
 0xe72   : > { %3304 = vadd.xlane.f32.xlu1 %v3303_v34  ;;  %3307 = vadd.xlane.f32.xlu0 %v3306_v8 }
 0xe73   : > { %v3292_v2 = vmul.f32 %v6003_v40, %v6003_v40  ;;  %v3293_v20 = vmul.f32 %v6005_v7, %v6005_v7 }
 0xe75   : > { %v3312_v42 = vsel %vm6764_vm3, %v3292_v2, 0.0  ;;  %v3315_v43 = vsel %vm6764_vm3, %v3293_v20, 0.0 }
 0xe76   : > { %3310 = vadd.xlane.f32.xlu1 %v3309_v41  ;;  %3313 = vadd.xlane.f32.xlu0 %v3312_v42 }
 0xe7a   : > { %3316 = vadd.xlane.f32.xlu1 %v3315_v43 }
 0xef3   : > { %v3296_v18 = vpop.xlane.xlu0 %3295 }
 0xef4   : > { %v3318_v46 = vmul.f32 0.03125, %v3296_v18  ;;  %v5276_v18 = vld [vmem:[%s6753_s14 + $0x10] sm:$0xff]  }
 0xef6   : > { %v3326_v47 = vadd.f32 1e-05, %v3318_v46  ;;  %v5278_v46 = vld [vmem:[%s6753_s14] sm:$0xff]  }
 0xef7   : > { %v3299_v28 = vpop.xlane.xlu1 %3298  ;;  %v3302_v50 = vpop.xlane.xlu0 %3301 }
 0xef8   : > { %5279 = vrsqrt.f32 %v3326_v47  ;;  %v3319_v24 = vmul.f32 0.03125, %v3299_v28  ;;  %v3320_v25 = vmul.f32 0.03125, %v3302_v50  ;;  %v3484_v47 = vlaneseq }
 0xefa   : > { %v3327_v51 = vadd.f32 1e-05, %v3319_v24  ;;  %v3328_v21 = vadd.f32 1e-05, %v3320_v25  ;;  %v6051_v28 = vshrl.u32 %v3484_v47, 7  ;;  %v3482_v24 = vld [vmem:[%s6751_s12] sm:$0xff] }
 0xefb   : > { %v3305_v52 = vpop.xlane.xlu1 %3304  ;;  %v3308_v15 = vpop.xlane.xlu0 %3307 }
 0xefc   : > { %5281 = vrsqrt.f32 %v3327_v51  ;;  %v3321_v27 = vmul.f32 0.03125, %v3305_v52  ;;  %v3322_v53 = vmul.f32 0.03125, %v3308_v15  ;;  %v3716_v50 = vsub.s32 1, %v6051_v28 }
 0xefd   : > { %5283 = vrsqrt.f32 %v3328_v21  ;;  %v3841_v25 = vsub.s32 4, %v6051_v28  ;;  %v3973_v51 = vsub.s32 7, %v6051_v28  ;;  %v3486_v21 = vadd.s32 8, %v6051_v28 }
 0xefe   : > { %v3329_v13 = vadd.f32 1e-05, %v3321_v27  ;;  %v3330_v54 = vadd.f32 1e-05, %v3322_v53  ;;  %v6061_v52 = vadd.s32 16, %v6051_v28  ;;  %v6761_v15 = vand.u32 7, %v6051_v28 }
 0xeff   : > { %v3311_v29 = vpop.xlane.xlu1 %3310  ;;  %v3314_v38 = vpop.xlane.xlu0 %3313  ;;  %v6065_v27 = vadd.s32 24, %v6051_v28  ;;  %v6068_v53 = vadd.s32 32, %v6051_v28  ;;  %vm6772_vm8 = vcmp.lt.s32.totalorder %v6051_v28, 1  ;;  %vm6771_vm10 = vcmp.lt.s32.totalorder %v6051_v28, 7 }
 0xf00   : > { %5285 = vrsqrt.f32 %v3329_v13  ;;  %v3323_v55 = vmul.f32 0.03125, %v3311_v29  ;;  %v3324_v56 = vmul.f32 0.03125, %v3314_v38  ;;  %v6070_v13 = vrot.slane %v3482_v24, %v3716_v50 }
 0xf01   : > { %5287 = vrsqrt.f32 %v3330_v54  ;;  %v6072_v54 = vrot.slane %v3482_v24, %v3841_v25  ;;  %v6074_v29 = vrot.slane %v3482_v24, %v3973_v51  ;;  %v3504_v38 = vand.u32 7, %v3486_v21 }
 0xf02   : > { %v3331_v57 = vadd.f32 1e-05, %v3323_v55  ;;  %v3332_v58 = vadd.f32 1e-05, %v3324_v56  ;;  %v3696_v55 = vsub.s32 0, %v6051_v28  ;;  %v5359_v56 = vmov 0.0  }
 0xf03   : > { %v3317_v12 = vpop.xlane.xlu1 %3316  ;;  %vm6089_vm7 = vcmp.le.s32.totalorder %v6761_v15, 6  ;;  %vm6107_vm9 = vcmp.ge.s32.totalorder %v3504_v38, 1  ;;  %vm6178_vm14 = vcmp.le.s32.totalorder %v3504_v38, 6  ;;  %v6210_v38 = vld [vmem:[%s6752_s13] ss:$0 sm:$0xff] }
 0xf04   : > { %5289 = vrsqrt.f32 %v3331_v57  ;;  %v3325_v14 = vmul.f32 0.03125, %v3317_v12  ;;  %v6077_v57 = vrot.slane %v5359_v56, 7  ;;  %v6757_v12 = vand.u32 7, %v6061_v52 }
 0xf05   : > { %v5280_v39 = vpop.eup %5279  ;;  %5291 = vrsqrt.f32 %v3332_v58  ;;  %v3777_v58 = vsub.s32 2, %v6051_v28 }
 0xf06   : > { %v3333_v59 = vadd.f32 1e-05, %v3325_v14  ;;  %v3342_v62 = vmul.f32 %v5280_v39, %v5975_v63  ;;  %v3821_v14 = vsub.s32 3, %v6051_v28  ;;  %v6085_v39 = vld [vmem:[%s6750_s11] ss:$0 sm:$0xff]  ;;  %vm6123_vm11 = vcmp.ge.s32.totalorder %v6757_v12, 1 }
 0xf08   : > { %5293 = vrsqrt.f32 %v3333_v59  ;;  %v3356_v61 = vmul.f32 %v4564_v4, %v3342_v62  ;;  %v3518_v62 = vand.u32 7, %v6065_v27  ;;  %v6798_v27 = vmov 0 }
 0xf09   : > { %v5282_v49 = vpop.eup %5281 }
 0xf0a   : > { %v5284_v5 = vpop.eup %5283  ;;  %v3343_v6 = vmul.f32 %v5282_v49, %v5983_v3  ;;  %v3370_v63 = vadd.f32 %v4565_v48, %v3356_v61  ;;  %v3885_v49 = vsub.s32 5, %v6051_v28  ;;  %v6102_v61 = vadd.s32 48, %v6051_v28 }
 0xf0b   : > { %v3344_v1 = vmul.f32 %v5284_v5, %v5977_v0  ;;  %v3953_v5 = vsub.s32 6, %v6051_v28  ;;  %vm6129_vm12 = vcmp.ge.s32.totalorder %v3518_v62, 1  ;;  %vm6203_vm15 = vcmp.le.s32.totalorder %v3518_v62, 6 }
 0xf0c   : > { %v3357_v10 = vmul.f32 %v4564_v4, %v3343_v6  ;;  %v6099_v6 = vadd.s32 40, %v6051_v28  ;;  %v6799_v27 = vsel %vm6203_vm15, 4294967295, %v6798_v27 }
 0xf0d   : > { %v5286_v11 = vpop.eup %5285  ;;  %v3358_v23 = vmul.f32 %v4564_v4, %v3344_v1  ;;  %6800 = vst [vmem:[#allocation12_spill] sm:$0xff] %v6799_v27 }
 0xf0e   : > { %v5288_v16 = vpop.eup %5287  ;;  %v3371_v17 = vadd.f32 %v4565_v48, %v3357_v10  ;;  %v3345_v22 = vmul.f32 %v5286_v11, %v5985_v9  ;;  %v6782_v10 = vmov 0  ;;  %v6111_v11 = vrot.slane %v3482_v24, %v3696_v55 }
 0xf0f   : > { %v3346_v19 = vmul.f32 %v5288_v16, %v5993_v26  ;;  %v3372_v34 = vadd.f32 %v4565_v48, %v3358_v23  ;;  %v6783_v10 = vsel %vm6107_vm9, 4294967295, %v6782_v10  ;;  %v6113_v16 = vrot.slane %v5359_v56, 1 }
 0xf10   : > { %v3378_v31 = vpack.c.bf16 %v3371_v17, %v3370_v63  ;;  %v3359_v32 = vmul.f32 %v4564_v4, %v3345_v22  ;;  %6784 = vst [vmem:[#allocation6_spill] sm:$0xff] %v6783_v10  ;;  %v6119_v17 = vrot.slane %v3482_v24, %v3777_v58  ;;  %v6785_v22 = vmov 0 }
 0xf11   : > { %v5290_v3 = vpop.eup %5289  ;;  %v3360_v60 = vmul.f32 %v4564_v4, %v3346_v19  ;;  %v6786_v22 = vsel %vm6123_vm11, 4294967295, %v6785_v22  ;;  %v6127_v23 = vrot.slane %v3482_v24, %v3821_v14 }
 0xf12   : > { %v5292_v33 = vpop.eup %5291  ;;  %5050 = vmatprep.mubr.msk.bf16.mxu0 %vm6764_vm3, %v3378_v31  ;;  %v3373_v35 = vadd.f32 %v4565_v48, %v3359_v32  ;;  %v3347_v0 = vmul.f32 %v5290_v3, %v5995_v30  ;;  %6787 = vst [vmem:[#allocation7_spill] sm:$0xff] %v6786_v22  ;;  %v6139_v3 = vrot.slane %v3482_v24, %v3885_v49 }
 0xf13   : > { %v3348_v36 = vmul.f32 %v5292_v33, %v6003_v40  ;;  %v3374_v9 = vadd.f32 %v4565_v48, %v3360_v60  ;;  %v5275_v40 = vld [vmem:[%s6753_s14 + $0x18] sm:$0xff]   ;;  %v6141_v33 = vrot.slane %v3482_v24, %v3953_v5  ;;  %v6147_v60 = vmul.f32 0.0, %v6070_v13 }
 0xf14   : > { %v3379_v37 = vpack.c.bf16 %v3373_v35, %v3372_v34  ;;  %v3361_v8 = vmul.f32 %v4564_v4, %v3347_v0  ;;  %5058 = vmatprep.subr.bf16.mxu1 %v5275_v40  ;;  %v6759_v34 = vand.u32 7, %v6099_v6 }
 0xf15   : > { %v5294_v41 = vpop.eup %5293  ;;  %v3362_v20 = vmul.f32 %v4564_v4, %v3348_v36  ;;  %5059 = vmatpush3.bf16.msra.mxu1 %v5275_v40 }
 0xf16   : > { %5051 = vmatmul.mubr.msk.bf16.vlgmr.msra.gmra.mxu0 %vm6764_vm3, %v3379_v37  ;;  %v3375_v26 = vadd.f32 %v4565_v48, %v3361_v8  ;;  %v3349_v2 = vmul.f32 %v5294_v41, %v6005_v7  ;;  %5060 = vmatprep.subr.bf16.mxu1 %v5276_v18  ;;  %v5277_v7 = vld [vmem:[%s6753_s14 + $0x8] sm:$0xff]   ;;  %vm6267_vm0 = vcmp.ge.s32.totalorder %v6759_v34, 1 }
 0xf17   : > { %v3376_v44 = vadd.f32 %v4565_v48, %v3362_v20 }
 0xf18   : > { %v3380_v42 = vpack.c.bf16 %v3375_v26, %v3374_v9  ;;  %v3363_v43 = vmul.f32 %v4564_v4, %v3349_v2  ;;  %v3525_v4 = vand.u32 7, %v6068_v53  ;;  %v6156_v9 = vmul.f32 0.0, %v6074_v29 }
 0xf19   : > { %5061 = vmatpush3.bf16.msra.mxu1 %v5276_v18 }
 0xf1a   : > { %5054 = vmatprep.mubr.msk.bf16.mxu0 %vm6764_vm3, %v3380_v42  ;;  %v3377_v45 = vadd.f32 %v4565_v48, %v3363_v43  ;;  %5062 = vmatprep.subr.bf16.mxu1 %v5277_v7  ;;  %v6105_v48 = vadd.s32 56, %v6051_v28  ;;  %vm6135_vm13 = vcmp.ge.s32.totalorder %v3525_v4, 1  ;;  %6792 = vst [vmem:[#allocation8_spill] sm:$0xff] %v6156_v9  ;;  %vm6284_vm1 = vcmp.le.s32.totalorder %v3525_v4, 6 }
 0xf1c   : > { %v3381_v30 = vpack.c.bf16 %v3377_v45, %v3376_v44 }
 0xf1d   : > { %5063 = vmatpush3.bf16.msra.mxu1 %v5277_v7 }
 0xf1e   : > { %5055 = vmatmul.mubr.msk.bf16.gmra.mxu0 %vm6764_vm3, %v3381_v30  ;;  %5064 = vmatprep.subr.bf16.mxu1 %v5278_v46 }
 0xf21   : > { %5065 = vmatpush3.bf16.msra.mxu1 %v5278_v46 }
 0xfd6   : > { %v5052_v1 = vpop.f32.mrf.mxu0 }
 0xfd7   : > { %v6117_v63 = vadd.f32 %v5052_v1, %v6085_v39 }
 0xfd8   : > { %v3451_v19 = vpop.f32.mrf.mxu0 }
 0xfd9   : > { %v3656_v36 = vrot.slane %v6117_v63, 7  ;;  %v6152_v37 = vmul.f32 %v6070_v13, %v6117_v63  ;;  %v3452_v8 = vadd.f32 %v6085_v39, %v3451_v19  ;;  %v6756_v26 = vrot.slane %v6117_v63, 1 }
 0xfda   : > { %v5053_v41 = vpop.f32.mrf.mxu0  ;;  %v6161_v2 = vmul.f32 %v6072_v54, %v6117_v63  ;;  %v6165_v20 = vmul.f32 %v6074_v29, %v6117_v63 }
 0xfdb   : > { %v6168_v42 = vadd.f32 %v5053_v41, %v6085_v39  ;;  %v6170_v43 = vrot.slane %v3452_v8, 7  ;;  %v3719_v44 = vmul.f32 %v6070_v13, %v3452_v8  ;;  %v6173_v45 = vrot.slane %v3452_v8, 1 }
 0xfdc   : > { %6793 = vst [vmem:[#allocation9_spill] sm:$0xff] %v6161_v2  ;;  %6794 = vst [vmem:[#allocation10_spill] sm:$0xff] %v6165_v20  ;;  %v6176_v30 = vmul.f32 %v6072_v54, %v3452_v8  ;;  %v3454_v40 = vpop.f32.mrf.mxu0  ;;  %v6824_v2 = vand.u32 7, %v6102_v61 }
 0xfdd   : > { %v6760_v7 = vrot.slane %v6168_v42, 7  ;;  %v3722_v46 = vmul.f32 %v6070_v13, %v6168_v42  ;;  %v6758_v47 = vrot.slane %v6168_v42, 1  ;;  %v6188_v50 = vmul.f32 %v6072_v54, %v6168_v42 }
 0xfde   : > { %v3668_v24 = vsel %vm6772_vm8, %v6077_v57, %v6170_v43  ;;  %v3749_v25 = vsel %vm6771_vm10, %v6113_v16, %v6173_v45  ;;  %v6200_v51 = vmul.f32 %v6074_v29, %v6168_v42  ;;  %v3455_v21 = vadd.f32 %v6085_v39, %v3454_v40 }
 0xfdf   : > { %v3687_v55 = vsel %vm6107_vm9, %v3668_v24, 0.0  ;;  %v3767_v56 = vsel %vm6089_vm7, %v3749_v25, 0.0  ;;  %v6220_v58 = vsel %vm6772_vm8, %v3656_v36, %v6760_v7  ;;  %v6228_v14 = vsel %vm6771_vm10, %v6756_v26, %v6758_v47  ;;  %v5056_v26 = vpop.f32.mrf.mxu0 }
 0xfe0   : > { %6797 = vst [vmem:[#allocation11_spill] sm:$0xff] %v6200_v51  ;;  %6801 = vst [vmem:[#allocation13_spill] sm:$0xff] %v6220_v58  ;;  %v3699_v62 = vmul.f32 %v6111_v11, %v3687_v55  ;;  %v6232_v49 = vmul.f32 %v6119_v17, %v3767_v56  ;;  %v3690_v5 = vsel %vm6135_vm13, %v6220_v58, 0.0  ;;  %v3814_v1 = vsel %vm6129_vm12, %v6220_v58, 0.0 }
 0xfe1   : > { %v3702_v19 = vmul.f32 %v6111_v11, %v3690_v5  ;;  %v6242_v8 = vmul.f32 %v6127_v23, %v3814_v1  ;;  %v3655_v40 = vrot.slane %v3455_v21, 7  ;;  %v3720_v25 = vmul.f32 %v6070_v13, %v3455_v21  ;;  %v3467_v4 = vpop.f32.mrf.mxu0 }
 0xfe2   : > { %v3707_v24 = vadd.f32 %v6210_v38, %v3699_v62  ;;  %v6249_v55 = vrot.slane %v3455_v21, 1  ;;  %v3844_v56 = vmul.f32 %v6072_v54, %v3455_v21  ;;  %vm6385_vm3 = vcmp.ge.s32.totalorder %v6824_v2, 1 }
 0xfe3   : > { %v3710_v12 = vadd.f32 %v6210_v38, %v3702_v19  ;;  %v6255_v5 = vsel %vm6772_vm8, %v3655_v40, %v3656_v36  ;;  %v3667_v1 = vsel %vm6772_vm8, %v6170_v43, %v3655_v40  ;;  %v6263_v62 = vsel %vm6772_vm8, %v6077_v57, %v3655_v40  ;;  %v5057_v22 = vpop.f32.mrf.mxu0 }
 0xfe4   : > { %6802 = vst [vmem:[#allocation14_spill] sm:$0xff] %v6255_v5  ;;  %6803 = vst [vmem:[#allocation15_spill] sm:$0xff] %v6263_v62  ;;  %v3727_v19 = vadd.f32 %v3719_v44, %v3707_v24  ;;  %v3688_v36 = vsel %vm6123_vm11, %v3667_v1, 0.0  ;;  %v3689_v47 = vsel %vm6129_vm12, %v6255_v5, 0.0  ;;  %v6280_v40 = vsel %vm6771_vm10, %v6173_v45, %v6249_v55 }
 0xfe5   : > { %v3730_v44 = vadd.f32 %v3722_v46, %v3710_v12  ;;  %v3700_v24 = vmul.f32 %v6111_v11, %v3688_v36  ;;  %v3701_v35 = vmul.f32 %v6111_v11, %v3689_v47  ;;  %v3768_v7 = vsel %vm6178_vm14, %v6280_v40, 0.0 }
 0xfe6   : > { %v3780_v0 = vmul.f32 %v6119_v17, %v3768_v7  ;;  %v3812_v15 = vsel %vm6107_vm9, %v3667_v1, 0.0  ;;  %v3813_v53 = vsel %vm6123_vm11, %v6255_v5, 0.0  ;;  %v6309_v1 = vmul.f32 %v6074_v29, %v3455_v21 }
 0xfe7   : > { %v3708_v46 = vadd.f32 %v6210_v38, %v3700_v24  ;;  %v3709_v47 = vadd.f32 %v6210_v38, %v3701_v35  ;;  %v3824_v36 = vmul.f32 %v6127_v23, %v3812_v15  ;;  %v6306_v7 = vmul.f32 %v6127_v23, %v3813_v53  ;;  %v6859_v59 = vld [vmem:[#allocation13_spill] sm:$0xff] }
 0xfe8   : > { %v3788_v9 = vadd.f32 %v3780_v0, %v3727_v19  ;;  %6809 = vst [vmem:[#allocation17_spill] sm:$0xff] %v6309_v1  ;;  %v6315_v51 = vsel %vm6771_vm10, %v6113_v16, %v6249_v55  ;;  %v3476_v12 = vadd.f32 %v5056_v26, %v6085_v39  ;;  %v6811_v24 = vand.u32 7, %v6051_v28 }
 0xfe9   : > { %6808 = vst [vmem:[#allocation16_spill] sm:$0xff] %v6306_v7  ;;  %6810 = vst [vmem:[#allocation18_spill] sm:$0xff] %v6315_v51  ;;  %v6324_v15 = vadd.f32 %v3720_v25, %v3708_v46  ;;  %v3729_v0 = vadd.f32 %v6152_v37, %v3709_v47  ;;  %v6328_v21 = vadd.f32 %v6085_v39, %v3467_v4  ;;  %v3770_v19 = vsel %vm6203_vm15, %v6228_v14, 0.0 }
 0xfea   : > { %vm6320_vm2 = vcmp.ge.s32.totalorder %v6811_v24, 1  ;;  %v6814_v53 = vand.u32 7, %v6105_v48  ;;  %v6815_v26 = vmov 0  ;;  %v3832_v24 = vadd.f32 %v3824_v36, %v3788_v9 }
 0xfeb   : > { %v6339_v51 = vrot.slane %v3476_v12, 7  ;;  %v6342_v25 = vmul.f32 %v6070_v13, %v3476_v12  ;;  %v6344_v37 = vrot.slane %v3476_v12, 1  ;;  %v6353_v47 = vmul.f32 %v6072_v54, %v3476_v12 }
 0xfec   : > { %vm6335_vm4 = vcmp.le.s32.totalorder %v6814_v53, 6  ;;  %v6817_v4 = vmov %v6814_v53  ;;  %v6356_v53 = vmul.f32 %v6074_v29, %v3476_v12  ;;  %v6766_v9 = vrot.slane %v6328_v21, 7 }
 0xfed   : > { %v6816_v26 = vsel %vm6335_vm4, 4294967295, %v6815_v26  ;;  %vm6348_vm6 = vcmp.ge.s32.totalorder %v6817_v4, 1  ;;  %6820 = vst [vmem:[#allocation19_spill] sm:$0xff] %v6353_v47  ;;  %v3723_v36 = vmul.f32 %v6070_v13, %v6328_v21  ;;  %v6361_v20 = vadd.f32 %v3844_v56, %v3832_v24 }
 0xfee   : > { %6821 = vst [vmem:[#allocation20_spill] sm:$0xff] %v6356_v53  ;;  %v3669_v48 = vsel %vm6772_vm8, %v6339_v51, %v6077_v57  ;;  %v3750_v4 = vsel %vm6771_vm10, %v6344_v37, %v6113_v16  ;;  %v6823_v53 = vrot.slane %v6168_v42, 7  ;;  %v3782_v24 = vmul.f32 %v6119_v17, %v3770_v19 }
 0xfef   : > { %6822 = vst [vmem:[#allocation21_spill] sm:$0xff] %v6361_v20  ;;  %v3847_v1 = vmul.f32 %v6072_v54, %v6328_v21  ;;  %v3978_v58 = vmul.f32 %v6074_v29, %v6328_v21  ;;  %v6827_v47 = vmov %v6824_v2  ;;  %v3479_v31 = vadd.f32 %v5057_v22, %v6085_v39 }
 0xff0   : > { %v3664_v56 = vsel %vm6772_vm8, %v6823_v53, %v6766_v9  ;;  %vm6391_vm5 = vcmp.le.s32.totalorder %v6827_v47, 6  ;;  %v6830_v53 = vrot.slane %v6328_v21, 1  ;;  %v6831_v9 = vrot.slane %v6168_v42, 1 }
 0xff1   : > { %v3691_v19 = vsel %vm6267_vm0, %v3664_v56, 0.0  ;;  %v3815_v2 = vsel %vm6135_vm13, %v3664_v56, 0.0  ;;  %v3946_v61 = vsel %vm6129_vm12, %v3664_v56, 0.0  ;;  %v3790_v62 = vadd.f32 %v3782_v24, %v3729_v0 }
 0xff2   : > { %v6403_v10 = vsel %vm6771_vm10, %v6831_v9, %v6830_v53  ;;  %v3703_v47 = vmul.f32 %v6111_v11, %v3691_v19  ;;  %v3827_v7 = vmul.f32 %v6127_v23, %v3815_v2  ;;  %v3958_v53 = vmul.f32 %v6141_v33, %v3946_v61 }
 0xff3   : > { %6832 = vst [vmem:[#allocation22_spill] sm:$0xff] %v6403_v10  ;;  %v3771_v5 = vsel %vm6284_vm1, %v6403_v10, 0.0  ;;  %v3878_v9 = vsel %vm6203_vm15, %v6403_v10, 0.0  ;;  %v6833_v56 = vand.u32 7, %v6099_v6  ;;  %v3834_v24 = vadd.f32 %v6242_v8, %v3790_v62 }
 0xff4   : > { %v3783_v42 = vmul.f32 %v6119_v17, %v3771_v5  ;;  %v3711_v0 = vadd.f32 %v6210_v38, %v3703_v47  ;;  %v3890_v5 = vmul.f32 %v6139_v3, %v3878_v9  ;;  %v3686_v2 = vsel %vm6320_vm2, %v3669_v48, 0.0  ;;  %v6855_v35 = vld [vmem:[#allocation19_spill] sm:$0xff] }
 0xff5   : > { %vm6422_vm12 = vcmp.le.s32.totalorder %v6833_v56, 6  ;;  %v3698_v61 = vmul.f32 %v6111_v11, %v3686_v2  ;;  %v3774_v22 = vsel %vm6335_vm4, %v3750_v4, 0.0  ;;  %v3802_v6 = vrot.slane %v3479_v31, 7 }
 0xff6   : > { %v3791_v27 = vadd.f32 %v3783_v42, %v3730_v44  ;;  %v6434_v56 = vadd.f32 %v3723_v36, %v3711_v0  ;;  %v3854_v10 = vadd.f32 %v6188_v50, %v3834_v24  ;;  %v6438_v47 = vmul.f32 %v6119_v17, %v3774_v22 }
 0xff7   : > { %v6441_v8 = vmul.f32 %v6072_v54, %v3479_v31  ;;  %v6836_v62 = vand.u32 7, %v6061_v52  ;;  %v3706_v4 = vadd.f32 %v6210_v38, %v3698_v61  ;;  %v3803_v36 = vsel %vm6772_vm8, %v6339_v51, %v3802_v6 }
 0xff8   : > { %v3835_v48 = vadd.f32 %v3827_v7, %v3791_v27  ;;  %v3810_v50 = vsel %vm6772_vm8, %v3802_v6, %v6170_v43  ;;  %v3898_v42 = vadd.f32 %v3890_v5, %v3854_v10  ;;  %v3818_v52 = vsel %vm6348_vm6, %v3803_v36, 0.0 }
 0xff9   : > { %vm6445_vm10 = vcmp.le.s32.totalorder %v6836_v62, 6  ;;  %v3811_v9 = vsel %vm6320_vm2, %v3810_v50, 0.0  ;;  %v3866_v0 = vrot.slane %v3479_v31, 1  ;;  %v3726_v27 = vadd.f32 %v6147_v60, %v3706_v4  ;;  %v3470_v62 = vpop.f32.mrf.mxu0 }
 0xffa   : > { %v6460_v24 = vadd.f32 %v3847_v1, %v3835_v48  ;;  %v3823_v7 = vmul.f32 %v6127_v23, %v3811_v9  ;;  %v6465_v2 = vmul.f32 %v6127_v23, %v3818_v52  ;;  %v3966_v61 = vadd.f32 %v3958_v53, %v3898_v42 }
 0xffb   : > { %vm6839_vm8 = vcmp.lt.s32.totalorder %v6051_v28, 7  ;;  %vm6841_vm11 = vcmp.lt.s32.totalorder %v6051_v28, 1  ;;  %v3787_v60 = vadd.f32 %v6232_v49, %v3726_v27  ;;  %v3949_v22 = vsel %vm6385_vm3, %v3803_v36, 0.0 }
 0xffc   : > { %v3867_v10 = vsel %vm6839_vm8, %v6344_v37, %v3866_v0  ;;  %vm6840_vm15 = vmmov %vm6839_vm8  ;;  %v3935_v1 = vsel %vm6841_vm11, %v3802_v6, %v6077_v57  ;;  %v6483_v48 = vadd.f32 %v3978_v58, %v3966_v61  ;;  %v6494_v6 = vmul.f32 %v6141_v33, %v3949_v22  ;;  %v6505_v58 = vld [vmem:[%s6751_s12 + $0x8] ss:$0 sm:$0xff] }
 0xffd   : > { %v3874_v43 = vsel %vm6840_vm15, %v3866_v0, %v6173_v45  ;;  %v3881_v5 = vsel %vm6391_vm5, %v3867_v10, 0.0  ;;  %v3950_v57 = vsel %vm6348_vm6, %v3935_v1, 0.0  ;;  %v3831_v49 = vadd.f32 %v3823_v7, %v3787_v60  ;;  %vm6843_vm11 = vmmov %vm6839_vm8 }
 0xffe   : > { %v3882_v53 = vsel %vm6335_vm4, %v3874_v43, 0.0  ;;  %v6486_v45 = vmul.f32 %v6139_v3, %v3881_v5  ;;  %v6497_v50 = vmul.f32 %v6141_v33, %v3950_v57  ;;  %v6500_v36 = vmul.f32 %v6074_v29, %v3479_v31  ;;  %vm6848_vm4 = vmmov %vm6843_vm11 }
 0xfff   : > { %v6489_v4 = vmul.f32 %v6139_v3, %v3882_v53  ;;  %v3999_v42 = vsel %vm6839_vm8, %v3866_v0, %v6113_v16  ;;  %v4012_v9 = vsel %vm6422_vm12, %v3867_v10, 0.0  ;;  %v3471_v52 = vadd.f32 %v6085_v39, %v3470_v62 }
0x1000   : > { %v6842_v27 = vrot.slane %v6117_v63, 1  ;;  %v4013_v7 = vsel %vm6391_vm5, %v3999_v42, 0.0  ;;  %v6523_v61 = vmul.f32 %v6505_v58, %v4012_v9  ;;  %v3851_v0 = vadd.f32 %v6176_v30, %v3831_v49 }
0x1001   : > { %v6530_v39 = vmul.f32 %v6505_v58, %v4013_v7  ;;  %v3659_v63 = vrot.slane %v3471_v52, 7  ;;  %v3724_v10 = vmul.f32 %v6070_v13, %v3471_v52  ;;  %v3848_v43 = vmul.f32 %v6072_v54, %v3471_v52 }
0x1002   : > { %v6518_v31 = vsel %vm6843_vm11, %v6249_v55, %v6842_v27  ;;  %v3740_v55 = vrot.slane %v3471_v52, 1  ;;  %v3979_v1 = vmul.f32 %v6074_v29, %v3471_v52  ;;  %vm6844_vm15 = vcmp.lt.s32.totalorder %v6051_v28, 1 }
0x1003   : > { %v3769_v16 = vsel %vm6445_vm10, %v6518_v31, 0.0  ;;  %v3876_v5 = vsel %vm6178_vm14, %v6518_v31, 0.0  ;;  %v3662_v30 = vsel %vm6844_vm15, %v3659_v63, %v6339_v51  ;;  %v6845_v53 = vrot.slane %v6328_v21, 7  ;;  %vm6846_vm8 = vmmov %vm6844_vm15 }
0x1004   : > { %v3781_v60 = vmul.f32 %v6119_v17, %v3769_v16  ;;  %v6549_v54 = vsel %vm6843_vm11, %v3740_v55, %v6344_v37  ;;  %v6847_v29 = vrot.slane %v6328_v21, 1  ;;  %v3693_v51 = vsel %vm6348_vm6, %v3662_v30, 0.0 }
0x1005   : > { %v3663_v13 = vsel %vm6846_vm8, %v6845_v53, %v3659_v63  ;;  %v3773_v49 = vsel %vm6391_vm5, %v6549_v54, 0.0  ;;  %v3705_v21 = vmul.f32 %v6111_v11, %v3693_v51  ;;  %v3817_v46 = vsel %vm6385_vm3, %v3662_v30, 0.0 }
0x1006   : > { %v3744_v22 = vsel %vm6848_vm4, %v6847_v29, %v3740_v55  ;;  %v3692_v62 = vsel %vm6385_vm3, %v3663_v13, 0.0  ;;  %v3785_v42 = vmul.f32 %v6119_v17, %v3773_v49  ;;  %v3816_v9 = vsel %vm6267_vm0, %v3663_v13, 0.0  ;;  %v6851_v49 = vld [vmem:[#allocation15_spill] sm:$0xff] }
0x1007   : > { %v3772_v57 = vsel %vm6422_vm12, %v3744_v22, 0.0  ;;  %v3704_v37 = vmul.f32 %v6111_v11, %v3692_v62  ;;  %v3879_v52 = vsel %vm6284_vm1, %v3744_v22, 0.0  ;;  %v3880_v20 = vsel %vm6422_vm12, %v6549_v54, 0.0 }
0x1008   : > { %v3784_v28 = vmul.f32 %v6119_v17, %v3772_v57  ;;  %v3713_v11 = vadd.f32 %v6210_v38, %v3705_v21  ;;  %v3828_v17 = vmul.f32 %v6127_v23, %v3816_v9  ;;  %v3829_v16 = vmul.f32 %v6127_v23, %v3817_v46  ;;  %v6854_v9 = vld [vmem:[#allocation21_spill] sm:$0xff] }
0x1009   : > { %v3712_v27 = vadd.f32 %v6210_v38, %v3704_v37  ;;  %v3891_v12 = vmul.f32 %v6139_v3, %v3879_v52  ;;  %v3892_v63 = vmul.f32 %v6139_v3, %v3880_v20  ;;  %v3947_v55 = vsel %vm6135_vm13, %v3663_v13, 0.0 }
0x100a   : > { %v3792_v7 = vadd.f32 %v3784_v28, %v6434_v56  ;;  %v3733_v19 = vadd.f32 %v6342_v25, %v3713_v11  ;;  %v3948_v38 = vsel %vm6267_vm0, %v3662_v30, 0.0  ;;  %v3959_v62 = vmul.f32 %v6141_v33, %v3947_v55  ;;  %v6857_v55 = vld [vmem:[#allocation7_spill] sm:$0xff] }
0x100b   : > { %v3732_v53 = vadd.f32 %v3724_v10, %v3712_v27  ;;  %v3899_v56 = vadd.f32 %v3891_v12, %v6460_v24  ;;  %v3789_v23 = vadd.f32 %v3781_v60, %v6324_v15  ;;  %v3877_v51 = vsel %vm6445_vm10, %v6228_v14, 0.0  ;;  %v6850_v24 = vld [vmem:[#allocation16_spill] sm:$0xff]  ;;  %v6852_v60 = vld [vmem:[#allocation14_spill] sm:$0xff] }
0x100c   : > { %v3836_v29 = vadd.f32 %v3828_v17, %v3792_v7  ;;  %v6849_v25 = vsel %vm6089_vm7, %v6280_v40, 0.0  ;;  %v3888_v41 = vmul.f32 %v6139_v3, %v3876_v5  ;;  %v3943_v15 = vsel %vm6320_vm2, %v6851_v49, 0.0  ;;  %v6866_v49 = vld [vmem:[#allocation20_spill] sm:$0xff] }
0x100d   : > { %v3793_v57 = vadd.f32 %v3785_v42, %v3732_v53  ;;  %v3887_v10 = vmul.f32 %v6139_v3, %v6849_v25  ;;  %v3967_v30 = vadd.f32 %v3959_v62, %v3899_v56  ;;  %v3833_v13 = vadd.f32 %v6850_v24, %v3789_v23  ;;  %v6864_v23 = vld [vmem:[#allocation17_spill] sm:$0xff] }
0x100e   : > { %v3856_v32 = vadd.f32 %v3848_v43, %v3836_v29  ;;  %v3944_v21 = vsel %vm6107_vm9, %v6852_v60, 0.0  ;;  %v3896_v40 = vadd.f32 %v3888_v41, %v6854_v9  ;;  %v3955_v52 = vmul.f32 %v6141_v33, %v3943_v15  ;;  %v6861_v29 = vld [vmem:[#allocation22_spill] sm:$0xff] }
0x100f   : > { %v3837_v43 = vadd.f32 %v3829_v16, %v3793_v57  ;;  %v3895_v42 = vadd.f32 %v3887_v10, %v3851_v0  ;;  %v3987_v46 = vadd.f32 %v3979_v1, %v3967_v30  ;;  %v3956_v5 = vmul.f32 %v6141_v33, %v3944_v21  ;;  %v6856_v0 = vld [vmem:[#allocation9_spill] sm:$0xff] }
0x1010   : > { %v3900_v28 = vadd.f32 %v3892_v63, %v3856_v32  ;;  %v4007_v20 = vsel %vm6089_vm7, %v6518_v31, 0.0  ;;  %v4008_v11 = vsel %vm6178_vm14, %v6228_v14, 0.0  ;;  %v3853_v17 = vadd.f32 %v6856_v0, %v3833_v13  ;;  %v6862_v14 = vld [vmem:[#allocation12_spill] sm:$0xff]  ;;  %v6865_v32 = vld [vmem:[#allocation10_spill] sm:$0xff] }
0x1011   : > { %v3857_v27 = vadd.f32 %v6855_v35, %v3837_v43  ;;  %v4019_v7 = vmul.f32 %v6505_v58, %v4007_v20  ;;  %v3963_v16 = vadd.f32 %v3955_v52, %v3895_v42  ;;  %v3964_v1 = vadd.f32 %v3956_v5, %v3896_v40  ;;  %v6868_v0 = vld [vmem:[#allocation18_spill] sm:$0xff] }
0x1012   : > { %v4020_v12 = vmul.f32 %v6505_v58, %v4008_v11  ;;  %v3889_v63 = vmul.f32 %v6139_v3, %v3877_v51  ;;  %vm6858_vm3 = vnez %v6857_v55  ;;  %v4009_v18 = vsel %vm6445_vm10, %v6861_v29, 0.0  ;;  %v6870_v55 = vld [vmem:[#allocation8_spill] sm:$0xff] }
0x1013   : > { %v6860_v31 = vsel %vm6858_vm3, %v6859_v59, 0.0  ;;  %vm6863_vm5 = vnez %v6862_v14  ;;  %v3960_v62 = vmul.f32 %v6141_v33, %v3948_v38  ;;  %v3983_v57 = vadd.f32 %v6864_v23, %v3963_v16 }
0x1014   : > { %v3957_v53 = vmul.f32 %v6141_v33, %v6860_v31  ;;  %v4010_v56 = vsel %vm6863_vm5, %v3744_v22, 0.0  ;;  %v3984_v25 = vadd.f32 %v6865_v32, %v3964_v1  ;;  %v3897_v3 = vadd.f32 %v3889_v63, %v3853_v17 }
0x1015   : > { %v4021_v51 = vmul.f32 %v6505_v58, %v4009_v18  ;;  %v4022_v10 = vmul.f32 %v6505_v58, %v4010_v56  ;;  %v3968_v41 = vadd.f32 %v3960_v62, %v3900_v28  ;;  %v4011_v44 = vsel %vm6284_vm1, %v6549_v54, 0.0  ;;  %v6867_v54 = vld [vmem:[#allocation11_spill] sm:$0xff] }
0x1016   : > { %v3794_v30 = vadd.f32 %v6438_v47, %v3733_v19  ;;  %v6641_v24 = vadd.f32 %v4019_v7, %v3983_v57  ;;  %v6643_v22 = vadd.f32 %v4020_v12, %v3984_v25  ;;  %v3965_v33 = vadd.f32 %v3957_v53, %v3897_v3 }
0x1017   : > { %v4023_v38 = vmul.f32 %v6505_v58, %v4011_v44  ;;  %v6647_v13 = vadd.f32 %v4022_v10, %v6483_v48  ;;  %v3988_v15 = vadd.f32 %v6866_v49, %v3968_v41  ;;  %v3901_v37 = vadd.f32 %v6486_v45, %v3857_v27 }
0x1018   : > { %v3838_v60 = vadd.f32 %v6465_v2, %v3794_v30  ;;  %v4035_v34 = vmul.f32 %v6641_v24, %v6641_v24  ;;  %v4036_v47 = vmul.f32 %v6643_v22, %v6643_v22  ;;  %v3985_v19 = vadd.f32 %v6867_v54, %v3965_v33 }
0x1019   : > { %v6657_v21 = vadd.f32 %v4023_v38, %v3987_v46  ;;  %v4038_v48 = vmul.f32 %v6647_v13, %v6647_v13  ;;  %v6662_v43 = vadd.f32 %v6523_v61, %v3988_v15  ;;  %v3969_v45 = vadd.f32 %v6494_v6, %v3901_v37 }
0x101a   : > { %v3858_v2 = vadd.f32 %v6441_v8, %v3838_v60  ;;  %v4043_v28 = vmul.f32 %v4035_v34, %v6641_v24  ;;  %v4044_v42 = vmul.f32 %v4036_v47, %v6643_v22  ;;  %v6668_v9 = vadd.f32 %v4021_v51, %v3985_v19 }
0x101b   : > { %v4039_v40 = vmul.f32 %v6657_v21, %v6657_v21  ;;  %v4046_v46 = vmul.f32 %v4038_v48, %v6647_v13  ;;  %v4040_v52 = vmul.f32 %v6662_v43, %v6662_v43  ;;  %v3989_v8 = vadd.f32 %v6500_v36, %v3969_v45 }
0x101c   : > { %v3902_v61 = vadd.f32 %v6489_v4, %v3858_v2  ;;  %v4051_v5 = vmul.f32 0.044715, %v4043_v28  ;;  %v4052_v6 = vmul.f32 0.044715, %v4044_v42  ;;  %v4037_v20 = vmul.f32 %v6668_v9, %v6668_v9 }
0x101d   : > { %v4047_v35 = vmul.f32 %v4039_v40, %v6657_v21  ;;  %v4054_v27 = vmul.f32 0.044715, %v4046_v46  ;;  %v4048_v11 = vmul.f32 %v4040_v52, %v6662_v43  ;;  %vm6869_vm7 = vnez %v6816_v26 }
0x101e   : > { %v3970_v7 = vadd.f32 %v6497_v50, %v3902_v61  ;;  %v4014_v17 = vsel %vm6869_vm7, %v6868_v0, 0.0  ;;  %v4059_v4 = vadd.f32 %v4051_v5, %v6641_v24  ;;  %v4060_v36 = vadd.f32 %v4052_v6, %v6643_v22 }
0x101f   : > { %v4045_v16 = vmul.f32 %v4037_v20, %v6668_v9  ;;  %v4055_v1 = vmul.f32 0.044715, %v4047_v35  ;;  %v4062_v12 = vadd.f32 %v4054_v27, %v6647_v13  ;;  %v4056_v63 = vmul.f32 0.044715, %v4048_v11 }
0x1020   : > { %v3990_v59 = vadd.f32 %v6870_v55, %v3970_v7  ;;  %v4026_v31 = vmul.f32 %v6505_v58, %v4014_v17  ;;  %v4067_v53 = vmul.f32 0.7978846, %v4059_v4  ;;  %v4068_v50 = vmul.f32 0.7978846, %v4060_v36 }
0x1021   : > { %v4053_v29 = vmul.f32 0.044715, %v4045_v16  ;;  %v4063_v26 = vadd.f32 %v4055_v1, %v6657_v21  ;;  %v4070_v18 = vmul.f32 0.7978846, %v4062_v12  ;;  %v4064_v14 = vadd.f32 %v4056_v63, %v6662_v43 }
0x1022   : > { %v4033_v56 = vadd.f32 %v6530_v39, %v3989_v8  ;;  %v4034_v62 = vadd.f32 %v4026_v31, %v3990_v59  ;;  %5295 = vtanh.f32 %v4067_v53  ;;  %vm6871_vm9 = vcmask 523264   ;;  %v5311_v59 = vld [vmem:[#allocation5 + $0x10] sm:$0xff] }
0x1023   : > { %v4061_v23 = vadd.f32 %v4053_v29, %v6668_v9  ;;  %v4071_v57 = vmul.f32 0.7978846, %v4063_v26  ;;  %5297 = vtanh.f32 %v4068_v50  ;;  %v4072_v32 = vmul.f32 0.7978846, %v4064_v14  ;;  %vm6872_vm10 = vmmov %vm6871_vm9  ;;  %v5312_v29 = vld [vmem:[#allocation5] sm:$0xff] }
0x1024   : > { %v4041_v25 = vmul.f32 %v4033_v56, %v4033_v56  ;;  %v4042_v3 = vmul.f32 %v4034_v62, %v4034_v62  ;;  %5299 = vtanh.f32 %v4070_v18  ;;  %vm6873_vm13 = vmmov %vm6871_vm9  ;;  %vm6875_vm0 = vcmask 261120  }
0x1025   : > { %v4069_v58 = vmul.f32 0.7978846, %v4061_v23  ;;  %5301 = vtanh.f32 %v4071_v57  ;;  %vm6874_vm14 = vmmov %vm6871_vm9 }
0x1026   : > { %v4049_v51 = vmul.f32 %v4041_v25, %v4033_v56  ;;  %v4050_v10 = vmul.f32 %v4042_v3, %v4034_v62  ;;  %vm6876_vm1 = vmmov %vm6875_vm0 }
0x1027   : > { %5303 = vtanh.f32 %v4069_v58  ;;  %vm6877_vm2 = vmmov %vm6875_vm0 }
0x1028   : > { %5305 = vtanh.f32 %v4072_v32  ;;  %v4057_v41 = vmul.f32 0.044715, %v4049_v51  ;;  %v4058_v44 = vmul.f32 0.044715, %v4050_v10  ;;  %v5314_v32 = vld [vmem:[#allocation5 + $0x8] sm:$0xff]  ;;  %vm6878_vm4 = vmmov %vm6875_vm0  ;;  %v5315_v51 = vld [vmem:[#allocation5 + $0x30] sm:$0xff] }
0x1029   : > { %vm6879_vm6 = vmmov %vm6875_vm0 }
0x102a   : > { %v4065_v30 = vadd.f32 %v4057_v41, %v4033_v56  ;;  %v4066_v39 = vadd.f32 %v4058_v44, %v4034_v62  ;;  %vm6880_vm12 = vmmov %vm6875_vm0 }
0x102b   : > { %vm6881_vm15 = vmmov %vm6875_vm0 }
0x102c   : > { %v4073_v33 = vmul.f32 0.7978846, %v4065_v30  ;;  %v4074_v38 = vmul.f32 0.7978846, %v4066_v39  ;;  %v5316_v30 = vld [vmem:[#allocation5 + $0x20] sm:$0xff]  ;;  %vm6882_vm8 = vmmov %vm6875_vm0 }
0x102e   : > { %5307 = vtanh.f32 %v4073_v33 }
0x102f   : > { %5309 = vtanh.f32 %v4074_v38  ;;  %v5296_v49 = vpop.eup %5295 }
0x1030   : > { %v5298_v15 = vpop.eup %5297  ;;  %v4083_v60 = vadd.f32 1.0, %v5296_v49  ;;  %v5317_v49 = vld [vmem:[#allocation5 + $0x38] sm:$0xff] }
0x1031   : > { %v5300_v37 = vpop.eup %5299  ;;  %v4084_v34 = vadd.f32 1.0, %v5298_v15 }
0x1032   : > { %v5302_v47 = vpop.eup %5301  ;;  %v4091_v54 = vmul.f32 0.5, %v4083_v60  ;;  %v4086_v19 = vadd.f32 1.0, %v5300_v37  ;;  %v5318_v37 = vld [vmem:[#allocation5 + $0x28] sm:$0xff] }
0x1033   : > { %v4092_v2 = vmul.f32 0.5, %v4084_v34  ;;  %v4087_v45 = vadd.f32 1.0, %v5302_v47 }
0x1034   : > { %v5304_v48 = vpop.eup %5303  ;;  %v4099_v42 = vmul.f32 %v4091_v54, %v6641_v24  ;;  %v4094_v46 = vmul.f32 0.5, %v4086_v19 }
0x1035   : > { %v5306_v28 = vpop.eup %5305  ;;  %v4085_v40 = vadd.f32 1.0, %v5304_v48  ;;  %v4100_v52 = vmul.f32 %v4092_v2, %v6643_v22  ;;  %v4095_v8 = vmul.f32 0.5, %v4087_v45 }
0x1036   : > { %v4088_v61 = vadd.f32 1.0, %v5306_v28  ;;  %v4102_v6 = vmul.f32 %v4094_v46, %v6647_v13 }
0x1037   : > { %v4093_v5 = vmul.f32 0.5, %v4085_v40  ;;  %v4107_v20 = vpack.c.bf16 %v4100_v52, %v4099_v42  ;;  %v4103_v11 = vmul.f32 %v4095_v8, %v6657_v21  ;;  %v4575_v21 = vld [vmem:[%s6754_s15] ss:$0 sm:$0xff] }
0x1038   : > { %v4096_v35 = vmul.f32 0.5, %v4088_v61 }
0x1039   : > { %v4101_v27 = vmul.f32 %v4093_v5, %v6668_v9  ;;  %5066 = vmatprep.mubr.msk.bf16.mxu1 %vm6871_vm9, %v4107_v20 }
0x103a   : > { %v4104_v7 = vmul.f32 %v4096_v35, %v6662_v43 }
0x103b   : > { %v5308_v24 = vpop.eup %5307  ;;  %v4108_v0 = vpack.c.bf16 %v4102_v6, %v4101_v27 }
0x103c   : > { %v5310_v17 = vpop.eup %5309  ;;  %v4109_v4 = vpack.c.bf16 %v4104_v7, %v4103_v11  ;;  %v4089_v22 = vadd.f32 1.0, %v5308_v24 }
0x103d   : > { %5067 = vmatmul.mubr.msk.bf16.vlgmr.msra.gmra.mxu1 %vm6872_vm10, %v4108_v0  ;;  %v4090_v36 = vadd.f32 1.0, %v5310_v17 }
0x103e   : > { %5070 = vmatprep.mubr.msk.bf16.mxu1 %vm6873_vm13, %v4109_v4  ;;  %v4097_v13 = vmul.f32 0.5, %v4089_v22 }
0x103f   : > { %v4098_v16 = vmul.f32 0.5, %v4090_v36 }
0x1040   : > { %v4105_v9 = vmul.f32 %v4097_v13, %v4033_v56  ;;  %v5313_v56 = vld [vmem:[#allocation5 + $0x18] sm:$0xff] }
0x1041   : > { %v4106_v1 = vmul.f32 %v4098_v16, %v4034_v62 }
0x1043   : > { %v4110_v12 = vpack.c.bf16 %v4106_v1, %v4105_v9 }
0x1045   : > { %5071 = vmatmul.mubr.msk.bf16.gmra.mxu1 %vm6874_vm14, %v4110_v12 }
0x10fd   : > { %v5068_v43 = vpop.f32.mrf.mxu1 }
0x10fe   : > { %v4205_v63 = vadd.f32 %v5068_v43, %v4575_v21 }
0x10ff   : > { %v4196_v55 = vpop.f32.mrf.mxu1 }
0x1100   : > { %v4229_v31 = vadd.f32 %v5311_v59, %v4205_v63  ;;  %v4197_v53 = vadd.f32 %v4575_v21, %v4196_v55 }
0x1101   : > { %v5069_v50 = vpop.f32.mrf.mxu1 }
0x1102   : > { %4237 = vst.msk [vmem:[%s5485_s20 + $0x10] sm:$0xff] %vm6875_vm0, %v4229_v31  ;;  %v4227_v26 = vadd.f32 %v5312_v29, %v4197_v53  ;;  %v4208_v18 = vadd.f32 %v5069_v50, %v4575_v21 }
0x1103   : > { %v4199_v14 = vpop.f32.mrf.mxu1 }
0x1104   : > { %4235 = vst.msk [vmem:[%s5485_s20] sm:$0xff] %vm6876_vm1, %v4227_v26  ;;  %v4230_v62 = vadd.f32 %v5313_v56, %v4208_v18  ;;  %v4200_v23 = vadd.f32 %v4575_v21, %v4199_v14 }
0x1105   : > { %v5072_v57 = vpop.f32.mrf.mxu1 }
0x1106   : > { %4238 = vst.msk [vmem:[%s5485_s20 + $0x18] sm:$0xff] %vm6877_vm2, %v4230_v62  ;;  %v4228_v25 = vadd.f32 %v5314_v32, %v4200_v23  ;;  %v4221_v3 = vadd.f32 %v5072_v57, %v4575_v21 }
0x1107   : > { %v4212_v58 = vpop.f32.mrf.mxu1 }
0x1108   : > { %4236 = vst.msk [vmem:[%s5485_s20 + $0x8] sm:$0xff] %vm6878_vm4, %v4228_v25  ;;  %v4233_v10 = vadd.f32 %v5315_v51, %v4221_v3  ;;  %v4213_v41 = vadd.f32 %v4575_v21, %v4212_v58 }
0x1109   : > { %v5073_v44 = vpop.f32.mrf.mxu1 }
0x110a   : > { %4241 = vst.msk [vmem:[%s5485_s20 + $0x30] sm:$0xff] %vm6879_vm6, %v4233_v10  ;;  %v4231_v39 = vadd.f32 %v5316_v30, %v4213_v41  ;;  %v4224_v33 = vadd.f32 %v5073_v44, %v4575_v21 }
0x110b   : > { %v4215_v38 = vpop.f32.mrf.mxu1 }
0x110c   : > { %4239 = vst.msk [vmem:[%s5485_s20 + $0x20] sm:$0xff] %vm6880_vm12, %v4231_v39  ;;  %v4234_v15 = vadd.f32 %v5317_v49, %v4224_v33  ;;  %v4216_v60 = vadd.f32 %v4575_v21, %v4215_v38 }
0x110e   : > { %4242 = vst.msk [vmem:[%s5485_s20 + $0x38] sm:$0xff] %vm6881_vm15, %v4234_v15  ;;  %v4232_v34 = vadd.f32 %v5318_v37, %v4216_v60 }
0x1110   : > { %4240 = vst.msk [vmem:[%s5485_s20 + $0x28] sm:$0xff] %vm6882_vm8, %v4232_v34 }
0x1111 PF: > { %s26_s25 = sadd.s32 1, %s5357_s25   ;;  %s6883_s21 = smov %s5349_s23 }
0x1112   : > { %p23_p8 = scmp.ge.s32.totalorder %s26_s25, 6   ;;  %s6884_s22 = smov %s5353_s24 }
0x1113   : > { %s6885_s23 = smov %s6888_s26  ;;  %s6886_s24 = smov %s6892_s27 }
0x1114   :  { %25 = sbr.rel (!%p23_p8) target bundleno = 4 (0x4), region = 149 }

</bundles_post_ra>
